<compile_context>
chip_gen: v5e
topology: v5e:2x2
jax: 0.10.0
libtpu: 0.0.40
codegen_flags: <defaults>
</compile_context>

<pallas_src>
import math
import functools

import jax
import jax.numpy as jnp
from jax.experimental import pallas as pl
from jax.experimental.pallas import tpu as pltpu

_LN_EPS = 1e-5
_VMEM_LIMIT = 64 * 1024 * 1024


def _row_tile(m, cap=256):
    """Largest row tile <= cap that evenly divides m (multiple of 8), else m."""
    if m <= cap:
        return m
    for t in (cap, 256, 128, 64, 32, 16, 8):
        if t <= cap and m % t == 0:
            return t
    return m


# ------------------------- fused attention block ----------------------------

def _attn_block_kernel(x_ref, kv_ref, wq_ref, bq_ref, wkv_ref, bkv_ref,
                       wo_ref, bo_ref, g_ref, b_ref, o_ref,
                       *, nhead, scale, eps):
    """QKV proj -> per-head softmax attention -> out proj -> +residual -> LN."""
    x = x_ref[0]            # (tq, D) f32 query rows (also the residual)
    kv = kv_ref[0]          # (Sk, D) f32 key/value rows
    D = x.shape[-1]
    dh = D // nhead

    xb = x.astype(jnp.bfloat16)
    kvb = kv.astype(jnp.bfloat16)

    # Projections: bf16 operands, f32 MXU accumulation. K/V weights are fused.
    q = jnp.dot(xb, wq_ref[...], preferred_element_type=jnp.float32) + bq_ref[...]
    kvp = jnp.dot(kvb, wkv_ref[...], preferred_element_type=jnp.float32) + bkv_ref[...]
    k = kvp[:, :D]
    v = kvp[:, D:]

    qb = (q * scale).astype(jnp.bfloat16)
    kb = k.astype(jnp.bfloat16)
    vb = v.astype(jnp.bfloat16)

    # Per-head scaled-dot-product attention; heads stay resident in VMEM/vregs.
    ctx_parts = []
    for h in range(nhead):
        lo, hi = h * dh, (h + 1) * dh
        s = jax.lax.dot_general(qb[:, lo:hi], kb[:, lo:hi],
                                (((1,), (1,)), ((), ())),
                                preferred_element_type=jnp.float32)   # (tq, Sk)
        m = jnp.max(s, axis=-1, keepdims=True)
        p = jnp.exp(s - m)
        l = jnp.sum(p, axis=-1, keepdims=True)
        p = p * pl.reciprocal(l, approx=True)        # EUP slot, frees VALU
        ctx_parts.append(jnp.dot(p.astype(jnp.bfloat16), vb[:, lo:hi],
                                 preferred_element_type=jnp.float32))
    ctx = jnp.concatenate(ctx_parts, axis=-1)        # (tq, D) f32

    out = jnp.dot(ctx.astype(jnp.bfloat16), wo_ref[...],
                  preferred_element_type=jnp.float32) + bo_ref[...]

    # Residual + post-norm LayerNorm epilogue (PyTorch semantics).
    y = out + x
    mean = jnp.mean(y, axis=-1, keepdims=True)
    var = jnp.mean((y - mean) ** 2, axis=-1, keepdims=True)
    yn = (y - mean) * jax.lax.rsqrt(var + eps)
    o_ref[0] = (yn * g_ref[...] + b_ref[...]).astype(o_ref.dtype)


def fused_attention_block(x, kv, ap, ln_g, ln_b, nhead, eps=_LN_EPS):
    """x:(B,Sq,D) queries/residual, kv:(B,Sk,D).  Returns LN(x + MHA(x, kv))."""
    B, Sq, D = x.shape
    Sk = kv.shape[1]
    dh = D // nhead
    tq = _row_tile(Sq, 256)
    grid = (B, Sq // tq)

    flops = 2 * B * (2 * Sq * D * D + 2 * Sk * D * D + 2 * Sq * Sk * D)
    bytes_accessed = 4 * B * (2 * Sq * D + Sk * D) + 2 * (4 * D * D) + 4 * 8 * D
    cost = pl.CostEstimate(flops=flops,
                           transcendentals=B * nhead * Sq * Sk,
                           bytes_accessed=bytes_accessed)

    kernel = functools.partial(_attn_block_kernel, nhead=nhead,
                               scale=1.0 / math.sqrt(dh), eps=eps)
    return pl.pallas_call(
        kernel,
        out_shape=jax.ShapeDtypeStruct((B, Sq, D), x.dtype),
        grid=grid,
        in_specs=[
            pl.BlockSpec((1, tq, D), lambda bb, i: (bb, i, 0)),   # x (query rows)
            pl.BlockSpec((1, Sk, D), lambda bb, i: (bb, 0, 0)),   # kv (full seq)
            pl.BlockSpec((D, D),     lambda bb, i: (0, 0)),       # wq   (bf16)
            pl.BlockSpec((1, D),     lambda bb, i: (0, 0)),       # bq
            pl.BlockSpec((D, 2 * D), lambda bb, i: (0, 0)),       # wkv  (bf16)
            pl.BlockSpec((1, 2 * D), lambda bb, i: (0, 0)),       # bkv
            pl.BlockSpec((D, D),     lambda bb, i: (0, 0)),       # wo   (bf16)
            pl.BlockSpec((1, D),     lambda bb, i: (0, 0)),       # bo
            pl.BlockSpec((1, D),     lambda bb, i: (0, 0)),       # ln gamma
            pl.BlockSpec((1, D),     lambda bb, i: (0, 0)),       # ln beta
        ],
        out_specs=pl.BlockSpec((1, tq, D), lambda bb, i: (bb, i, 0)),
        compiler_params=pltpu.CompilerParams(
            dimension_semantics=("parallel", "parallel"),
            vmem_limit_bytes=_VMEM_LIMIT),
        cost_estimate=cost,
    )(x, kv, ap["wq"], ap["bq"], ap["wkv"], ap["bkv"], ap["wo"], ap["bo"],
      ln_g, ln_b)


# ---------------------------- fused FFN block --------------------------------

def _ffn_block_kernel(x_ref, w1_ref, b1_ref, w2_ref, b2_ref, g_ref, b_ref,
                      o_ref, *, eps):
    """linear1 + ReLU + linear2 + residual + LayerNorm, intermediate in VMEM."""
    x = x_ref[...]                                   # (tm, D) f32 (residual)
    h = jnp.dot(x.astype(jnp.bfloat16), w1_ref[...],
                preferred_element_type=jnp.float32) + b1_ref[...]
    h = jnp.maximum(h, 0.0)                          # (tm, F) stays in VMEM
    y = jnp.dot(h.astype(jnp.bfloat16), w2_ref[...],
                preferred_element_type=jnp.float32) + b2_ref[...]
    z = y + x
    mean = jnp.mean(z, axis=-1, keepdims=True)
    var = jnp.mean((z - mean) ** 2, axis=-1, keepdims=True)
    zn = (z - mean) * jax.lax.rsqrt(var + eps)
    o_ref[...] = (zn * g_ref[...] + b_ref[...]).astype(o_ref.dtype)


def fused_ffn_block(x, lp, ln_g, ln_b, eps=_LN_EPS):
    B, S, D = x.shape
    M = B * S
    F = lp["w1"].shape[1]
    tm = _row_tile(M, 256)
    x2 = x.reshape(M, D)

    flops = 4 * M * D * F
    bytes_accessed = 4 * 2 * M * D + 2 * 2 * D * F + 4 * (F + 3 * D)
    cost = pl.CostEstimate(flops=flops, transcendentals=0,
                           bytes_accessed=bytes_accessed)

    out = pl.pallas_call(
        functools.partial(_ffn_block_kernel, eps=eps),
        out_shape=jax.ShapeDtypeStruct((M, D), x.dtype),
        grid=(M // tm,),
        in_specs=[
            pl.BlockSpec((tm, D), lambda i: (i, 0)),   # x
            pl.BlockSpec((D, F),  lambda i: (0, 0)),   # w1 (bf16)
            pl.BlockSpec((1, F),  lambda i: (0, 0)),   # b1
            pl.BlockSpec((F, D),  lambda i: (0, 0)),   # w2 (bf16)
            pl.BlockSpec((1, D),  lambda i: (0, 0)),   # b2
            pl.BlockSpec((1, D),  lambda i: (0, 0)),   # ln gamma
            pl.BlockSpec((1, D),  lambda i: (0, 0)),   # ln beta
        ],
        out_specs=pl.BlockSpec((tm, D), lambda i: (i, 0)),
        compiler_params=pltpu.CompilerParams(
            dimension_semantics=("parallel",),
            vmem_limit_bytes=_VMEM_LIMIT),
        cost_estimate=cost,
    )(x2, lp["w1"], lp["b1"], lp["w2"], lp["b2"], ln_g, ln_b)
    return out.reshape(B, S, D)


# ------------------------- positional-encoding add ---------------------------

def _pe_add_kernel(x_ref, pe_ref, o_ref):
    o_ref[0] = x_ref[0] + pe_ref[...]


def pallas_pe_add(x, pe):
    """x:(B,S,D) + pe:(S,D), tiled over the batch axis."""
    B, S, D = x.shape
    return pl.pallas_call(
        _pe_add_kernel,
        out_shape=jax.ShapeDtypeStruct((B, S, D), x.dtype),
        grid=(B,),
        in_specs=[pl.BlockSpec((1, S, D), lambda b: (b, 0, 0)),
                  pl.BlockSpec((S, D),    lambda b: (0, 0))],
        out_specs=pl.BlockSpec((1, S, D), lambda b: (b, 0, 0)),
        compiler_params=pltpu.CompilerParams(
            dimension_semantics=("parallel",)),
    )(x, pe)


# ------------------------------- the model -----------------------------------

def encoder_decoder_transformer(src, params, nhead):
    S = src.shape[1]
    pe = params["pe"][:S]

    # Encoder: 2 pallas_calls per layer (fused attn+LN, fused FFN+LN).
    x = pallas_pe_add(src, pe)
    for lp in params["enc_layers"]:
        x = fused_attention_block(x, x, lp["self_attn"],
                                  lp["ln1_g"], lp["ln1_b"], nhead)
        x = fused_ffn_block(x, lp, lp["ln2_g"], lp["ln2_b"])
    memory = x

    # Decoder (tgt = positional-encoded src; no masks — matches reference).
    y = pallas_pe_add(src, pe)
    for lp in params["dec_layers"]:
        y = fused_attention_block(y, y, lp["self_attn"],
                                  lp["ln1_g"], lp["ln1_b"], nhead)
        y = fused_attention_block(y, memory, lp["cross_attn"],
                                  lp["ln2_g"], lp["ln2_b"], nhead)
        y = fused_ffn_block(y, lp, lp["ln3_g"], lp["ln3_b"])
    return y


# ---------------------------- parameter setup --------------------------------

def sinusoidal_pe(max_len, d_model):
    pos = jnp.arange(max_len, dtype=jnp.float32)[:, None]
    div = jnp.exp(-(jnp.arange(0, d_model, 2, dtype=jnp.float32)
                    * math.log(10000.0) / d_model))
    pe = jnp.zeros((max_len, d_model), jnp.float32)
    pe = pe.at[:, 0::2].set(jnp.sin(pos * div))
    pe = pe.at[:, 1::2].set(jnp.cos(pos * div))
    return pe


def _init_linear(key, in_f, out_f, scale=0.02):
    k1, k2 = jax.random.split(key)
    w = jax.random.normal(k1, (out_f, in_f), jnp.float32) * scale   # torch (out,in)
    b = jax.random.normal(k2, (out_f,), jnp.float32) * scale
    return w.T.astype(jnp.bfloat16), b.reshape(1, out_f)            # stored (in,out)


def _init_mha(key, d_model, scale=0.02):
    ks = jax.random.split(key, 4)
    in_w = jax.random.normal(ks[0], (3 * d_model, d_model), jnp.float32) * scale
    in_b = jax.random.normal(ks[1], (3 * d_model,), jnp.float32) * scale
    out_w = jax.random.normal(ks[2], (d_model, d_model), jnp.float32) * scale
    out_b = jax.random.normal(ks[3], (d_model,), jnp.float32) * scale
    wq, wk, wv = jnp.split(in_w, 3, axis=0)
    bq, bk, bv = jnp.split(in_b, 3, axis=0)
    return dict(
        wq=wq.T.astype(jnp.bfloat16),                                   # (D, D)
        wkv=jnp.concatenate([wk.T, wv.T], axis=1).astype(jnp.bfloat16),  # (D, 2D)
        wo=out_w.T.astype(jnp.bfloat16),                                # (D, D)
        bq=bq.reshape(1, d_model),
        bkv=jnp.concatenate([bk, bv]).reshape(1, 2 * d_model),
        bo=out_b.reshape(1, d_model))


def _init_encoder_layer(key, d_model, dim_ff):
    ks = jax.random.split(key, 3)
    p = {"self_attn": _init_mha(ks[0], d_model)}
    p["w1"], p["b1"] = _init_linear(ks[1], d_model, dim_ff)
    p["w2"], p["b2"] = _init_linear(ks[2], dim_ff, d_model)
    for i in (1, 2):
        p[f"ln{i}_g"] = jnp.ones((1, d_model), jnp.float32)
        p[f"ln{i}_b"] = jnp.zeros((1, d_model), jnp.float32)
    return p


def _init_decoder_layer(key, d_model, dim_ff):
    ks = jax.random.split(key, 4)
    p = {"self_attn": _init_mha(ks[0], d_model),
         "cross_attn": _init_mha(ks[1], d_model)}
    p["w1"], p["b1"] = _init_linear(ks[2], d_model, dim_ff)
    p["w2"], p["b2"] = _init_linear(ks[3], dim_ff, d_model)
    for i in (1, 2, 3):
        p[f"ln{i}_g"] = jnp.ones((1, d_model), jnp.float32)
        p[f"ln{i}_b"] = jnp.zeros((1, d_model), jnp.float32)
    return p


def init_params(key, d_model, num_encoder_layers=2, num_decoder_layers=2,
                dim_ff=2048, max_len=5000):
    keys = jax.random.split(key, num_encoder_layers + num_decoder_layers)
    enc = [_init_encoder_layer(keys[i], d_model, dim_ff)
           for i in range(num_encoder_layers)]
    dec = [_init_decoder_layer(keys[num_encoder_layers + j], d_model, dim_ff)
           for j in range(num_decoder_layers)]
    return {"pe": sinusoidal_pe(max_len, d_model),
            "enc_layers": enc, "dec_layers": dec}


# --------------------------------- main ---------------------------------------

if __name__ == "__main__":
    B, S, D, NHEAD = 2, 8, 32, 8          # small shapes; D % NHEAD == 0
    key = jax.random.PRNGKey(0)
    k_param, k_input = jax.random.split(key)

    params = init_params(k_param, D, num_encoder_layers=2, num_decoder_layers=2,
                         dim_ff=2048, max_len=64)
    src = jax.random.normal(k_input, (B, S, D), jnp.float32)

    fwd = jax.jit(functools.partial(encoder_decoder_transformer, nhead=NHEAD))
    out = jax.block_until_ready(fwd(src, params))
    assert out.shape == (B, S, D) and out.dtype == jnp.float32
    print("KERNEL_OK")
</pallas_src>

<mosaic_0001>
module attributes {stable_mosaic.version = 11 : i64} {
  func.func @_pe_add_kernel(%arg0: i32, %arg1: memref<1x8x32xf32, #tpu.memory_space<vmem>>, %arg2: memref<8x32xf32, #tpu.memory_space<vmem>>, %arg3: memref<1x8x32xf32, #tpu.memory_space<vmem>>) attributes {dimension_semantics = [#tpu.dimension_semantics<parallel>], iteration_bounds = array<i64: 2>, scalar_prefetch = 0 : i64, scratch_operands = 0 : i64, tpu.core_type = #tpu.core_type<tc>, window_params = [{transform_indices = @transform_0, window_bounds = array<i64: 1, 8, 32>}, {pipeline_mode = #tpu.pipeline_mode<synchronous>, transform_indices = @transform_1, window_bounds = array<i64: 8, 32>}, {transform_indices = @transform_2, window_bounds = array<i64: 1, 8, 32>}]} {
    %c0 = arith.constant 0 : index
    %c0_0 = arith.constant 0 : index
    %c0_1 = arith.constant 0 : index
    %0 = vector.load %arg1[%c0, %c0_0, %c0_1] : memref<1x8x32xf32, #tpu.memory_space<vmem>>, vector<1x8x32xf32>
    %1 = vector.shape_cast %0 : vector<1x8x32xf32> to vector<8x32xf32>
    %c0_2 = arith.constant 0 : index
    %c0_3 = arith.constant 0 : index
    %2 = vector.load %arg2[%c0_2, %c0_3] : memref<8x32xf32, #tpu.memory_space<vmem>>, vector<8x32xf32>
    %3 = arith.addf %1, %2 : vector<8x32xf32>
    %c0_4 = arith.constant 0 : index
    %c0_5 = arith.constant 0 : index
    %c0_6 = arith.constant 0 : index
    %4 = vector.load %arg3[%c0_4, %c0_5, %c0_6] : memref<1x8x32xf32, #tpu.memory_space<vmem>>, vector<1x8x32xf32>
    %5 = vector.shape_cast %4 : vector<1x8x32xf32> to vector<8x32xf32>
    %6 = vector.shape_cast %3 : vector<8x32xf32> to vector<1x8x32xf32>
    tpu.vector_store %arg3[%c0_4, %c0_5, %c0_6], %6 {strides = array<i32>} : memref<1x8x32xf32, #tpu.memory_space<vmem>>, vector<1x8x32xf32>,
    return
  }
  func.func @transform_0(%arg0: i32) -> (i32, i32, i32) {
    %c0_i32 = arith.constant 0 : i32
    %c0_i32_0 = arith.constant 0 : i32
    %c0_i32_1 = arith.constant 0 : i32
    return %arg0, %c0_i32, %c0_i32_0 : i32, i32, i32
  }
  func.func @transform_1(%arg0: i32) -> (i32, i32) {
    %c0_i32 = arith.constant 0 : i32
    %c0_i32_0 = arith.constant 0 : i32
    %c0_i32_1 = arith.constant 0 : i32
    return %c0_i32, %c0_i32_0 : i32, i32
  }
  func.func @transform_2(%arg0: i32) -> (i32, i32, i32) {
    %c0_i32 = arith.constant 0 : i32
    %c0_i32_0 = arith.constant 0 : i32
    %c0_i32_1 = arith.constant 0 : i32
    return %arg0, %c0_i32, %c0_i32_0 : i32, i32, i32
  }
}

module attributes {stable_mosaic.version = 11 : i64} {
  func.func @_ffn_block_kernel(%arg0: i32, %arg1: memref<16x32xf32, #tpu.memory_space<vmem>>, %arg2: memref<32x2048xbf16, #tpu.memory_space<vmem>>, %arg3: memref<1x2048xf32, #tpu.memory_space<vmem>>, %arg4: memref<2048x32xbf16, #tpu.memory_space<vmem>>, %arg5: memref<1x32xf32, #tpu.memory_space<vmem>>, %arg6: memref<1x32xf32, #tpu.memory_space<vmem>>, %arg7: memref<1x32xf32, #tpu.memory_space<vmem>>, %arg8: memref<16x32xf32, #tpu.memory_space<vmem>>) attributes {dimension_semantics = [#tpu.dimension_semantics<parallel>], iteration_bounds = array<i64: 1>, scalar_prefetch = 0 : i64, scratch_operands = 0 : i64, tpu.core_type = #tpu.core_type<tc>, window_params = [{transform_indices = @transform_0, window_bounds = array<i64: 16, 32>}, {pipeline_mode = #tpu.pipeline_mode<synchronous>, transform_indices = @transform_1, window_bounds = array<i64: 32, 2048>}, {pipeline_mode = #tpu.pipeline_mode<synchronous>, transform_indices = @transform_2, window_bounds = array<i64: 1, 2048>}, {pipeline_mode = #tpu.pipeline_mode<synchronous>, transform_indices = @transform_3, window_bounds = array<i64: 2048, 32>}, {pipeline_mode = #tpu.pipeline_mode<synchronous>, transform_indices = @transform_4, window_bounds = array<i64: 1, 32>}, {pipeline_mode = #tpu.pipeline_mode<synchronous>, transform_indices = @transform_5, window_bounds = array<i64: 1, 32>}, {pipeline_mode = #tpu.pipeline_mode<synchronous>, transform_indices = @transform_6, window_bounds = array<i64: 1, 32>}, {transform_indices = @transform_7, window_bounds = array<i64: 16, 32>}]} {
    %c0 = arith.constant 0 : index
    %c0_0 = arith.constant 0 : index
    %0 = vector.load %arg1[%c0, %c0_0] : memref<16x32xf32, #tpu.memory_space<vmem>>, vector<16x32xf32>
    %1 = arith.truncf %0 : vector<16x32xf32> to vector<16x32xbf16>
    %c0_1 = arith.constant 0 : index
    %c0_2 = arith.constant 0 : index
    %2 = vector.load %arg2[%c0_1, %c0_2] : memref<32x2048xbf16, #tpu.memory_space<vmem>>, vector<32x2048xbf16>
    %cst = arith.constant dense<0.000000e+00> : vector<16x2048xf32>
    %3 = tpu.matmul %1, %2, %cst {dimension_numbers = #tpu.dot_dimension_numbers<[1], [0], [0], [1], [0, 0, 1, 1], [], []>} : vector<16x32xbf16>, vector<32x2048xbf16>, vector<16x2048xf32> -> vector<16x2048xf32>
    %c0_3 = arith.constant 0 : index
    %c0_4 = arith.constant 0 : index
    %4 = vector.load %arg3[%c0_3, %c0_4] : memref<1x2048xf32, #tpu.memory_space<vmem>>, vector<1x2048xf32>
    %5 = vector.broadcast %4 : vector<1x2048xf32> to vector<16x2048xf32>
    %6 = arith.addf %3, %5 : vector<16x2048xf32>
    %cst_5 = arith.constant 0.000000e+00 : f32
    %7 = vector.broadcast %cst_5 : f32 to vector<16x2048xf32>
    %8 = arith.maximumf %6, %7 : vector<16x2048xf32>
    %9 = arith.truncf %8 : vector<16x2048xf32> to vector<16x2048xbf16>
    %c0_6 = arith.constant 0 : index
    %c0_7 = arith.constant 0 : index
    %10 = vector.load %arg4[%c0_6, %c0_7] : memref<2048x32xbf16, #tpu.memory_space<vmem>>, vector<2048x32xbf16>
    %cst_8 = arith.constant dense<0.000000e+00> : vector<16x32xf32>
    %11 = tpu.matmul %9, %10, %cst_8 {dimension_numbers = #tpu.dot_dimension_numbers<[1], [0], [0], [1], [0, 0, 1, 1], [], []>} : vector<16x2048xbf16>, vector<2048x32xbf16>, vector<16x32xf32> -> vector<16x32xf32>
    %c0_9 = arith.constant 0 : index
    %c0_10 = arith.constant 0 : index
    %12 = vector.load %arg5[%c0_9, %c0_10] : memref<1x32xf32, #tpu.memory_space<vmem>>, vector<1x32xf32>
    %13 = vector.broadcast %12 : vector<1x32xf32> to vector<16x32xf32>
    %14 = arith.addf %11, %13 : vector<16x32xf32>
    %15 = arith.addf %14, %0 : vector<16x32xf32>
    %cst_11 = arith.constant dense<0.000000e+00> : vector<16xf32>
    %16 = vector.multi_reduction <add>, %15, %cst_11 [1] : vector<16x32xf32> to vector<16xf32>
    %17 = vector.shape_cast %16 : vector<16xf32> to vector<16x1xf32>
    %cst_12 = arith.constant 3.200000e+01 : f32
    %18 = vector.broadcast %cst_12 : f32 to vector<16x1xf32>
    %19 = arith.divf %17, %18 : vector<16x1xf32>
    %20 = vector.broadcast %19 : vector<16x1xf32> to vector<16x32xf32>
    %21 = arith.subf %15, %20 : vector<16x32xf32>
    %22 = arith.mulf %21, %21 : vector<16x32xf32>
    %cst_13 = arith.constant dense<0.000000e+00> : vector<16xf32>
    %23 = vector.multi_reduction <add>, %22, %cst_13 [1] : vector<16x32xf32> to vector<16xf32>
    %24 = vector.shape_cast %23 : vector<16xf32> to vector<16x1xf32>
    %cst_14 = arith.constant 3.200000e+01 : f32
    %25 = vector.broadcast %cst_14 : f32 to vector<16x1xf32>
    %26 = arith.divf %24, %25 : vector<16x1xf32>
    %27 = vector.broadcast %19 : vector<16x1xf32> to vector<16x32xf32>
    %28 = arith.subf %15, %27 : vector<16x32xf32>
    %cst_15 = arith.constant 9.99999974E-6 : f32
    %29 = vector.broadcast %cst_15 : f32 to vector<16x1xf32>
    %30 = arith.addf %26, %29 : vector<16x1xf32>
    %31 = math.rsqrt %30 : vector<16x1xf32>
    %32 = vector.broadcast %31 : vector<16x1xf32> to vector<16x32xf32>
    %33 = arith.mulf %28, %32 : vector<16x32xf32>
    %c0_16 = arith.constant 0 : index
    %c0_17 = arith.constant 0 : index
    %34 = vector.load %arg6[%c0_16, %c0_17] : memref<1x32xf32, #tpu.memory_space<vmem>>, vector<1x32xf32>
    %35 = vector.broadcast %34 : vector<1x32xf32> to vector<16x32xf32>
    %36 = arith.mulf %33, %35 : vector<16x32xf32>
    %c0_18 = arith.constant 0 : index
    %c0_19 = arith.constant 0 : index
    %37 = vector.load %arg7[%c0_18, %c0_19] : memref<1x32xf32, #tpu.memory_space<vmem>>, vector<1x32xf32>
    %38 = vector.broadcast %37 : vector<1x32xf32> to vector<16x32xf32>
    %39 = arith.addf %36, %38 : vector<16x32xf32>
    %c0_20 = arith.constant 0 : index
    %c0_21 = arith.constant 0 : index
    %40 = vector.load %arg8[%c0_20, %c0_21] : memref<16x32xf32, #tpu.memory_space<vmem>>, vector<16x32xf32>
    tpu.vector_store %arg8[%c0_20, %c0_21], %39 {strides = array<i32>} : memref<16x32xf32, #tpu.memory_space<vmem>>, vector<16x32xf32>,
    return
  }
  func.func @transform_0(%arg0: i32) -> (i32, i32) {
    %c0_i32 = arith.constant 0 : i32
    %c0_i32_0 = arith.constant 0 : i32
    return %arg0, %c0_i32 : i32, i32
  }
  func.func @transform_1(%arg0: i32) -> (i32, i32) {
    %c0_i32 = arith.constant 0 : i32
    %c0_i32_0 = arith.constant 0 : i32
    %c0_i32_1 = arith.constant 0 : i32
    return %c0_i32, %c0_i32_0 : i32, i32
  }
  func.func @transform_2(%arg0: i32) -> (i32, i32) {
    %c0_i32 = arith.constant 0 : i32
    %c0_i32_0 = arith.constant 0 : i32
    %c0_i32_1 = arith.constant 0 : i32
    return %c0_i32, %c0_i32_0 : i32, i32
  }
  func.func @transform_3(%arg0: i32) -> (i32, i32) {
    %c0_i32 = arith.constant 0 : i32
    %c0_i32_0 = arith.constant 0 : i32
    %c0_i32_1 = arith.constant 0 : i32
    return %c0_i32, %c0_i32_0 : i32, i32
  }
  func.func @transform_4(%arg0: i32) -> (i32, i32) {
    %c0_i32 = arith.constant 0 : i32
    %c0_i32_0 = arith.constant 0 : i32
    %c0_i32_1 = arith.constant 0 : i32
    return %c0_i32, %c0_i32_0 : i32, i32
  }
  func.func @transform_5(%arg0: i32) -> (i32, i32) {
    %c0_i32 = arith.constant 0 : i32
    %c0_i32_0 = arith.constant 0 : i32
    %c0_i32_1 = arith.constant 0 : i32
    return %c0_i32, %c0_i32_0 : i32, i32
  }
  func.func @transform_6(%arg0: i32) -> (i32, i32) {
    %c0_i32 = arith.constant 0 : i32
    %c0_i32_0 = arith.constant 0 : i32
    %c0_i32_1 = arith.constant 0 : i32
    return %c0_i32, %c0_i32_0 : i32, i32
  }
  func.func @transform_7(%arg0: i32) -> (i32, i32) {
    %c0_i32 = arith.constant 0 : i32
    %c0_i32_0 = arith.constant 0 : i32
    return %arg0, %c0_i32 : i32, i32
  }
}

module attributes {stable_mosaic.version = 11 : i64} {
  func.func @_attn_block_kernel(%arg0: i32, %arg1: i32, %arg2: memref<1x8x32xf32, #tpu.memory_space<vmem>>, %arg3: memref<1x8x32xf32, #tpu.memory_space<vmem>>, %arg4: memref<32x32xbf16, #tpu.memory_space<vmem>>, %arg5: memref<1x32xf32, #tpu.memory_space<vmem>>, %arg6: memref<32x64xbf16, #tpu.memory_space<vmem>>, %arg7: memref<1x64xf32, #tpu.memory_space<vmem>>, %arg8: memref<32x32xbf16, #tpu.memory_space<vmem>>, %arg9: memref<1x32xf32, #tpu.memory_space<vmem>>, %arg10: memref<1x32xf32, #tpu.memory_space<vmem>>, %arg11: memref<1x32xf32, #tpu.memory_space<vmem>>, %arg12: memref<1x8x32xf32, #tpu.memory_space<vmem>>) attributes {dimension_semantics = [#tpu.dimension_semantics<parallel>, #tpu.dimension_semantics<parallel>], iteration_bounds = array<i64: 2, 1>, scalar_prefetch = 0 : i64, scratch_operands = 0 : i64, tpu.core_type = #tpu.core_type<tc>, window_params = [{transform_indices = @transform_0, window_bounds = array<i64: 1, 8, 32>}, {transform_indices = @transform_1, window_bounds = array<i64: 1, 8, 32>}, {pipeline_mode = #tpu.pipeline_mode<synchronous>, transform_indices = @transform_2, window_bounds = array<i64: 32, 32>}, {pipeline_mode = #tpu.pipeline_mode<synchronous>, transform_indices = @transform_3, window_bounds = array<i64: 1, 32>}, {pipeline_mode = #tpu.pipeline_mode<synchronous>, transform_indices = @transform_4, window_bounds = array<i64: 32, 64>}, {pipeline_mode = #tpu.pipeline_mode<synchronous>, transform_indices = @transform_5, window_bounds = array<i64: 1, 64>}, {pipeline_mode = #tpu.pipeline_mode<synchronous>, transform_indices = @transform_6, window_bounds = array<i64: 32, 32>}, {pipeline_mode = #tpu.pipeline_mode<synchronous>, transform_indices = @transform_7, window_bounds = array<i64: 1, 32>}, {pipeline_mode = #tpu.pipeline_mode<synchronous>, transform_indices = @transform_8, window_bounds = array<i64: 1, 32>}, {pipeline_mode = #tpu.pipeline_mode<synchronous>, transform_indices = @transform_9, window_bounds = array<i64: 1, 32>}, {transform_indices = @transform_10, window_bounds = array<i64: 1, 8, 32>}]} {
    %c0 = arith.constant 0 : index
    %c0_0 = arith.constant 0 : index
    %c0_1 = arith.constant 0 : index
    %0 = vector.load %arg2[%c0, %c0_0, %c0_1] : memref<1x8x32xf32, #tpu.memory_space<vmem>>, vector<1x8x32xf32>
    %1 = vector.shape_cast %0 : vector<1x8x32xf32> to vector<8x32xf32>
    %c0_2 = arith.constant 0 : index
    %c0_3 = arith.constant 0 : index
    %c0_4 = arith.constant 0 : index
    %2 = vector.load %arg3[%c0_2, %c0_3, %c0_4] : memref<1x8x32xf32, #tpu.memory_space<vmem>>, vector<1x8x32xf32>
    %3 = vector.shape_cast %2 : vector<1x8x32xf32> to vector<8x32xf32>
    %4 = arith.truncf %1 : vector<8x32xf32> to vector<8x32xbf16>
    %5 = arith.truncf %3 : vector<8x32xf32> to vector<8x32xbf16>
    %c0_5 = arith.constant 0 : index
    %c0_6 = arith.constant 0 : index
    %6 = vector.load %arg4[%c0_5, %c0_6] : memref<32x32xbf16, #tpu.memory_space<vmem>>, vector<32x32xbf16>
    %cst = arith.constant dense<0.000000e+00> : vector<8x32xf32>
    %7 = tpu.matmul %4, %6, %cst {dimension_numbers = #tpu.dot_dimension_numbers<[1], [0], [0], [1], [0, 0, 1, 1], [], []>} : vector<8x32xbf16>, vector<32x32xbf16>, vector<8x32xf32> -> vector<8x32xf32>
    %c0_7 = arith.constant 0 : index
    %c0_8 = arith.constant 0 : index
    %8 = vector.load %arg5[%c0_7, %c0_8] : memref<1x32xf32, #tpu.memory_space<vmem>>, vector<1x32xf32>
    %9 = vector.broadcast %8 : vector<1x32xf32> to vector<8x32xf32>
    %10 = arith.addf %7, %9 : vector<8x32xf32>
    %c0_9 = arith.constant 0 : index
    %c0_10 = arith.constant 0 : index
    %11 = vector.load %arg6[%c0_9, %c0_10] : memref<32x64xbf16, #tpu.memory_space<vmem>>, vector<32x64xbf16>
    %cst_11 = arith.constant dense<0.000000e+00> : vector<8x64xf32>
    %12 = tpu.matmul %5, %11, %cst_11 {dimension_numbers = #tpu.dot_dimension_numbers<[1], [0], [0], [1], [0, 0, 1, 1], [], []>} : vector<8x32xbf16>, vector<32x64xbf16>, vector<8x64xf32> -> vector<8x64xf32>
    %c0_12 = arith.constant 0 : index
    %c0_13 = arith.constant 0 : index
    %13 = vector.load %arg7[%c0_12, %c0_13] : memref<1x64xf32, #tpu.memory_space<vmem>>, vector<1x64xf32>
    %14 = vector.broadcast %13 : vector<1x64xf32> to vector<8x64xf32>
    %15 = arith.addf %12, %14 : vector<8x64xf32>
    %16 = vector.extract_strided_slice %15 {offsets = [0, 0], sizes = [8, 32], strides = [1, 1]} : vector<8x64xf32> to vector<8x32xf32>
    %17 = vector.extract_strided_slice %15 {offsets = [0, 32], sizes = [8, 32], strides = [1, 1]} : vector<8x64xf32> to vector<8x32xf32>
    %cst_14 = arith.constant 5.000000e-01 : f32
    %18 = vector.broadcast %cst_14 : f32 to vector<8x32xf32>
    %19 = arith.mulf %10, %18 : vector<8x32xf32>
    %20 = arith.truncf %19 : vector<8x32xf32> to vector<8x32xbf16>
    %21 = arith.truncf %16 : vector<8x32xf32> to vector<8x32xbf16>
    %22 = arith.truncf %17 : vector<8x32xf32> to vector<8x32xbf16>
    %23 = vector.extract_strided_slice %20 {offsets = [0, 0], sizes = [8, 4], strides = [1, 1]} : vector<8x32xbf16> to vector<8x4xbf16>
    %24 = vector.extract_strided_slice %21 {offsets = [0, 0], sizes = [8, 4], strides = [1, 1]} : vector<8x32xbf16> to vector<8x4xbf16>
    %cst_15 = arith.constant dense<0.000000e+00> : vector<8x8xf32>
    %25 = tpu.matmul %23, %24, %cst_15 {dimension_numbers = #tpu.dot_dimension_numbers<[1], [1], [0], [0], [0, 0, 1, 0], [], []>} : vector<8x4xbf16>, vector<8x4xbf16>, vector<8x8xf32> -> vector<8x8xf32>
    %cst_16 = arith.constant dense<0xFF800000> : vector<8xf32>
    %26 = vector.multi_reduction <maximumf>, %25, %cst_16 [1] : vector<8x8xf32> to vector<8xf32>
    %27 = vector.shape_cast %26 : vector<8xf32> to vector<8x1xf32>
    %28 = vector.broadcast %27 : vector<8x1xf32> to vector<8x8xf32>
    %29 = arith.subf %25, %28 : vector<8x8xf32>
    %30 = math.exp %29 : vector<8x8xf32>
    %cst_17 = arith.constant dense<0.000000e+00> : vector<8xf32>
    %31 = vector.multi_reduction <add>, %30, %cst_17 [1] : vector<8x8xf32> to vector<8xf32>
    %32 = vector.shape_cast %31 : vector<8xf32> to vector<8x1xf32>
    %33 = tpu.reciprocal %32 {approx = true} : vector<8x1xf32> -> vector<8x1xf32>
    %34 = vector.broadcast %33 : vector<8x1xf32> to vector<8x8xf32>
    %35 = arith.mulf %30, %34 : vector<8x8xf32>
    %36 = arith.truncf %35 : vector<8x8xf32> to vector<8x8xbf16>
    %37 = vector.extract_strided_slice %22 {offsets = [0, 0], sizes = [8, 4], strides = [1, 1]} : vector<8x32xbf16> to vector<8x4xbf16>
    %cst_18 = arith.constant dense<0.000000e+00> : vector<8x4xf32>
    %38 = tpu.matmul %36, %37, %cst_18 {dimension_numbers = #tpu.dot_dimension_numbers<[1], [0], [0], [1], [0, 0, 1, 1], [], []>} : vector<8x8xbf16>, vector<8x4xbf16>, vector<8x4xf32> -> vector<8x4xf32>
    %39 = vector.extract_strided_slice %20 {offsets = [0, 4], sizes = [8, 4], strides = [1, 1]} : vector<8x32xbf16> to vector<8x4xbf16>
    %40 = vector.extract_strided_slice %21 {offsets = [0, 4], sizes = [8, 4], strides = [1, 1]} : vector<8x32xbf16> to vector<8x4xbf16>
    %cst_19 = arith.constant dense<0.000000e+00> : vector<8x8xf32>
    %41 = tpu.matmul %39, %40, %cst_19 {dimension_numbers = #tpu.dot_dimension_numbers<[1], [1], [0], [0], [0, 0, 1, 0], [], []>} : vector<8x4xbf16>, vector<8x4xbf16>, vector<8x8xf32> -> vector<8x8xf32>
    %cst_20 = arith.constant dense<0xFF800000> : vector<8xf32>
    %42 = vector.multi_reduction <maximumf>, %41, %cst_20 [1] : vector<8x8xf32> to vector<8xf32>
    %43 = vector.shape_cast %42 : vector<8xf32> to vector<8x1xf32>
    %44 = vector.broadcast %43 : vector<8x1xf32> to vector<8x8xf32>
    %45 = arith.subf %41, %44 : vector<8x8xf32>
    %46 = math.exp %45 : vector<8x8xf32>
    %cst_21 = arith.constant dense<0.000000e+00> : vector<8xf32>
    %47 = vector.multi_reduction <add>, %46, %cst_21 [1] : vector<8x8xf32> to vector<8xf32>
    %48 = vector.shape_cast %47 : vector<8xf32> to vector<8x1xf32>
    %49 = tpu.reciprocal %48 {approx = true} : vector<8x1xf32> -> vector<8x1xf32>
    %50 = vector.broadcast %49 : vector<8x1xf32> to vector<8x8xf32>
    %51 = arith.mulf %46, %50 : vector<8x8xf32>
    %52 = arith.truncf %51 : vector<8x8xf32> to vector<8x8xbf16>
    %53 = vector.extract_strided_slice %22 {offsets = [0, 4], sizes = [8, 4], strides = [1, 1]} : vector<8x32xbf16> to vector<8x4xbf16>
    %cst_22 = arith.constant dense<0.000000e+00> : vector<8x4xf32>
    %54 = tpu.matmul %52, %53, %cst_22 {dimension_numbers = #tpu.dot_dimension_numbers<[1], [0], [0], [1], [0, 0, 1, 1], [], []>} : vector<8x8xbf16>, vector<8x4xbf16>, vector<8x4xf32> -> vector<8x4xf32>
    %55 = vector.extract_strided_slice %20 {offsets = [0, 8], sizes = [8, 4], strides = [1, 1]} : vector<8x32xbf16> to vector<8x4xbf16>
    %56 = vector.extract_strided_slice %21 {offsets = [0, 8], sizes = [8, 4], strides = [1, 1]} : vector<8x32xbf16> to vector<8x4xbf16>
    %cst_23 = arith.constant dense<0.000000e+00> : vector<8x8xf32>
    %57 = tpu.matmul %55, %56, %cst_23 {dimension_numbers = #tpu.dot_dimension_numbers<[1], [1], [0], [0], [0, 0, 1, 0], [], []>} : vector<8x4xbf16>, vector<8x4xbf16>, vector<8x8xf32> -> vector<8x8xf32>
    %cst_24 = arith.constant dense<0xFF800000> : vector<8xf32>
    %58 = vector.multi_reduction <maximumf>, %57, %cst_24 [1] : vector<8x8xf32> to vector<8xf32>
    %59 = vector.shape_cast %58 : vector<8xf32> to vector<8x1xf32>
    %60 = vector.broadcast %59 : vector<8x1xf32> to vector<8x8xf32>
    %61 = arith.subf %57, %60 : vector<8x8xf32>
    %62 = math.exp %61 : vector<8x8xf32>
    %cst_25 = arith.constant dense<0.000000e+00> : vector<8xf32>
    %63 = vector.multi_reduction <add>, %62, %cst_25 [1] : vector<8x8xf32> to vector<8xf32>
    %64 = vector.shape_cast %63 : vector<8xf32> to vector<8x1xf32>
    %65 = tpu.reciprocal %64 {approx = true} : vector<8x1xf32> -> vector<8x1xf32>
    %66 = vector.broadcast %65 : vector<8x1xf32> to vector<8x8xf32>
    %67 = arith.mulf %62, %66 : vector<8x8xf32>
    %68 = arith.truncf %67 : vector<8x8xf32> to vector<8x8xbf16>
    %69 = vector.extract_strided_slice %22 {offsets = [0, 8], sizes = [8, 4], strides = [1, 1]} : vector<8x32xbf16> to vector<8x4xbf16>
    %cst_26 = arith.constant dense<0.000000e+00> : vector<8x4xf32>
    %70 = tpu.matmul %68, %69, %cst_26 {dimension_numbers = #tpu.dot_dimension_numbers<[1], [0], [0], [1], [0, 0, 1, 1], [], []>} : vector<8x8xbf16>, vector<8x4xbf16>, vector<8x4xf32> -> vector<8x4xf32>
    %71 = vector.extract_strided_slice %20 {offsets = [0, 12], sizes = [8, 4], strides = [1, 1]} : vector<8x32xbf16> to vector<8x4xbf16>
    %72 = vector.extract_strided_slice %21 {offsets = [0, 12], sizes = [8, 4], strides = [1, 1]} : vector<8x32xbf16> to vector<8x4xbf16>
    %cst_27 = arith.constant dense<0.000000e+00> : vector<8x8xf32>
    %73 = tpu.matmul %71, %72, %cst_27 {dimension_numbers = #tpu.dot_dimension_numbers<[1], [1], [0], [0], [0, 0, 1, 0], [], []>} : vector<8x4xbf16>, vector<8x4xbf16>, vector<8x8xf32> -> vector<8x8xf32>
    %cst_28 = arith.constant dense<0xFF800000> : vector<8xf32>
    %74 = vector.multi_reduction <maximumf>, %73, %cst_28 [1] : vector<8x8xf32> to vector<8xf32>
    %75 = vector.shape_cast %74 : vector<8xf32> to vector<8x1xf32>
    %76 = vector.broadcast %75 : vector<8x1xf32> to vector<8x8xf32>
    %77 = arith.subf %73, %76 : vector<8x8xf32>
    %78 = math.exp %77 : vector<8x8xf32>
    %cst_29 = arith.constant dense<0.000000e+00> : vector<8xf32>
    %79 = vector.multi_reduction <add>, %78, %cst_29 [1] : vector<8x8xf32> to vector<8xf32>
    %80 = vector.shape_cast %79 : vector<8xf32> to vector<8x1xf32>
    %81 = tpu.reciprocal %80 {approx = true} : vector<8x1xf32> -> vector<8x1xf32>
    %82 = vector.broadcast %81 : vector<8x1xf32> to vector<8x8xf32>
    %83 = arith.mulf %78, %82 : vector<8x8xf32>
    %84 = arith.truncf %83 : vector<8x8xf32> to vector<8x8xbf16>
    %85 = vector.extract_strided_slice %22 {offsets = [0, 12], sizes = [8, 4], strides = [1, 1]} : vector<8x32xbf16> to vector<8x4xbf16>
    %cst_30 = arith.constant dense<0.000000e+00> : vector<8x4xf32>
    %86 = tpu.matmul %84, %85, %cst_30 {dimension_numbers = #tpu.dot_dimension_numbers<[1], [0], [0], [1], [0, 0, 1, 1], [], []>} : vector<8x8xbf16>, vector<8x4xbf16>, vector<8x4xf32> -> vector<8x4xf32>
    %87 = vector.extract_strided_slice %20 {offsets = [0, 16], sizes = [8, 4], strides = [1, 1]} : vector<8x32xbf16> to vector<8x4xbf16>
    %88 = vector.extract_strided_slice %21 {offsets = [0, 16], sizes = [8, 4], strides = [1, 1]} : vector<8x32xbf16> to vector<8x4xbf16>
    %cst_31 = arith.constant dense<0.000000e+00> : vector<8x8xf32>
    %89 = tpu.matmul %87, %88, %cst_31 {dimension_numbers = #tpu.dot_dimension_numbers<[1], [1], [0], [0], [0, 0, 1, 0], [], []>} : vector<8x4xbf16>, vector<8x4xbf16>, vector<8x8xf32> -> vector<8x8xf32>
    %cst_32 = arith.constant dense<0xFF800000> : vector<8xf32>
    %90 = vector.multi_reduction <maximumf>, %89, %cst_32 [1] : vector<8x8xf32> to vector<8xf32>
    %91 = vector.shape_cast %90 : vector<8xf32> to vector<8x1xf32>
    %92 = vector.broadcast %91 : vector<8x1xf32> to vector<8x8xf32>
    %93 = arith.subf %89, %92 : vector<8x8xf32>
    %94 = math.exp %93 : vector<8x8xf32>
    %cst_33 = arith.constant dense<0.000000e+00> : vector<8xf32>
    %95 = vector.multi_reduction <add>, %94, %cst_33 [1] : vector<8x8xf32> to vector<8xf32>
    %96 = vector.shape_cast %95 : vector<8xf32> to vector<8x1xf32>
    %97 = tpu.reciprocal %96 {approx = true} : vector<8x1xf32> -> vector<8x1xf32>
    %98 = vector.broadcast %97 : vector<8x1xf32> to vector<8x8xf32>
    %99 = arith.mulf %94, %98 : vector<8x8xf32>
    %100 = arith.truncf %99 : vector<8x8xf32> to vector<8x8xbf16>
    %101 = vector.extract_strided_slice %22 {offsets = [0, 16], sizes = [8, 4], strides = [1, 1]} : vector<8x32xbf16> to vector<8x4xbf16>
    %cst_34 = arith.constant dense<0.000000e+00> : vector<8x4xf32>
    %102 = tpu.matmul %100, %101, %cst_34 {dimension_numbers = #tpu.dot_dimension_numbers<[1], [0], [0], [1], [0, 0, 1, 1], [], []>} : vector<8x8xbf16>, vector<8x4xbf16>, vector<8x4xf32> -> vector<8x4xf32>
    %103 = vector.extract_strided_slice %20 {offsets = [0, 20], sizes = [8, 4], strides = [1, 1]} : vector<8x32xbf16> to vector<8x4xbf16>
    %104 = vector.extract_strided_slice %21 {offsets = [0, 20], sizes = [8, 4], strides = [1, 1]} : vector<8x32xbf16> to vector<8x4xbf16>
    %cst_35 = arith.constant dense<0.000000e+00> : vector<8x8xf32>
    %105 = tpu.matmul %103, %104, %cst_35 {dimension_numbers = #tpu.dot_dimension_numbers<[1], [1], [0], [0], [0, 0, 1, 0], [], []>} : vector<8x4xbf16>, vector<8x4xbf16>, vector<8x8xf32> -> vector<8x8xf32>
    %cst_36 = arith.constant dense<0xFF800000> : vector<8xf32>
    %106 = vector.multi_reduction <maximumf>, %105, %cst_36 [1] : vector<8x8xf32> to vector<8xf32>
    %107 = vector.shape_cast %106 : vector<8xf32> to vector<8x1xf32>
    %108 = vector.broadcast %107 : vector<8x1xf32> to vector<8x8xf32>
    %109 = arith.subf %105, %108 : vector<8x8xf32>
    %110 = math.exp %109 : vector<8x8xf32>
    %cst_37 = arith.constant dense<0.000000e+00> : vector<8xf32>
    %111 = vector.multi_reduction <add>, %110, %cst_37 [1] : vector<8x8xf32> to vector<8xf32>
    %112 = vector.shape_cast %111 : vector<8xf32> to vector<8x1xf32>
    %113 = tpu.reciprocal %112 {approx = true} : vector<8x1xf32> -> vector<8x1xf32>
    %114 = vector.broadcast %113 : vector<8x1xf32> to vector<8x8xf32>
    %115 = arith.mulf %110, %114 : vector<8x8xf32>
    %116 = arith.truncf %115 : vector<8x8xf32> to vector<8x8xbf16>
    %117 = vector.extract_strided_slice %22 {offsets = [0, 20], sizes = [8, 4], strides = [1, 1]} : vector<8x32xbf16> to vector<8x4xbf16>
    %cst_38 = arith.constant dense<0.000000e+00> : vector<8x4xf32>
    %118 = tpu.matmul %116, %117, %cst_38 {dimension_numbers = #tpu.dot_dimension_numbers<[1], [0], [0], [1], [0, 0, 1, 1], [], []>} : vector<8x8xbf16>, vector<8x4xbf16>, vector<8x4xf32> -> vector<8x4xf32>
    %119 = vector.extract_strided_slice %20 {offsets = [0, 24], sizes = [8, 4], strides = [1, 1]} : vector<8x32xbf16> to vector<8x4xbf16>
    %120 = vector.extract_strided_slice %21 {offsets = [0, 24], sizes = [8, 4], strides = [1, 1]} : vector<8x32xbf16> to vector<8x4xbf16>
    %cst_39 = arith.constant dense<0.000000e+00> : vector<8x8xf32>
    %121 = tpu.matmul %119, %120, %cst_39 {dimension_numbers = #tpu.dot_dimension_numbers<[1], [1], [0], [0], [0, 0, 1, 0], [], []>} : vector<8x4xbf16>, vector<8x4xbf16>, vector<8x8xf32> -> vector<8x8xf32>
    %cst_40 = arith.constant dense<0xFF800000> : vector<8xf32>
    %122 = vector.multi_reduction <maximumf>, %121, %cst_40 [1] : vector<8x8xf32> to vector<8xf32>
    %123 = vector.shape_cast %122 : vector<8xf32> to vector<8x1xf32>
    %124 = vector.broadcast %123 : vector<8x1xf32> to vector<8x8xf32>
    %125 = arith.subf %121, %124 : vector<8x8xf32>
    %126 = math.exp %125 : vector<8x8xf32>
    %cst_41 = arith.constant dense<0.000000e+00> : vector<8xf32>
    %127 = vector.multi_reduction <add>, %126, %cst_41 [1] : vector<8x8xf32> to vector<8xf32>
    %128 = vector.shape_cast %127 : vector<8xf32> to vector<8x1xf32>
    %129 = tpu.reciprocal %128 {approx = true} : vector<8x1xf32> -> vector<8x1xf32>
    %130 = vector.broadcast %129 : vector<8x1xf32> to vector<8x8xf32>
    %131 = arith.mulf %126, %130 : vector<8x8xf32>
    %132 = arith.truncf %131 : vector<8x8xf32> to vector<8x8xbf16>
    %133 = vector.extract_strided_slice %22 {offsets = [0, 24], sizes = [8, 4], strides = [1, 1]} : vector<8x32xbf16> to vector<8x4xbf16>
    %cst_42 = arith.constant dense<0.000000e+00> : vector<8x4xf32>
    %134 = tpu.matmul %132, %133, %cst_42 {dimension_numbers = #tpu.dot_dimension_numbers<[1], [0], [0], [1], [0, 0, 1, 1], [], []>} : vector<8x8xbf16>, vector<8x4xbf16>, vector<8x4xf32> -> vector<8x4xf32>
    %135 = vector.extract_strided_slice %20 {offsets = [0, 28], sizes = [8, 4], strides = [1, 1]} : vector<8x32xbf16> to vector<8x4xbf16>
    %136 = vector.extract_strided_slice %21 {offsets = [0, 28], sizes = [8, 4], strides = [1, 1]} : vector<8x32xbf16> to vector<8x4xbf16>
    %cst_43 = arith.constant dense<0.000000e+00> : vector<8x8xf32>
    %137 = tpu.matmul %135, %136, %cst_43 {dimension_numbers = #tpu.dot_dimension_numbers<[1], [1], [0], [0], [0, 0, 1, 0], [], []>} : vector<8x4xbf16>, vector<8x4xbf16>, vector<8x8xf32> -> vector<8x8xf32>
    %cst_44 = arith.constant dense<0xFF800000> : vector<8xf32>
    %138 = vector.multi_reduction <maximumf>, %137, %cst_44 [1] : vector<8x8xf32> to vector<8xf32>
    %139 = vector.shape_cast %138 : vector<8xf32> to vector<8x1xf32>
    %140 = vector.broadcast %139 : vector<8x1xf32> to vector<8x8xf32>
    %141 = arith.subf %137, %140 : vector<8x8xf32>
    %142 = math.exp %141 : vector<8x8xf32>
    %cst_45 = arith.constant dense<0.000000e+00> : vector<8xf32>
    %143 = vector.multi_reduction <add>, %142, %cst_45 [1] : vector<8x8xf32> to vector<8xf32>
    %144 = vector.shape_cast %143 : vector<8xf32> to vector<8x1xf32>
    %145 = tpu.reciprocal %144 {approx = true} : vector<8x1xf32> -> vector<8x1xf32>
    %146 = vector.broadcast %145 : vector<8x1xf32> to vector<8x8xf32>
    %147 = arith.mulf %142, %146 : vector<8x8xf32>
    %148 = arith.truncf %147 : vector<8x8xf32> to vector<8x8xbf16>
    %149 = vector.extract_strided_slice %22 {offsets = [0, 28], sizes = [8, 4], strides = [1, 1]} : vector<8x32xbf16> to vector<8x4xbf16>
    %cst_46 = arith.constant dense<0.000000e+00> : vector<8x4xf32>
    %150 = tpu.matmul %148, %149, %cst_46 {dimension_numbers = #tpu.dot_dimension_numbers<[1], [0], [0], [1], [0, 0, 1, 1], [], []>} : vector<8x8xbf16>, vector<8x4xbf16>, vector<8x4xf32> -> vector<8x4xf32>
    %151 = tpu.concatenate %38, %54, %70, %86, %102, %118, %134, %150 in 1 : vector<8x4xf32>, vector<8x4xf32>, vector<8x4xf32>, vector<8x4xf32>, vector<8x4xf32>, vector<8x4xf32>, vector<8x4xf32>, vector<8x4xf32> -> vector<8x32xf32>
    %152 = arith.truncf %151 : vector<8x32xf32> to vector<8x32xbf16>
    %c0_47 = arith.constant 0 : index
    %c0_48 = arith.constant 0 : index
    %153 = vector.load %arg8[%c0_47, %c0_48] : memref<32x32xbf16, #tpu.memory_space<vmem>>, vector<32x32xbf16>
    %cst_49 = arith.constant dense<0.000000e+00> : vector<8x32xf32>
    %154 = tpu.matmul %152, %153, %cst_49 {dimension_numbers = #tpu.dot_dimension_numbers<[1], [0], [0], [1], [0, 0, 1, 1], [], []>} : vector<8x32xbf16>, vector<32x32xbf16>, vector<8x32xf32> -> vector<8x32xf32>
    %c0_50 = arith.constant 0 : index
    %c0_51 = arith.constant 0 : index
    %155 = vector.load %arg9[%c0_50, %c0_51] : memref<1x32xf32, #tpu.memory_space<vmem>>, vector<1x32xf32>
    %156 = vector.broadcast %155 : vector<1x32xf32> to vector<8x32xf32>
    %157 = arith.addf %154, %156 : vector<8x32xf32>
    %158 = arith.addf %157, %1 : vector<8x32xf32>
    %cst_52 = arith.constant dense<0.000000e+00> : vector<8xf32>
    %159 = vector.multi_reduction <add>, %158, %cst_52 [1] : vector<8x32xf32> to vector<8xf32>
    %160 = vector.shape_cast %159 : vector<8xf32> to vector<8x1xf32>
    %cst_53 = arith.constant 3.200000e+01 : f32
    %161 = vector.broadcast %cst_53 : f32 to vector<8x1xf32>
    %162 = arith.divf %160, %161 : vector<8x1xf32>
    %163 = vector.broadcast %162 : vector<8x1xf32> to vector<8x32xf32>
    %164 = arith.subf %158, %163 : vector<8x32xf32>
    %165 = arith.mulf %164, %164 : vector<8x32xf32>
    %cst_54 = arith.constant dense<0.000000e+00> : vector<8xf32>
    %166 = vector.multi_reduction <add>, %165, %cst_54 [1] : vector<8x32xf32> to vector<8xf32>
    %167 = vector.shape_cast %166 : vector<8xf32> to vector<8x1xf32>
    %cst_55 = arith.constant 3.200000e+01 : f32
    %168 = vector.broadcast %cst_55 : f32 to vector<8x1xf32>
    %169 = arith.divf %167, %168 : vector<8x1xf32>
    %170 = vector.broadcast %162 : vector<8x1xf32> to vector<8x32xf32>
    %171 = arith.subf %158, %170 : vector<8x32xf32>
    %cst_56 = arith.constant 9.99999974E-6 : f32
    %172 = vector.broadcast %cst_56 : f32 to vector<8x1xf32>
    %173 = arith.addf %169, %172 : vector<8x1xf32>
    %174 = math.rsqrt %173 : vector<8x1xf32>
    %175 = vector.broadcast %174 : vector<8x1xf32> to vector<8x32xf32>
    %176 = arith.mulf %171, %175 : vector<8x32xf32>
    %c0_57 = arith.constant 0 : index
    %c0_58 = arith.constant 0 : index
    %177 = vector.load %arg10[%c0_57, %c0_58] : memref<1x32xf32, #tpu.memory_space<vmem>>, vector<1x32xf32>
    %178 = vector.broadcast %177 : vector<1x32xf32> to vector<8x32xf32>
    %179 = arith.mulf %176, %178 : vector<8x32xf32>
    %c0_59 = arith.constant 0 : index
    %c0_60 = arith.constant 0 : index
    %180 = vector.load %arg11[%c0_59, %c0_60] : memref<1x32xf32, #tpu.memory_space<vmem>>, vector<1x32xf32>
    %181 = vector.broadcast %180 : vector<1x32xf32> to vector<8x32xf32>
    %182 = arith.addf %179, %181 : vector<8x32xf32>
    %c0_61 = arith.constant 0 : index
    %c0_62 = arith.constant 0 : index
    %c0_63 = arith.constant 0 : index
    %183 = vector.load %arg12[%c0_61, %c0_62, %c0_63] : memref<1x8x32xf32, #tpu.memory_space<vmem>>, vector<1x8x32xf32>
    %184 = vector.shape_cast %183 : vector<1x8x32xf32> to vector<8x32xf32>
    %185 = vector.shape_cast %182 : vector<8x32xf32> to vector<1x8x32xf32>
    tpu.vector_store %arg12[%c0_61, %c0_62, %c0_63], %185 {strides = array<i32>} : memref<1x8x32xf32, #tpu.memory_space<vmem>>, vector<1x8x32xf32>,
    return
  }
  func.func @transform_0(%arg0: i32, %arg1: i32) -> (i32, i32, i32) {
    %c0_i32 = arith.constant 0 : i32
    %c0_i32_0 = arith.constant 0 : i32
    return %arg0, %arg1, %c0_i32 : i32, i32, i32
  }
  func.func @transform_1(%arg0: i32, %arg1: i32) -> (i32, i32, i32) {
    %c0_i32 = arith.constant 0 : i32
    %c0_i32_0 = arith.constant 0 : i32
    %c0_i32_1 = arith.constant 0 : i32
    return %arg0, %c0_i32, %c0_i32_0 : i32, i32, i32
  }
  func.func @transform_2(%arg0: i32, %arg1: i32) -> (i32, i32) {
    %c0_i32 = arith.constant 0 : i32
    %c0_i32_0 = arith.constant 0 : i32
    %c0_i32_1 = arith.constant 0 : i32
    return %c0_i32, %c0_i32_0 : i32, i32
  }
  func.func @transform_3(%arg0: i32, %arg1: i32) -> (i32, i32) {
    %c0_i32 = arith.constant 0 : i32
    %c0_i32_0 = arith.constant 0 : i32
    %c0_i32_1 = arith.constant 0 : i32
    return %c0_i32, %c0_i32_0 : i32, i32
  }
  func.func @transform_4(%arg0: i32, %arg1: i32) -> (i32, i32) {
    %c0_i32 = arith.constant 0 : i32
    %c0_i32_0 = arith.constant 0 : i32
    %c0_i32_1 = arith.constant 0 : i32
    return %c0_i32, %c0_i32_0 : i32, i32
  }
  func.func @transform_5(%arg0: i32, %arg1: i32) -> (i32, i32) {
    %c0_i32 = arith.constant 0 : i32
    %c0_i32_0 = arith.constant 0 : i32
    %c0_i32_1 = arith.constant 0 : i32
    return %c0_i32, %c0_i32_0 : i32, i32
  }
  func.func @transform_6(%arg0: i32, %arg1: i32) -> (i32, i32) {
    %c0_i32 = arith.constant 0 : i32
    %c0_i32_0 = arith.constant 0 : i32
    %c0_i32_1 = arith.constant 0 : i32
    return %c0_i32, %c0_i32_0 : i32, i32
  }
  func.func @transform_7(%arg0: i32, %arg1: i32) -> (i32, i32) {
    %c0_i32 = arith.constant 0 : i32
    %c0_i32_0 = arith.constant 0 : i32
    %c0_i32_1 = arith.constant 0 : i32
    return %c0_i32, %c0_i32_0 : i32, i32
  }
  func.func @transform_8(%arg0: i32, %arg1: i32) -> (i32, i32) {
    %c0_i32 = arith.constant 0 : i32
    %c0_i32_0 = arith.constant 0 : i32
    %c0_i32_1 = arith.constant 0 : i32
    return %c0_i32, %c0_i32_0 : i32, i32
  }
  func.func @transform_9(%arg0: i32, %arg1: i32) -> (i32, i32) {
    %c0_i32 = arith.constant 0 : i32
    %c0_i32_0 = arith.constant 0 : i32
    %c0_i32_1 = arith.constant 0 : i32
    return %c0_i32, %c0_i32_0 : i32, i32
  }
  func.func @transform_10(%arg0: i32, %arg1: i32) -> (i32, i32, i32) {
    %c0_i32 = arith.constant 0 : i32
    %c0_i32_0 = arith.constant 0 : i32
    return %arg0, %arg1, %c0_i32 : i32, i32, i32
  }
}

module attributes {stable_mosaic.version = 11 : i64} {
  func.func @_ffn_block_kernel(%arg0: i32, %arg1: memref<16x32xf32, #tpu.memory_space<vmem>>, %arg2: memref<32x2048xbf16, #tpu.memory_space<vmem>>, %arg3: memref<1x2048xf32, #tpu.memory_space<vmem>>, %arg4: memref<2048x32xbf16, #tpu.memory_space<vmem>>, %arg5: memref<1x32xf32, #tpu.memory_space<vmem>>, %arg6: memref<1x32xf32, #tpu.memory_space<vmem>>, %arg7: memref<1x32xf32, #tpu.memory_space<vmem>>, %arg8: memref<16x32xf32, #tpu.memory_space<vmem>>) attributes {dimension_semantics = [#tpu.dimension_semantics<parallel>], iteration_bounds = array<i64: 1>, scalar_prefetch = 0 : i64, scratch_operands = 0 : i64, tpu.core_type = #tpu.core_type<tc>, window_params = [{transform_indices = @transform_0, window_bounds = array<i64: 16, 32>}, {pipeline_mode = #tpu.pipeline_mode<synchronous>, transform_indices = @transform_1, window_bounds = array<i64: 32, 2048>}, {pipeline_mode = #tpu.pipeline_mode<synchronous>, transform_indices = @transform_2, window_bounds = array<i64: 1, 2048>}, {pipeline_mode = #tpu.pipeline_mode<synchronous>, transform_indices = @transform_3, window_bounds = array<i64: 2048, 32>}, {pipeline_mode = #tpu.pipeline_mode<synchronous>, transform_indices = @transform_4, window_bounds = array<i64: 1, 32>}, {pipeline_mode = #tpu.pipeline_mode<synchronous>, transform_indices = @transform_5, window_bounds = array<i64: 1, 32>}, {pipeline_mode = #tpu.pipeline_mode<synchronous>, transform_indices = @transform_6, window_bounds = array<i64: 1, 32>}, {transform_indices = @transform_7, window_bounds = array<i64: 16, 32>}]} {
    %c0 = arith.constant 0 : index
    %c0_0 = arith.constant 0 : index
    %0 = vector.load %arg1[%c0, %c0_0] : memref<16x32xf32, #tpu.memory_space<vmem>>, vector<16x32xf32>
    %1 = arith.truncf %0 : vector<16x32xf32> to vector<16x32xbf16>
    %c0_1 = arith.constant 0 : index
    %c0_2 = arith.constant 0 : index
    %2 = vector.load %arg2[%c0_1, %c0_2] : memref<32x2048xbf16, #tpu.memory_space<vmem>>, vector<32x2048xbf16>
    %cst = arith.constant dense<0.000000e+00> : vector<16x2048xf32>
    %3 = tpu.matmul %1, %2, %cst {dimension_numbers = #tpu.dot_dimension_numbers<[1], [0], [0], [1], [0, 0, 1, 1], [], []>} : vector<16x32xbf16>, vector<32x2048xbf16>, vector<16x2048xf32> -> vector<16x2048xf32>
    %c0_3 = arith.constant 0 : index
    %c0_4 = arith.constant 0 : index
    %4 = vector.load %arg3[%c0_3, %c0_4] : memref<1x2048xf32, #tpu.memory_space<vmem>>, vector<1x2048xf32>
    %5 = vector.broadcast %4 : vector<1x2048xf32> to vector<16x2048xf32>
    %6 = arith.addf %3, %5 : vector<16x2048xf32>
    %cst_5 = arith.constant 0.000000e+00 : f32
    %7 = vector.broadcast %cst_5 : f32 to vector<16x2048xf32>
    %8 = arith.maximumf %6, %7 : vector<16x2048xf32>
    %9 = arith.truncf %8 : vector<16x2048xf32> to vector<16x2048xbf16>
    %c0_6 = arith.constant 0 : index
    %c0_7 = arith.constant 0 : index
    %10 = vector.load %arg4[%c0_6, %c0_7] : memref<2048x32xbf16, #tpu.memory_space<vmem>>, vector<2048x32xbf16>
    %cst_8 = arith.constant dense<0.000000e+00> : vector<16x32xf32>
    %11 = tpu.matmul %9, %10, %cst_8 {dimension_numbers = #tpu.dot_dimension_numbers<[1], [0], [0], [1], [0, 0, 1, 1], [], []>} : vector<16x2048xbf16>, vector<2048x32xbf16>, vector<16x32xf32> -> vector<16x32xf32>
    %c0_9 = arith.constant 0 : index
    %c0_10 = arith.constant 0 : index
    %12 = vector.load %arg5[%c0_9, %c0_10] : memref<1x32xf32, #tpu.memory_space<vmem>>, vector<1x32xf32>
    %13 = vector.broadcast %12 : vector<1x32xf32> to vector<16x32xf32>
    %14 = arith.addf %11, %13 : vector<16x32xf32>
    %15 = arith.addf %14, %0 : vector<16x32xf32>
    %cst_11 = arith.constant dense<0.000000e+00> : vector<16xf32>
    %16 = vector.multi_reduction <add>, %15, %cst_11 [1] : vector<16x32xf32> to vector<16xf32>
    %17 = vector.shape_cast %16 : vector<16xf32> to vector<16x1xf32>
    %cst_12 = arith.constant 3.200000e+01 : f32
    %18 = vector.broadcast %cst_12 : f32 to vector<16x1xf32>
    %19 = arith.divf %17, %18 : vector<16x1xf32>
    %20 = vector.broadcast %19 : vector<16x1xf32> to vector<16x32xf32>
    %21 = arith.subf %15, %20 : vector<16x32xf32>
    %22 = arith.mulf %21, %21 : vector<16x32xf32>
    %cst_13 = arith.constant dense<0.000000e+00> : vector<16xf32>
    %23 = vector.multi_reduction <add>, %22, %cst_13 [1] : vector<16x32xf32> to vector<16xf32>
    %24 = vector.shape_cast %23 : vector<16xf32> to vector<16x1xf32>
    %cst_14 = arith.constant 3.200000e+01 : f32
    %25 = vector.broadcast %cst_14 : f32 to vector<16x1xf32>
    %26 = arith.divf %24, %25 : vector<16x1xf32>
    %27 = vector.broadcast %19 : vector<16x1xf32> to vector<16x32xf32>
    %28 = arith.subf %15, %27 : vector<16x32xf32>
    %cst_15 = arith.constant 9.99999974E-6 : f32
    %29 = vector.broadcast %cst_15 : f32 to vector<16x1xf32>
    %30 = arith.addf %26, %29 : vector<16x1xf32>
    %31 = math.rsqrt %30 : vector<16x1xf32>
    %32 = vector.broadcast %31 : vector<16x1xf32> to vector<16x32xf32>
    %33 = arith.mulf %28, %32 : vector<16x32xf32>
    %c0_16 = arith.constant 0 : index
    %c0_17 = arith.constant 0 : index
    %34 = vector.load %arg6[%c0_16, %c0_17] : memref<1x32xf32, #tpu.memory_space<vmem>>, vector<1x32xf32>
    %35 = vector.broadcast %34 : vector<1x32xf32> to vector<16x32xf32>
    %36 = arith.mulf %33, %35 : vector<16x32xf32>
    %c0_18 = arith.constant 0 : index
    %c0_19 = arith.constant 0 : index
    %37 = vector.load %arg7[%c0_18, %c0_19] : memref<1x32xf32, #tpu.memory_space<vmem>>, vector<1x32xf32>
    %38 = vector.broadcast %37 : vector<1x32xf32> to vector<16x32xf32>
    %39 = arith.addf %36, %38 : vector<16x32xf32>
    %c0_20 = arith.constant 0 : index
    %c0_21 = arith.constant 0 : index
    %40 = vector.load %arg8[%c0_20, %c0_21] : memref<16x32xf32, #tpu.memory_space<vmem>>, vector<16x32xf32>
    tpu.vector_store %arg8[%c0_20, %c0_21], %39 {strides = array<i32>} : memref<16x32xf32, #tpu.memory_space<vmem>>, vector<16x32xf32>,
    return
  }
  func.func @transform_0(%arg0: i32) -> (i32, i32) {
    %c0_i32 = arith.constant 0 : i32
    %c0_i32_0 = arith.constant 0 : i32
    return %arg0, %c0_i32 : i32, i32
  }
  func.func @transform_1(%arg0: i32) -> (i32, i32) {
    %c0_i32 = arith.constant 0 : i32
    %c0_i32_0 = arith.constant 0 : i32
    %c0_i32_1 = arith.constant 0 : i32
    return %c0_i32, %c0_i32_0 : i32, i32
  }
  func.func @transform_2(%arg0: i32) -> (i32, i32) {
    %c0_i32 = arith.constant 0 : i32
    %c0_i32_0 = arith.constant 0 : i32
    %c0_i32_1 = arith.constant 0 : i32
    return %c0_i32, %c0_i32_0 : i32, i32
  }
  func.func @transform_3(%arg0: i32) -> (i32, i32) {
    %c0_i32 = arith.constant 0 : i32
    %c0_i32_0 = arith.constant 0 : i32
    %c0_i32_1 = arith.constant 0 : i32
    return %c0_i32, %c0_i32_0 : i32, i32
  }
  func.func @transform_4(%arg0: i32) -> (i32, i32) {
    %c0_i32 = arith.constant 0 : i32
    %c0_i32_0 = arith.constant 0 : i32
    %c0_i32_1 = arith.constant 0 : i32
    return %c0_i32, %c0_i32_0 : i32, i32
  }
  func.func @transform_5(%arg0: i32) -> (i32, i32) {
    %c0_i32 = arith.constant 0 : i32
    %c0_i32_0 = arith.constant 0 : i32
    %c0_i32_1 = arith.constant 0 : i32
    return %c0_i32, %c0_i32_0 : i32, i32
  }
  func.func @transform_6(%arg0: i32) -> (i32, i32) {
    %c0_i32 = arith.constant 0 : i32
    %c0_i32_0 = arith.constant 0 : i32
    %c0_i32_1 = arith.constant 0 : i32
    return %c0_i32, %c0_i32_0 : i32, i32
  }
  func.func @transform_7(%arg0: i32) -> (i32, i32) {
    %c0_i32 = arith.constant 0 : i32
    %c0_i32_0 = arith.constant 0 : i32
    return %arg0, %c0_i32 : i32, i32
  }
}

</mosaic_0001>

<bundles_post_ra>
// kernel: encoder_decoder_transformer.16
= control target key start
LH: loop header
LB: loop body
LE: loop exit
PB: predicated region body
PF: predicated region fallthrough
CT: control target
= control target key end

     0   :  { %s218_s9 = smov 0   ;;  %s246_s0 = inlined_call_operand.vmem [shape: f32[2,8,32], index: 0, kind: input, shape index: {}]   ;;  %s247_s1 = inlined_call_operand.vmem [shape: f32[8,32], index: 1, kind: input, shape index: {}]   ;;  %s248_s2 = inlined_call_operand.vmem [shape: f32[2,8,32], index: 2, kind: output, shape index: {}]  }
   0x1 LB: > { %s197_s10 = sadd.s32 4294967295, %s220_s9   ;;  %p201_p0 = scmp.ge.s32.totalorder %s220_s9, 1  ;;  %s220_s9 = sphi %s218_s9, %s12_s9  }
   0x2   : > { %p111_p1 = scmp.lt.s32.totalorder %s220_s9, 3 }
   0x4   : > { %p112_p2 = pnand %p201_p0, %p111_p1 }
   0x5   : > { %p131_p3 = scmp.lt.s32.totalorder (!%p112_p2), %s197_s10, 1 }
   0x6   : > { %115 = sbr.rel (%p112_p2) target bundleno = 18 (0x12), region = 28 }
   0xb   : > { %s250_s10 = smov (!%p131_p3, %s197_s10), 1  ;;  %v140_v0 = vld [vmem:[%s247_s1] sm:$0xff]  ;;  %vm142_vm0 = vcmask 261120  }
   0xc   : > { %s202_s11 = sshll.u32 %s250_s10, 3 }
   0xd   : > { %s134_s16 = scalar_lea.vmem %s246_s0, %s202_s11  ;;  %s138_s19 = scalar_lea.vmem %s248_s2, %s202_s11 }
   0xe   : > { %v139_v1 = vld [vmem:[%s134_s16] sm:$0xff] }
   0xf   : > { %v141_v2 = vadd.f32 %v140_v0, %v139_v1 }
  0x11   : > { %143 = vst.msk [vmem:[%s138_s19] sm:$0xff] %vm142_vm0, %v141_v2 }
  0x12 PF: > { %s12_s9 = sadd.s32 1, %s220_s9  }
  0x13   : > { %p9_p4 = scmp.ge.s32.totalorder %s12_s9, 4  }
  0x15   :  { %11 = sbr.rel (!%p9_p4) target bundleno = 1 (0x1), region = 58 }

// kernel: encoder_decoder_transformer.12
= control target key start
LH: loop header
LB: loop body
LE: loop exit
PB: predicated region body
PF: predicated region fallthrough
CT: control target
= control target key end

     0   :  { %s1390_s13 = smov 0   ;;  %s1392_s14 = smov 0   ;;  %s1570_s0 = inlined_call_operand.vmem [shape: f32[2,8,32], index: 0, kind: input, shape index: {}, may-alias: {0,1}]   ;;  %s1571_s1 = inlined_call_operand.vmem [shape: f32[2,8,32], index: 1, kind: input, shape index: {}, may-alias: {0,1}]   ;;  %s1572_s2 = inlined_call_operand.vmem [shape: bf16[32,32], index: 2, kind: input, shape index: {}]   ;;  %s1573_s3 = inlined_call_operand.vmem [shape: f32[1,32], index: 3, kind: input, shape index: {}]   ;;  %s1574_s4 = inlined_call_operand.vmem [shape: bf16[32,64], index: 4, kind: input, shape index: {}]   ;;  %s1575_s5 = inlined_call_operand.vmem [shape: f32[1,64], index: 5, kind: input, shape index: {}]   ;;  %s1576_s6 = inlined_call_operand.vmem [shape: bf16[32,32], index: 6, kind: input, shape index: {}]   ;;  %s1577_s7 = inlined_call_operand.vmem [shape: f32[1,32], index: 7, kind: input, shape index: {}]   ;;  %s1578_s8 = inlined_call_operand.vmem [shape: f32[1,32], index: 8, kind: input, shape index: {}]   ;;  %s1579_s9 = inlined_call_operand.vmem [shape: f32[1,32], index: 9, kind: input, shape index: {}]   ;;  %s1580_s10 = inlined_call_operand.vmem [shape: f32[2,8,32], index: 10, kind: output, shape index: {}]  }
   0x1   :  { %s1394_s15 = smov 0  }
   0x2 LB: > { %s32_s16 = sadd.s32 1, %s1306_s14  ;;  %p1145_p0 = scmp.ge.s32.totalorder %s1310_s15, 1  ;;  %s1310_s15 = sphi %s1394_s15, %s20_s15   ;;  %s1306_s14 = sphi %s1392_s14, %s1582_s14   ;;  %s1302_s13 = sphi %s1390_s13, %s1581_s13  }
   0x3   : > { %p34_p1 = scmp.ge.s32.totalorder %s32_s16, 2  ;;  %p339_p2 = scmp.lt.s32.totalorder %s1310_s15, 3 }
   0x5   : > { %s1584_s16 = smov (%p34_p1, %s32_s16), 0  ;;  %p340_p3 = pnand %p1145_p0, %p339_p2 }
   0x6   : > { %p385_p4 = scmp.lt.s32.totalorder (!%p340_p3), %s1302_s13, 1  ;;  %s1312_s19 = smov (!%p340_p3), 96  }
   0x7   : > { %343 = sbr.rel (%p340_p3) target bundleno = 1660 (0x67c), region = 60  ;;  %s1313_s20 = smov (!%p340_p3), 124  }
   0x8   : > { %s1314_s21 = smov (!%p340_p3), 120   ;;  %s1315_s22 = smov (!%p340_p3), 116  }
   0x9   : > { %s1316_s23 = smov (!%p340_p3), 112   ;;  %s1317_s24 = smov (!%p340_p3), 108  }
   0xa   : > { %s1318_s26 = smov (!%p340_p3), 100   ;;  %s1319_s27 = smov (!%p340_p3), 104  }
   0xb   : > { %s1321_s29 = smov (!%p340_p3), 84   ;;  %s1322_s30 = smov (!%p340_p3), 80  }
   0xc   : > { %v1195_v0 = vld [vmem:[%s1572_s2 + $0x8] sm:$0xff]  ;;  %v1194_v2 = vld [vmem:[%s1572_s2] sm:$0xff]  ;;  %s1586_s13 = smov (!%p385_p4, %s1302_s13), 1  ;;  %vm428_vm0 = vcmask 261120   ;;  %vm484_vm1 = vcmask 31744   ;;  %vm525_vm2 = vcmask 1043456  }
   0xd   : > { %v1197_v1 = vld [vmem:[%s1574_s4 + $0x8] sm:$0xff]  ;;  %438 = vmatpush.bf16.msra.mxu0 %v1195_v0  ;;  %v1196_v3 = vld [vmem:[%s1574_s4] sm:$0xff]  ;;  %s1420_s25 = sshll.u32 %s1586_s13, 3  ;;  %vm504_vm3 = vcmask 64512   ;;  %s1324_s12 = smov 76   ;;  %vm967_vm4 = vcmask 97280  }
   0xe   : > { %474 = vmatpush.bf16.msra.mxu1 %v1197_v1  ;;  %s391_s28 = scalar_lea.vmem %s1570_s0, %s1420_s25  ;;  %s395_s11 = scalar_lea.vmem %s1571_s1, %s1420_s25  ;;  %v1247_v8 = vld [vmem:[%s1573_s3] ss:$0 sm:$0xff]  ;;  %vm969_vm5 = vcmask 130048   ;;  %vm971_vm6 = vcmask 162816   ;;  %vm973_vm7 = vcmask 195584   ;;  %vm975_vm8 = vcmask 228352  }
   0xf   : > { %v1426_v4 = vld [vmem:[%s391_s28] sm:$0xff]  ;;  %s1320_s28 = smov 92   ;;  %s1325_s13 = smov 68  }
  0x10   : > { %v406_v5 = vpack.c.bf16 %v1426_v4, %v1426_v4  ;;  %v405_v6 = vld [vmem:[%s395_s11] sm:$0xff]  ;;  %s1323_s11 = smov 88   ;;  %s1326_s17 = smov 72  }
  0x11   : > { %439 = vmatpush.bf16.msra.mxu0 %v1194_v2  ;;  %v407_v7 = vpack.c.bf16 %v405_v6, %v405_v6  ;;  %v1248_v9 = vld [vmem:[%s1575_s5] ss:$0 sm:$0xff]  ;;  %s1327_s18 = smov 8  }
  0x12   : > { %475 = vmatpush.bf16.msra.mxu1 %v1196_v3 }
  0x14   : > { %1157 = vmatmul.msk.bf16.vlgmr.msra.gmra.mxu0 %vm428_vm0, %v406_v5 }
  0x15   : > { %1166 = vmatmul.msk.bf16.vlgmr.msra.gmra.mxu1 %vm428_vm0, %v407_v7 }
  0x91   : > { %v441_v10 = vpop.f32.mrf.mxu0 }
  0x92   : > { %v442_v11 = vadd.f32 %v1247_v8, %v441_v10  ;;  %v477_v12 = vpop.f32.mrf.mxu1 }
  0x93   : > { %v478_v13 = vadd.f32 %v1248_v9, %v477_v12 }
  0x94   : > { %v481_v14 = vmul.f32 0.5, %v442_v11 }
  0x95   : > { %v483_v15 = vpack.c.bf16 %v478_v13, %v478_v13 }
  0x96   : > { %v482_v16 = vpack.c.bf16 %v481_v14, %v481_v14 }
  0x97   : > { %v518_v17 = vunpack.c.l.b16 %v483_v15  ;;  %v489_v18 = vsel %vm484_vm1, %v483_v15, 0 }
  0x98   : > { %v543_v19 = vunpack.c.l.b16 %v482_v16  ;;  %498 = vmatpush.bf16.xpose.msra.mxu2 %v489_v18 }
  0x99   : > { %v1443_v20 = vpack.c.b16 %v518_v17, %v518_v17  ;;  %v443_v21 = vpop.f32.mrf.mxu0 }
  0x9a   : > { %v544_v22 = vpack.c.b16 %v543_v19, %v543_v19  ;;  %v479_v23 = vpop.f32.mrf.mxu1 }
  0x9b   : > { %520 = vrot.lane.b32.xlu1 %v1443_v20, %s1312_s19  ;;  %s1328_s19 = smov 16  }
  0x9c   : > { %545 = vrot.lane.b32.xlu2 %v544_v22, %s1313_s20 }
  0x9f   : > { %1167 = vmatmul.msk.bf16.vlgmr.msra.gmra.mxu2 %vm484_vm1, %v482_v16 }
  0xa3   : > { %547 = vrot.lane.b32.xlu1 %v1443_v20, %s1313_s20  ;;  %s1329_s20 = smov 4  }
  0xa4   : > { %603 = vrot.lane.b32.xlu2 %v1443_v20, %s1314_s21 }
  0xab   : > { %601 = vrot.lane.b32.xlu1 %v544_v22, %s1314_s21  ;;  %s1330_s21 = smov 12  }
  0xac   : > { %657 = vrot.lane.b32.xlu2 %v544_v22, %s1315_s22 }
  0xb3   : > { %715 = vrot.lane.b32.xlu1 %v1443_v20, %s1316_s23 }
  0xb4   : > { %771 = vrot.lane.b32.xlu2 %v1443_v20, %s1317_s24 }
  0xbb   : > { %713 = vrot.lane.b32.xlu1 %v544_v22, %s1316_s23  ;;  %s1332_s23 = smov 28  }
  0xbc   : > { %769 = vrot.lane.b32.xlu2 %v544_v22, %s1317_s24  ;;  %s1333_s24 = smov 24  }
  0xc3   : > { %883 = vrot.lane.b32.xlu1 %v1443_v20, %s1318_s26 }
  0xc4   : > { %825 = vrot.lane.b32.xlu2 %v544_v22, %s1319_s27 }
  0xf6   : > { %v1455_v24 = vpop.permute.xlu2 %545 }
  0xfe   : > { %v604_v25 = vpop.permute.xlu2 %603 }
  0xff   : > { %v609_v26 = vsel %vm484_vm1, %v604_v25, 0 }
 0x100   : > { %618 = vmatpush.bf16.xpose.msrb.mxu1 %v609_v26 }
 0x106   : > { %v658_v49 = vpop.permute.xlu2 %657 }
 0x10d   : > { %v521_v27 = vpop.permute.xlu1 %520 }
 0x10e   : > { %v527_v28 = vsel %vm525_vm2, %v521_v27, 0  ;;  %v772_v50 = vpop.permute.xlu2 %771 }
 0x10f   : > { %536 = vmatpush.bf16.msra.mxu3 %v527_v28  ;;  %v777_v1 = vsel %vm484_vm1, %v772_v50, 0 }
 0x115   : > { %v548_v29 = vpop.permute.xlu1 %547 }
 0x116   : > { %v553_v30 = vsel %vm484_vm1, %v548_v29, 0  ;;  %v770_v51 = vpop.permute.xlu2 %769 }
 0x117   : > { %562 = vmatpush.bf16.xpose.msrb.mxu3 %v553_v30 }
 0x11d   : > { %v602_v31 = vpop.permute.xlu1 %601 }
 0x11e   : > { %1171 = vmatmul.msk.bf16.vlgmr.msrb.gmra.mxu1 %vm484_vm1, %v602_v31  ;;  %v826_v52 = vpop.permute.xlu2 %825 }
 0x122   : > { %v500_v32 = vpop.f32.mrf.mxu2 }
 0x123   : > { %v505_v33 = vsel %vm504_vm3, %v500_v32, -inf }
 0x124   : > { %506 = vmax.xlane.f32.xlu0 %v505_v33 }
 0x125   : > { %v716_v34 = vpop.permute.xlu1 %715 }
 0x126   : > { %v721_v35 = vsel %vm484_vm1, %v716_v34, 0 }
 0x127   : > { %730 = vmatpush.bf16.xpose.msra.mxu1 %v721_v35 }
 0x12a   : > { %v502_v36 = vpop.f32.mrf.mxu2 }
 0x12d   : > { %v714_v37 = vpop.permute.xlu1 %713 }
 0x12e   : > { %1175 = vmatmul.msk.bf16.vlgmr.msra.gmra.mxu1 %vm484_vm1, %v714_v37 }
 0x135   : > { %v884_v3 = vpop.permute.xlu1 %883 }
 0x136   : > { %v889_v5 = vsel %vm484_vm1, %v884_v3, 0 }
 0x197   : > { %v507_v38 = vpop.xlane.xlu0 %506 }
 0x198   : > { %v508_v39 = vsub.f32 %v500_v32, %v507_v38 }
 0x19a   : > { %v509_v40 = vmul.f32 1.442695, %v508_v39 }
 0x19b   : > { %v620_v41 = vpop.f32.mrf.mxu1 }
 0x19c   : > { %1252 = vpow2.f32 %v509_v40  ;;  %v624_v42 = vsel %vm504_vm3, %v620_v41, -inf }
 0x19d   : > { %625 = vmax.xlane.f32.xlu2 %v624_v42 }
 0x1a2   : > { %v1253_v43 = vpop.eup %1252 }
 0x1a3   : > { %v622_v44 = vpop.f32.mrf.mxu1  ;;  %v511_v45 = vsel %vm504_vm3, %v1253_v43, 0.0 }
 0x1a4   : > { %512 = vadd.xlane.f32.xlu0 %v511_v45 }
 0x1ab   : > { %v1466_v46 = vpop.f32.mrf.mxu1 }
 0x1ac   : > { %v736_v47 = vsel %vm504_vm3, %v1466_v46, -inf }
 0x1ad   : > { %737 = vmax.xlane.f32.xlu2 %v736_v47 }
 0x1b3   : > { %v734_v48 = vpop.f32.mrf.mxu1 }
 0x1b8   : > { %659 = vrot.lane.b32.xlu0 %v1443_v20, %s1315_s22  ;;  %s1331_s22 = smov 20  }
 0x1c0   : > { %827 = vrot.lane.b32.xlu0 %v1443_v20, %s1319_s27 }
 0x1c8   : > { %881 = vrot.lane.b32.xlu0 %v544_v22, %s1318_s26 }
 0x210   : > { %v626_v53 = vpop.xlane.xlu2 %625 }
 0x211   : > { %v627_v54 = vsub.f32 %v620_v41, %v626_v53 }
 0x213   : > { %v628_v55 = vmul.f32 1.442695, %v627_v54 }
 0x215   : > { %1254 = vpow2.f32 %v628_v55 }
 0x217   : > { %v513_v56 = vpop.xlane.xlu0 %512 }
 0x218   : > { %1256 = vrcp.f32 %v513_v56 }
 0x21b   : > { %v1475_v57 = vpop.eup %1254 }
 0x21c   : > { %v630_v58 = vsel %vm504_vm3, %v1475_v57, 0.0 }
 0x21d   : > { %631 = vadd.xlane.f32.xlu2 %v630_v58 }
 0x21e   : > { %v1257_v59 = vpop.eup %1256 }
 0x21f   : > { %v515_v60 = vmul.f32 %v1257_v59, %v1253_v43 }
 0x220   : > { %v738_v25 = vpop.xlane.xlu2 %737 }
 0x221   : > { %v516_v61 = vpack.c.bf16 %v515_v60, %v515_v60  ;;  %v739_v26 = vsub.f32 %v1466_v46, %v738_v25 }
 0x223   : > { %1168 = vmatmul.msk.bf16.vlgmr.msra.gmra.mxu3 %vm504_vm3, %v516_v61  ;;  %v740_v27 = vmul.f32 1.442695, %v739_v26 }
 0x225   : > { %1258 = vpow2.f32 %v740_v27 }
 0x22a   : > { %v660_v62 = vpop.permute.xlu0 %659 }
 0x22b   : > { %v665_v63 = vsel %vm484_vm1, %v660_v62, 0  ;;  %v1259_v28 = vpop.eup %1258 }
 0x22c   : > { %674 = vmatpush.bf16.xpose.msra.mxu3 %v665_v63  ;;  %v742_v29 = vsel %vm504_vm3, %v1259_v28, 0.0 }
 0x232   : > { %v828_v0 = vpop.permute.xlu0 %827 }
 0x233   : > { %v833_v2 = vsel %vm484_vm1, %v828_v0, 0  ;;  %1169 = vmatmul.msk.bf16.vlgmr.msrb.gmra.mxu3 %vm484_vm1, %v1455_v24 }
 0x234   : > { %786 = vmatpush.bf16.xpose.msrb.mxu3 %v777_v1  ;;  %842 = vmatpush.bf16.xpose.msrb.mxu1 %v833_v2 }
 0x23a   : > { %v882_v6 = vpop.permute.xlu0 %881 }
 0x23b   : > { %1179 = vmatmul.msk.bf16.vlgmr.msrb.gmra.mxu1 %vm484_vm1, %v826_v52 }
 0x243   : > { %1173 = vmatmul.msk.bf16.vlgmr.msra.gmra.mxu3 %vm484_vm1, %v658_v49 }
 0x244   : > { %898 = vmatpush.bf16.xpose.msra.mxu3 %v889_v5 }
 0x253   : > { %1177 = vmatmul.msk.bf16.vlgmr.msrb.gmra.mxu3 %vm484_vm1, %v770_v51 }
 0x263   : > { %1181 = vmatmul.msk.bf16.vlgmr.msra.gmra.mxu3 %vm484_vm1, %v882_v6 }
 0x290   : > { %v632_v46 = vpop.xlane.xlu2 %631 }
 0x2a6   : > { %v1490_v7 = vpop.f32.mrf.mxu3 }
 0x2ae   : > { %v540_v8 = vpop.f32.mrf.mxu3 }
 0x2b6   : > { %v564_v9 = vpop.f32.mrf.mxu3 }
 0x2b7   : > { %v568_v10 = vsel %vm504_vm3, %v564_v9, -inf }
 0x2b8   : > { %569 = vmax.xlane.f32.xlu1 %v568_v10  ;;  %v1493_v11 = vpop.f32.mrf.mxu1 }
 0x2b9   : > { %v848_v12 = vsel %vm504_vm3, %v1493_v11, -inf }
 0x2ba   : > { %849 = vmax.xlane.f32.xlu0 %v848_v12 }
 0x2be   : > { %v566_v13 = vpop.f32.mrf.mxu3 }
 0x2c0   : > { %v846_v14 = vpop.f32.mrf.mxu1 }
 0x2c6   : > { %v676_v15 = vpop.f32.mrf.mxu3 }
 0x2c7   : > { %v680_v16 = vsel %vm504_vm3, %v676_v15, -inf }
 0x2c8   : > { %681 = vmax.xlane.f32.xlu0 %v680_v16 }
 0x2ce   : > { %v678_v17 = vpop.f32.mrf.mxu3 }
 0x2d6   : > { %v788_v18 = vpop.f32.mrf.mxu3 }
 0x2d7   : > { %v792_v19 = vsel %vm504_vm3, %v788_v18, -inf }
 0x2d8   : > { %793 = vmax.xlane.f32.xlu1 %v792_v19 }
 0x2dc   : > { %580 = vrot.lane.b32.xlu0 %v1443_v20, %s1320_s28 }
 0x2de   : > { %v790_v21 = vpop.f32.mrf.mxu3 }
 0x2e6   : > { %v900_v22 = vpop.f32.mrf.mxu3 }
 0x2e7   : > { %v904_v23 = vsel %vm504_vm3, %v900_v22, -inf }
 0x2e8   : > { %905 = vmax.xlane.f32.xlu2 %v904_v23 }
 0x2ee   : > { %v902_v24 = vpop.f32.mrf.mxu3 }
 0x2f1   : > { %692 = vrot.lane.b32.xlu1 %v1443_v20, %s1321_s29 }
 0x2f9   : > { %748 = vrot.lane.b32.xlu1 %v1443_v20, %s1322_s30 }
 0x300   : > { %636 = vrot.lane.b32.xlu2 %v1443_v20, %s1323_s11 }
 0x306   : > { %743 = vadd.xlane.f32.xlu0 %v742_v29 }
 0x32b   : > { %v570_v30 = vpop.xlane.xlu1 %569 }
 0x32c   : > { %v571_v31 = vsub.f32 %v564_v9, %v570_v30 }
 0x32d   : > { %v850_v33 = vpop.xlane.xlu0 %849 }
 0x32e   : > { %v572_v32 = vmul.f32 1.442695, %v571_v31 }
 0x330   : > { %1260 = vpow2.f32 %v572_v32 }
 0x336   : > { %v1506_v34 = vpop.eup %1260 }
 0x337   : > { %v574_v35 = vsel %vm504_vm3, %v1506_v34, 0.0 }
 0x338   : > { %575 = vadd.xlane.f32.xlu1 %v574_v35 }
 0x33b   : > { %v682_v36 = vpop.xlane.xlu0 %681 }
 0x33c   : > { %v683_v37 = vsub.f32 %v676_v15, %v682_v36 }
 0x33e   : > { %v684_v38 = vmul.f32 1.442695, %v683_v37 }
 0x340   : > { %1262 = vpow2.f32 %v684_v38 }
 0x346   : > { %v1263_v39 = vpop.eup %1262 }
 0x347   : > { %v686_v40 = vsel %vm504_vm3, %v1263_v39, 0.0 }
 0x348   : > { %687 = vadd.xlane.f32.xlu1 %v686_v40 }
 0x34b   : > { %v794_v41 = vpop.xlane.xlu1 %793 }
 0x34c   : > { %v795_v42 = vsub.f32 %v788_v18, %v794_v41 }
 0x34e   : > { %v796_v43 = vmul.f32 1.442695, %v795_v42  ;;  %v581_v44 = vpop.permute.xlu0 %580 }
 0x34f   : > { %v586_v45 = vsel %vm525_vm2, %v581_v44, 0 }
 0x350   : > { %1264 = vpow2.f32 %v796_v43  ;;  %595 = vmatpush.bf16.msrb.mxu0 %v586_v45 }
 0x351   : > { %1266 = vrcp.f32 %v632_v46 }
 0x356   : > { %v1265_v47 = vpop.eup %1264 }
 0x357   : > { %v798_v48 = vsel %vm504_vm3, %v1265_v47, 0.0  ;;  %v1267_v52 = vpop.eup %1266 }
 0x358   : > { %799 = vadd.xlane.f32.xlu2 %v798_v48  ;;  %v634_v53 = vmul.f32 %v1267_v52, %v1475_v57  ;;  %v851_v57 = vsub.f32 %v1493_v11, %v850_v33 }
 0x35a   : > { %v635_v60 = vpack.c.bf16 %v634_v53, %v634_v53  ;;  %v852_v1 = vmul.f32 1.442695, %v851_v57 }
 0x35b   : > { %v906_v49 = vpop.xlane.xlu2 %905 }
 0x35c   : > { %v907_v50 = vsub.f32 %v900_v22, %v906_v49  ;;  %v1199_v49 = vld [vmem:[%s1576_s6 + $0x8] sm:$0xff] }
 0x35d   : > { %1007 = vmatpush.bf16.msra.mxu1 %v1199_v49 }
 0x35e   : > { %v908_v51 = vmul.f32 1.442695, %v907_v50  ;;  %v1198_v50 = vld [vmem:[%s1576_s6] sm:$0xff] }
 0x360   : > { %1268 = vpow2.f32 %v908_v51 }
 0x361   : > { %804 = vrot.lane.b32.xlu1 %v1443_v20, %s1324_s12  ;;  %1008 = vmatpush.bf16.msra.mxu1 %v1198_v50 }
 0x363   : > { %v693_v54 = vpop.permute.xlu1 %692  ;;  %v637_v55 = vpop.permute.xlu2 %636 }
 0x364   : > { %v698_v56 = vsel %vm525_vm2, %v693_v54, 0  ;;  %v642_v58 = vsel %vm525_vm2, %v637_v55, 0 }
 0x365   : > { %651 = vmatpush.bf16.msrb.mxu2 %v642_v58  ;;  %707 = vmatpush.bf16.msra.mxu0 %v698_v56 }
 0x366   : > { %v1269_v59 = vpop.eup %1268 }
 0x367   : > { %v910_v61 = vsel %vm504_vm3, %v1269_v59, 0.0 }
 0x368   : > { %911 = vadd.xlane.f32.xlu0 %v910_v61  ;;  %1172 = vmatmul.msk.bf16.vlgmr.msrb.gmra.mxu2 %vm504_vm3, %v635_v60 }
 0x36b   : > { %v749_v62 = vpop.permute.xlu1 %748 }
 0x36c   : > { %v754_v63 = vsel %vm525_vm2, %v749_v62, 0 }
 0x36d   : > { %763 = vmatpush.bf16.msra.mxu2 %v754_v63 }
 0x370   : > { %916 = vrot.lane.b32.xlu2 %v1443_v20, %s1325_s13 }
 0x379   : > { %v744_v0 = vpop.xlane.xlu0 %743 }
 0x37a   : > { %1270 = vrcp.f32 %v744_v0 }
 0x37b   : > { %1272 = vpow2.f32 %v852_v1 }
 0x37c   : > { %860 = vrot.lane.b32.xlu0 %v1443_v20, %s1326_s17 }
 0x380   : > { %v1271_v2 = vpop.eup %1270 }
 0x381   : > { %v746_v3 = vmul.f32 %v1271_v2, %v1259_v28  ;;  %v1273_v6 = vpop.eup %1272 }
 0x382   : > { %v854_v8 = vsel %vm504_vm3, %v1273_v6, 0.0 }
 0x383   : > { %v747_v5 = vpack.c.bf16 %v746_v3, %v746_v3 }
 0x385   : > { %1176 = vmatmul.msk.bf16.vlgmr.msra.gmra.mxu2 %vm504_vm3, %v747_v5 }
 0x38b   : > { %855 = vadd.xlane.f32.xlu1 %v854_v8 }
 0x3ab   : > { %v576_v9 = vpop.xlane.xlu1 %575 }
 0x3ac   : > { %1274 = vrcp.f32 %v576_v9  ;;  %v1334_v9 = vmov 32.0  }
 0x3b2   : > { %v1275_v10 = vpop.eup %1274 }
 0x3b3   : > { %v578_v11 = vmul.f32 %v1275_v10, %v1506_v34 }
 0x3b5   : > { %v579_v12 = vpack.c.bf16 %v578_v11, %v578_v11 }
 0x3b7   : > { %1170 = vmatmul.msk.bf16.vlgmr.msrb.gmra.mxu0 %vm504_vm3, %v579_v12 }
 0x3bb   : > { %v688_v20 = vpop.xlane.xlu1 %687 }
 0x3bc   : > { %1276 = vrcp.f32 %v688_v20 }
 0x3c2   : > { %v1277_v13 = vpop.eup %1276 }
 0x3c3   : > { %v690_v14 = vmul.f32 %v1277_v13, %v1263_v39 }
 0x3c5   : > { %v691_v15 = vpack.c.bf16 %v690_v14, %v690_v14 }
 0x3c7   : > { %1174 = vmatmul.msk.bf16.vlgmr.msra.gmra.mxu0 %vm504_vm3, %v691_v15 }
 0x3cb   : > { %v800_v16 = vpop.xlane.xlu2 %799 }
 0x3cc   : > { %1278 = vrcp.f32 %v800_v16 }
 0x3d2   : > { %v1279_v17 = vpop.eup %1278 }
 0x3d3   : > { %v802_v18 = vmul.f32 %v1279_v17, %v1265_v47  ;;  %v917_v19 = vpop.permute.xlu2 %916  ;;  %v805_v21 = vpop.permute.xlu1 %804 }
 0x3d4   : > { %v922_v22 = vsel %vm525_vm2, %v917_v19, 0  ;;  %v810_v23 = vsel %vm525_vm2, %v805_v21, 0 }
 0x3d5   : > { %v803_v24 = vpack.c.bf16 %v802_v18, %v802_v18  ;;  %819 = vmatpush.bf16.msrb.mxu0 %v810_v23 }
 0x3d8   : > { %1178 = vmatmul.msk.bf16.vlgmr.msrb.gmra.mxu0 %vm504_vm3, %v803_v24 }
 0x3d9   : > { %931 = vmatpush.bf16.msra.mxu0 %v922_v22 }
 0x3db   : > { %v912_v25 = vpop.xlane.xlu0 %911 }
 0x3dc   : > { %1280 = vrcp.f32 %v912_v25 }
 0x3e2   : > { %v1281_v26 = vpop.eup %1280 }
 0x3e3   : > { %v914_v27 = vmul.f32 %v1281_v26, %v1269_v59 }
 0x3e5   : > { %v915_v28 = vpack.c.bf16 %v914_v27, %v914_v27 }
 0x3e8   : > { %1182 = vmatmul.msk.bf16.vlgmr.msra.gmra.mxu0 %vm504_vm3, %v915_v28 }
 0x3eb   : > { %v653_v29 = vpop.f32.mrf.mxu2 }
 0x3ec   : > { %942 = vrot.lane.b32.xlu1 %v653_v29, %s1327_s18  ;;  %v1250_v29 = vld [vmem:[%s1578_s8] ss:$0 sm:$0xff] }
 0x3ee   : > { %v861_v30 = vpop.permute.xlu0 %860 }
 0x3ef   : > { %v866_v31 = vsel %vm525_vm2, %v861_v30, 0 }
 0x3f0   : > { %875 = vmatpush.bf16.msrb.mxu2 %v866_v31  ;;  %v1251_v31 = vld [vmem:[%s1579_s9] ss:$0 sm:$0xff] }
 0x3f3   : > { %v655_v32 = vpop.f32.mrf.mxu2 }
 0x3fe   : > { %v856_v33 = vpop.xlane.xlu1 %855 }
 0x3ff   : > { %1282 = vrcp.f32 %v856_v33 }
 0x400   : > { %1284 = vrcp.f32 %v1334_v9 }
 0x405   : > { %v1283_v34 = vpop.eup %1282 }
 0x406   : > { %v858_v35 = vmul.f32 %v1283_v34, %v1273_v6  ;;  %v1285_v10 = vpop.eup %1284 }
 0x407   : > { %v1019_v11 = vmul.f32 32.0, %v1285_v10  ;;  %vm1023_vm9 = vweird.f32 %v1285_v10 }
 0x408   : > { %v859_v36 = vpack.c.bf16 %v858_v35, %v858_v35  ;;  %v765_v37 = vpop.f32.mrf.mxu2 }
 0x409   : > { %950 = vrot.lane.b32.xlu2 %v765_v37, %s1328_s19  ;;  %v1020_v12 = vsub.f32 1.0, %v1019_v11 }
 0x40a   : > { %1180 = vmatmul.msk.bf16.vlgmr.msrb.gmra.mxu2 %vm504_vm3, %v859_v36 }
 0x40b   : > { %v1021_v20 = vmul.f32 %v1285_v10, %v1020_v12 }
 0x40d   : > { %v1022_v13 = vadd.f32 %v1285_v10, %v1021_v20 }
 0x40f   : > { %v1024_v14 = vsel %vm1023_vm9, %v1285_v10, %v1022_v13 }
 0x410   : > { %v767_v38 = vpop.f32.mrf.mxu2 }
 0x434   : > { %v597_v39 = vpop.f32.mrf.mxu0 }
 0x435   : > { %938 = vrot.lane.b32.xlu0 %v597_v39, %s1329_s20 }
 0x43c   : > { %v599_v40 = vpop.f32.mrf.mxu0 }
 0x444   : > { %v709_v41 = vpop.f32.mrf.mxu0 }
 0x445   : > { %946 = vrot.lane.b32.xlu0 %v709_v41, %s1330_s21  ;;  %s402_s21 = scalar_lea.vmem %s1580_s10, %s1420_s25 }
 0x44c   : > { %v711_v42 = vpop.f32.mrf.mxu0 }
 0x455   : > { %v821_v43 = vpop.f32.mrf.mxu0 }
 0x456   : > { %954 = vrot.lane.b32.xlu0 %v821_v43, %s1331_s22 }
 0x45d   : > { %v823_v44 = vpop.f32.mrf.mxu0 }
 0x45e   : > { %v943_v56 = vpop.permute.xlu1 %942 }
 0x463   : > { %v951_v53 = vpop.permute.xlu2 %950 }
 0x465   : > { %v933_v45 = vpop.f32.mrf.mxu0 }
 0x466   : > { %962 = vrot.lane.b32.xlu0 %v933_v45, %s1332_s23 }
 0x46d   : > { %v935_v46 = vpop.f32.mrf.mxu0 }
 0x48d   : > { %v877_v47 = vpop.f32.mrf.mxu2 }
 0x48e   : > { %958 = vrot.lane.b32.xlu2 %v877_v47, %s1333_s24 }
 0x495   : > { %v879_v48 = vpop.f32.mrf.mxu2 }
 0x4a7   : > { %v939_v51 = vpop.permute.xlu0 %938 }
 0x4a8   : > { %v965_v54 = vsel %vm484_vm1, %v1490_v7, %v939_v51  ;;  %v1249_v7 = vld [vmem:[%s1577_s7] ss:$0 sm:$0xff] }
 0x4a9   : > { %v966_v58 = vsel %vm504_vm3, %v965_v54, %v943_v56 }
 0x4b7   : > { %v947_v52 = vpop.permute.xlu0 %946 }
 0x4b8   : > { %v968_v59 = vsel %vm967_vm4, %v966_v58, %v947_v52 }
 0x4b9   : > { %v970_v60 = vsel %vm969_vm5, %v968_v59, %v951_v53 }
 0x4c8   : > { %v955_v55 = vpop.permute.xlu0 %954 }
 0x4c9   : > { %v972_v61 = vsel %vm971_vm6, %v970_v60, %v955_v55 }
 0x4d8   : > { %v963_v63 = vpop.permute.xlu0 %962 }
 0x4e8   : > { %v959_v62 = vpop.permute.xlu2 %958 }
 0x4e9   : > { %v974_v57 = vsel %vm973_vm7, %v972_v61, %v959_v62 }
 0x4ea   : > { %v976_v0 = vsel %vm975_vm8, %v974_v57, %v963_v63 }
 0x4eb   : > { %v977_v1 = vpack.c.bf16 %v976_v0, %v976_v0 }
 0x4ed   : > { %1191 = vmatmul.msk.bf16.vlgmr.msra.gmra.mxu1 %vm428_vm0, %v977_v1 }
 0x56a   : > { %v1010_v2 = vpop.f32.mrf.mxu1 }
 0x56b   : > { %v1011_v3 = vadd.f32 %v1249_v7, %v1010_v2 }
 0x56d   : > { %v1014_v5 = vadd.f32 %v1011_v3, %v1426_v4 }
 0x56f   : > { %v1015_v6 = vsel %vm428_vm0, %v1014_v5, 0.0 }
 0x570   : > { %1016 = vadd.xlane.f32.xlu2 %v1015_v6 }
 0x572   : > { %v1012_v8 = vpop.f32.mrf.mxu1 }
 0x5e3   : > { %v1017_v15 = vpop.xlane.xlu2 %1016 }
 0x5e4   : > { %v1025_v16 = vmul.f32 %v1024_v14, %v1017_v15 }
 0x5e6   : > { %v1026_v17 = vsub.f32 %v1014_v5, %v1025_v16 }
 0x5e8   : > { %v1027_v18 = vmul.f32 %v1026_v17, %v1026_v17 }
 0x5ea   : > { %v1028_v19 = vsel %vm428_vm0, %v1027_v18, 0.0 }
 0x5eb   : > { %1029 = vadd.xlane.f32.xlu1 %v1028_v19 }
 0x65e   : > { %v1030_v4 = vpop.xlane.xlu1 %1029 }
 0x65f   : > { %v1031_v21 = vmul.f32 %v1030_v4, %v1024_v14 }
 0x661   : > { %v1032_v22 = vadd.f32 1e-05, %v1031_v21 }
 0x663   : > { %1286 = vrsqrt.f32 %v1032_v22  ;;  %vm1039_vm11 = vweird.f32 %v1032_v22 }
 0x669   : > { %v1287_v23 = vpop.eup %1286 }
 0x66a   : > { %v1034_v24 = vmul.f32 %v1287_v23, %v1032_v22  ;;  %vm1040_vm10 = vweird.f32 %v1287_v23 }
 0x66b   : > { %vm1041_vm12 = vmor %vm1039_vm11, %vm1040_vm10 }
 0x66c   : > { %v1035_v25 = vmul.f32 %v1287_v23, %v1034_v24 }
 0x66e   : > { %v1036_v26 = vmul.f32 0.5, %v1035_v25 }
 0x670   : > { %v1037_v27 = vsub.f32 1.5, %v1036_v26 }
 0x672   : > { %v1038_v28 = vmul.f32 %v1287_v23, %v1037_v27 }
 0x674   : > { %v1042_v30 = vsel %vm1041_vm12, %v1287_v23, %v1038_v28 }
 0x675   : > { %v1043_v32 = vmul.f32 %v1042_v30, %v1026_v17 }
 0x677   : > { %v1048_v33 = vmul.f32 %v1250_v29, %v1043_v32 }
 0x679   : > { %v1053_v34 = vadd.f32 %v1251_v31, %v1048_v33 }
 0x67b   : > { %1054 = vst.msk [vmem:[%s402_s21] sm:$0xff] %vm428_vm0, %v1053_v34 }
 0x67c PF: > { %s20_s15 = sadd.s32 1, %s1310_s15   ;;  %s1581_s13 = smov %s1306_s14 }
 0x67d   : > { %p17_p5 = scmp.ge.s32.totalorder %s20_s15, 4   ;;  %s1582_s14 = smov %s1584_s16 }
 0x67f   :  { %19 = sbr.rel (!%p17_p5) target bundleno = 2 (0x2), region = 93 }

// kernel: encoder_decoder_transformer.13
= control target key start
LH: loop header
LB: loop body
LE: loop exit
PB: predicated region body
PF: predicated region fallthrough
CT: control target
= control target key end

     0   :  { %vm258_vm0 = vcmask 261120   ;;  %s3395_s1 = inlined_call_operand.vmem [shape: bf16[32,2048], index: 1, kind: input, shape index: {}]   ;;  %s3396_s0 = inlined_call_operand.vmem [shape: f32[16,32], index: 0, kind: input, shape index: {}]   ;;  %s3397_s3 = inlined_call_operand.vmem [shape: bf16[2048,32], index: 3, kind: input, shape index: {}]   ;;  %s3398_s4 = inlined_call_operand.vmem [shape: f32[1,32], index: 4, kind: input, shape index: {}]   ;;  %s3399_s2 = inlined_call_operand.vmem [shape: f32[1,2048], index: 2, kind: input, shape index: {}]   ;;  %s3400_s5 = inlined_call_operand.vmem [shape: f32[1,32], index: 5, kind: input, shape index: {}]   ;;  %s3401_s6 = inlined_call_operand.vmem [shape: f32[1,32], index: 6, kind: input, shape index: {}]   ;;  %s3402_s7 = inlined_call_operand.vmem [shape: f32[16,32], index: 7, kind: output, shape index: {}]  }
   0x1   :  { %v1923_v0 = vld [vmem:[%s3395_s1 + $0x80] sm:$0xf]  ;;  %v2529_v2 = vld [vmem:[%s3395_s1 + $0x84] sm:$0xf]  ;;  %v1931_v5 = vld [vmem:[%s3395_s1 + $0x88] sm:$0xf] }
   0x2   :  { %v2537_v1 = vld [vmem:[%s3395_s1 + $0xbc] sm:$0xf0]  ;;  %v1925_v4 = vld [vmem:[%s3395_s1 + $0xc0] sm:$0xf0]  ;;  %v2538_v6 = vld [vmem:[%s3395_s1 + $0xc4] sm:$0xf0] }
   0x3   :  { %v1924_v3 = vor.u32 %v2537_v1, %v1923_v0  ;;  %v1928_v7 = vor.u32 %v2529_v2, %v1925_v4  ;;  %v1932_v8 = vor.u32 %v2538_v6, %v1931_v5  ;;  %v2530_v9 = vld [vmem:[%s3395_s1 + $0x8c] sm:$0xf]  ;;  %v1859_v11 = vld [vmem:[%s3395_s1] sm:$0xf]  ;;  %v2513_v14 = vld [vmem:[%s3395_s1 + $0x4] sm:$0xf] }
   0x4   :  { %v1933_v10 = vld [vmem:[%s3395_s1 + $0xc8] sm:$0xf0]  ;;  %v2521_v13 = vld [vmem:[%s3395_s1 + $0x3c] sm:$0xf0]  ;;  %v1861_v15 = vld [vmem:[%s3395_s1 + $0x40] sm:$0xf0] }
   0x5   :  { %268 = vmatpush.bf16.msra.mxu0 %v1924_v3  ;;  %v1936_v12 = vor.u32 %v2530_v9, %v1933_v10  ;;  %282 = vmatpush.bf16.msra.mxu1 %v1928_v7  ;;  %v1860_v16 = vor.u32 %v2521_v13, %v1859_v11  ;;  %v1864_v17 = vor.u32 %v2513_v14, %v1861_v15  ;;  %v1867_v18 = vld [vmem:[%s3395_s1 + $0x8] sm:$0xf]  ;;  %v2514_v20 = vld [vmem:[%s3395_s1 + $0xc] sm:$0xf]  ;;  %v27_v23 = vld [vmem:[%s3396_s0] sm:$0xff] }
   0x6   :  { %296 = vmatpush.bf16.msra.mxu2 %v1932_v8  ;;  %v2522_v19 = vld [vmem:[%s3395_s1 + $0x44] sm:$0xf0]  ;;  %v1869_v22 = vld [vmem:[%s3395_s1 + $0x48] sm:$0xf0]  ;;  %v1939_v27 = vld [vmem:[%s3395_s1 + $0x90] sm:$0xf] }
   0x7   :  { %310 = vmatpush.bf16.msra.mxu3 %v1936_v12  ;;  %v1868_v21 = vor.u32 %v2522_v19, %v1867_v18  ;;  %v28_v24 = vld [vmem:[%s3396_s0 + $0x8] sm:$0xff]  ;;  %v1872_v25 = vor.u32 %v2514_v20, %v1869_v22  ;;  %v2539_v28 = vld [vmem:[%s3395_s1 + $0xcc] sm:$0xf0]  ;;  %v1947_v29 = vld [vmem:[%s3395_s1 + $0x98] sm:$0xf] }
   0x8   :  { %v2780_v26 = vpack.c.bf16 %v28_v24, %v27_v23  ;;  %v1940_v30 = vor.u32 %v2539_v28, %v1939_v27  ;;  %v2540_v31 = vld [vmem:[%s3395_s1 + $0xd4] sm:$0xf0]  ;;  %v2532_v32 = vld [vmem:[%s3395_s1 + $0x9c] sm:$0xf]  ;;  %v2531_v35 = vld [vmem:[%s3395_s1 + $0x94] sm:$0xf] }
   0x9   :  { %269 = vmatpush.bf16.msra.mxu0 %v1860_v16  ;;  %v1949_v33 = vld [vmem:[%s3395_s1 + $0xd8] sm:$0xf0]  ;;  %283 = vmatpush.bf16.msra.mxu1 %v1864_v17  ;;  %v1948_v34 = vor.u32 %v2540_v31, %v1947_v29  ;;  %v1941_v36 = vld [vmem:[%s3395_s1 + $0xd0] sm:$0xf0]  ;;  %v1875_v37 = vld [vmem:[%s3395_s1 + $0x10] sm:$0xf] }
   0xa   :  { %297 = vmatpush.bf16.msra.mxu2 %v1868_v21  ;;  %v1952_v38 = vor.u32 %v2532_v32, %v1949_v33  ;;  %v1944_v39 = vor.u32 %v2531_v35, %v1941_v36  ;;  %v2523_v40 = vld [vmem:[%s3395_s1 + $0x4c] sm:$0xf0]  ;;  %v1883_v41 = vld [vmem:[%s3395_s1 + $0x18] sm:$0xf]  ;;  %v2516_v45 = vld [vmem:[%s3395_s1 + $0x1c] sm:$0xf] }
   0xb   :  { %311 = vmatpush.bf16.msra.mxu3 %v1872_v25  ;;  %v2524_v42 = vld [vmem:[%s3395_s1 + $0x54] sm:$0xf0]  ;;  %v1876_v43 = vor.u32 %v2523_v40, %v1875_v37  ;;  %v1885_v46 = vld [vmem:[%s3395_s1 + $0x58] sm:$0xf0]  ;;  %v2515_v47 = vld [vmem:[%s3395_s1 + $0x14] sm:$0xf] }
   0xc   :  { %1985 = vmatmul.msk.bf16.vlgmr.msra.gmra.mxu0 %vm258_vm0, %v2780_v26  ;;  %v1884_v44 = vor.u32 %v2524_v42, %v1883_v41  ;;  %1986 = vmatmul.msk.bf16.vlgmr.msra.gmra.mxu1 %vm258_vm0, %v2780_v26  ;;  %v1877_v48 = vld [vmem:[%s3395_s1 + $0x50] sm:$0xf0]  ;;  %v1955_v49 = vld [vmem:[%s3395_s1 + $0xa0] sm:$0xf]  ;;  %v1963_v53 = vld [vmem:[%s3395_s1 + $0xa8] sm:$0xf]  ;;  %v1888_v56 = vor.u32 %v2516_v45, %v1885_v46 }
   0xd   :  { %324 = vmatpush.bf16.msrb.mxu0 %v1940_v30  ;;  %1987 = vmatmul.msk.bf16.vlgmr.msra.gmra.mxu2 %vm258_vm0, %v2780_v26  ;;  %v2541_v50 = vld [vmem:[%s3395_s1 + $0xdc] sm:$0xf0]  ;;  %v1880_v51 = vor.u32 %v2515_v47, %v1877_v48  ;;  %v2542_v54 = vld [vmem:[%s3395_s1 + $0xe4] sm:$0xf0]  ;;  %v2534_v55 = vld [vmem:[%s3395_s1 + $0xac] sm:$0xf] }
   0xe   :  { %352 = vmatpush.bf16.msrb.mxu2 %v1948_v34  ;;  %1988 = vmatmul.msk.bf16.vlgmr.msra.gmra.mxu3 %vm258_vm0, %v2780_v26  ;;  %v1956_v52 = vor.u32 %v2541_v50, %v1955_v49  ;;  %v1964_v57 = vor.u32 %v2542_v54, %v1963_v53  ;;  %v1965_v58 = vld [vmem:[%s3395_s1 + $0xe8] sm:$0xf0]  ;;  %v2533_v59 = vld [vmem:[%s3395_s1 + $0xa4] sm:$0xf]  ;;  %v1891_v63 = vld [vmem:[%s3395_s1 + $0x20] sm:$0xf] }
   0xf   :  { %338 = vmatpush.bf16.msrb.mxu1 %v1944_v39  ;;  %366 = vmatpush.bf16.msrb.mxu3 %v1952_v38  ;;  %v1957_v60 = vld [vmem:[%s3395_s1 + $0xe0] sm:$0xf0]  ;;  %v1968_v61 = vor.u32 %v2534_v55, %v1965_v58  ;;  %v2525_v0 = vld [vmem:[%s3395_s1 + $0x5c] sm:$0xf0]  ;;  %v1899_v1 = vld [vmem:[%s3395_s1 + $0x28] sm:$0xf] }
  0x10   :  { %v1960_v62 = vor.u32 %v2533_v59, %v1957_v60  ;;  %v1892_v2 = vor.u32 %v2525_v0, %v1891_v63  ;;  %v2526_v3 = vld [vmem:[%s3395_s1 + $0x64] sm:$0xf0]  ;;  %v2518_v4 = vld [vmem:[%s3395_s1 + $0x2c] sm:$0xf]  ;;  %v2517_v7 = vld [vmem:[%s3395_s1 + $0x24] sm:$0xf] }
  0x11   :  { %325 = vmatpush.bf16.msrb.mxu0 %v1876_v43  ;;  %v1901_v5 = vld [vmem:[%s3395_s1 + $0x68] sm:$0xf0]  ;;  %v1900_v6 = vor.u32 %v2526_v3, %v1899_v1  ;;  %v1893_v8 = vld [vmem:[%s3395_s1 + $0x60] sm:$0xf0]  ;;  %v1979_v11 = vld [vmem:[%s3395_s1 + $0xb8] sm:$0xf] }
  0x12   :  { %353 = vmatpush.bf16.msrb.mxu2 %v1884_v44  ;;  %v1896_v9 = vor.u32 %v2517_v7, %v1893_v8  ;;  %v1904_v10 = vor.u32 %v2518_v4, %v1901_v5  ;;  %v2544_v12 = vld [vmem:[%s3395_s1 + $0xf4] sm:$0xf0]  ;;  %v2536_v13 = vld [vmem:[%s3395_s1 + $0xbc] sm:$0xf]  ;;  %v1971_v15 = vld [vmem:[%s3395_s1 + $0xb0] sm:$0xf] }
  0x13   :  { %339 = vmatpush.bf16.msrb.mxu1 %v1880_v51  ;;  %367 = vmatpush.bf16.msrb.mxu3 %v1888_v56  ;;  %v1981_v14 = vld [vmem:[%s3395_s1 + $0xf8] sm:$0xf0]  ;;  %v2543_v16 = vld [vmem:[%s3395_s1 + $0xec] sm:$0xf0]  ;;  %v1980_v17 = vor.u32 %v2544_v12, %v1979_v11  ;;  %v1915_v19 = vld [vmem:[%s3395_s1 + $0x38] sm:$0xf] }
  0x14   :  { %v1984_v18 = vor.u32 %v2536_v13, %v1981_v14  ;;  %v2528_v20 = vld [vmem:[%s3395_s1 + $0x74] sm:$0xf0]  ;;  %v1972_v21 = vor.u32 %v2543_v16, %v1971_v15  ;;  %v2520_v22 = vld [vmem:[%s3395_s1 + $0x3c] sm:$0xf]  ;;  %v2535_v24 = vld [vmem:[%s3395_s1 + $0xb4] sm:$0xf] }
  0x15   :  { %380 = vmatpush.bf16.msra.mxu0 %v1956_v52  ;;  %v1917_v23 = vld [vmem:[%s3395_s1 + $0x78] sm:$0xf0]  ;;  %v1973_v25 = vld [vmem:[%s3395_s1 + $0xf0] sm:$0xf0]  ;;  %v1916_v27 = vor.u32 %v2528_v20, %v1915_v19  ;;  %v1907_v29 = vld [vmem:[%s3395_s1 + $0x30] sm:$0xf] }
  0x16   :  { %408 = vmatpush.bf16.msra.mxu2 %v1964_v57  ;;  %v1976_v28 = vor.u32 %v2535_v24, %v1973_v25  ;;  %v2527_v30 = vld [vmem:[%s3395_s1 + $0x6c] sm:$0xf0]  ;;  %v2519_v31 = vld [vmem:[%s3395_s1 + $0x34] sm:$0xf]  ;;  %v1920_v32 = vor.u32 %v2520_v22, %v1917_v23  ;;  %v2552_v36 = vld [vmem:[%s3397_s3 + $0x38] sm:$0xff] }
  0x17   :  { %394 = vmatpush.bf16.msra.mxu1 %v1960_v62  ;;  %422 = vmatpush.bf16.msra.mxu3 %v1968_v61  ;;  %v1908_v33 = vor.u32 %v2527_v30, %v1907_v29  ;;  %v1909_v34 = vld [vmem:[%s3395_s1 + $0x70] sm:$0xf0]  ;;  %v2560_v37 = vld [vmem:[%s3397_s3 + $0x78] sm:$0xff]  ;;  %v2550_v44 = vld [vmem:[%s3397_s3 + $0x28] sm:$0xff] }
  0x18   :  { %v1912_v35 = vor.u32 %v2519_v31, %v1909_v34  ;;  %v2568_v38 = vld [vmem:[%s3397_s3 + $0xb8] sm:$0xff]  ;;  %v2551_v40 = vld [vmem:[%s3397_s3 + $0x30] sm:$0xff]  ;;  %v2558_v45 = vld [vmem:[%s3397_s3 + $0x68] sm:$0xff] }
  0x19   :  { %381 = vmatpush.bf16.msra.mxu0 %v1892_v2  ;;  %v2576_v39 = vld [vmem:[%s3397_s3 + $0xf8] sm:$0xff]  ;;  %v2559_v41 = vld [vmem:[%s3397_s3 + $0x70] sm:$0xff]  ;;  %v2566_v46 = vld [vmem:[%s3397_s3 + $0xa8] sm:$0xff] }
  0x1a   :  { %409 = vmatpush.bf16.msra.mxu2 %v1900_v6  ;;  %v2567_v42 = vld [vmem:[%s3397_s3 + $0xb0] sm:$0xff]  ;;  %v2574_v47 = vld [vmem:[%s3397_s3 + $0xe8] sm:$0xff]  ;;  %v2549_v48 = vld [vmem:[%s3397_s3 + $0x20] sm:$0xff] }
  0x1b   :  { %395 = vmatpush.bf16.msra.mxu1 %v1896_v9  ;;  %423 = vmatpush.bf16.msra.mxu3 %v1904_v10  ;;  %v2575_v43 = vld [vmem:[%s3397_s3 + $0xf0] sm:$0xff]  ;;  %v2557_v49 = vld [vmem:[%s3397_s3 + $0x60] sm:$0xff]  ;;  %v2548_v52 = vld [vmem:[%s3397_s3 + $0x18] sm:$0xff] }
  0x1c   :  { %1989 = vmatmul.msk.bf16.vlgmr.msrb.gmra.mxu0 %vm258_vm0, %v2780_v26  ;;  %1990 = vmatmul.msk.bf16.vlgmr.msrb.gmra.mxu1 %vm258_vm0, %v2780_v26  ;;  %v2565_v50 = vld [vmem:[%s3397_s3 + $0xa0] sm:$0xff]  ;;  %v2556_v53 = vld [vmem:[%s3397_s3 + $0x58] sm:$0xff]  ;;  %v2547_v56 = vld [vmem:[%s3397_s3 + $0x10] sm:$0xff] }
  0x1d   :  { %1991 = vmatmul.msk.bf16.vlgmr.msrb.gmra.mxu2 %vm258_vm0, %v2780_v26  ;;  %436 = vmatpush.bf16.msrb.mxu0 %v1972_v21  ;;  %v2573_v51 = vld [vmem:[%s3397_s3 + $0xe0] sm:$0xff]  ;;  %v2564_v54 = vld [vmem:[%s3397_s3 + $0x98] sm:$0xff]  ;;  %v2555_v57 = vld [vmem:[%s3397_s3 + $0x50] sm:$0xff] }
  0x1e   :  { %1992 = vmatmul.msk.bf16.vlgmr.msrb.gmra.mxu3 %vm258_vm0, %v2780_v26  ;;  %464 = vmatpush.bf16.msrb.mxu2 %v1980_v17  ;;  %v2572_v55 = vld [vmem:[%s3397_s3 + $0xd8] sm:$0xff]  ;;  %v2563_v58 = vld [vmem:[%s3397_s3 + $0x90] sm:$0xff]  ;;  %v2546_v59 = vld [vmem:[%s3397_s3 + $0x8] sm:$0xff] }
  0x1f   :  { %478 = vmatpush.bf16.msrb.mxu3 %v1984_v18  ;;  %450 = vmatpush.bf16.msrb.mxu1 %v1976_v28  ;;  %v2554_v60 = vld [vmem:[%s3397_s3 + $0x48] sm:$0xff]  ;;  %v2545_v63 = vld [vmem:[%s3397_s3] sm:$0xff]  ;;  %v2584_v1 = vld [vmem:[%s3397_s3 + $0x138] sm:$0xff] }
  0x20   :  { %v2562_v61 = vld [vmem:[%s3397_s3 + $0x88] sm:$0xff]  ;;  %v2553_v0 = vld [vmem:[%s3397_s3 + $0x40] sm:$0xff]  ;;  %v2592_v2 = vld [vmem:[%s3397_s3 + $0x178] sm:$0xff] }
  0x21   :  { %437 = vmatpush.bf16.msrb.mxu0 %v1908_v33  ;;  %v2570_v62 = vld [vmem:[%s3397_s3 + $0xc8] sm:$0xff]  ;;  %v2561_v3 = vld [vmem:[%s3397_s3 + $0x80] sm:$0xff]  ;;  %v2600_v5 = vld [vmem:[%s3397_s3 + $0x1b8] sm:$0xff] }
  0x22   :  { %465 = vmatpush.bf16.msrb.mxu2 %v1916_v27  ;;  %v2569_v4 = vld [vmem:[%s3397_s3 + $0xc0] sm:$0xff]  ;;  %v2608_v6 = vld [vmem:[%s3397_s3 + $0x1f8] sm:$0xff]  ;;  %v2583_v7 = vld [vmem:[%s3397_s3 + $0x130] sm:$0xff] }
  0x23   :  { %479 = vmatpush.bf16.msrb.mxu3 %v1920_v32  ;;  %451 = vmatpush.bf16.msrb.mxu1 %v1912_v35  ;;  %v2591_v8 = vld [vmem:[%s3397_s3 + $0x170] sm:$0xff]  ;;  %v2582_v11 = vld [vmem:[%s3397_s3 + $0x128] sm:$0xff]  ;;  %v2581_v13 = vld [vmem:[%s3397_s3 + $0x120] sm:$0xff] }
  0x24   :  { %v2599_v9 = vld [vmem:[%s3397_s3 + $0x1b0] sm:$0xff]  ;;  %v2590_v12 = vld [vmem:[%s3397_s3 + $0x168] sm:$0xff]  ;;  %v2589_v14 = vld [vmem:[%s3397_s3 + $0x160] sm:$0xff] }
  0x25   :  { %v2607_v10 = vld [vmem:[%s3397_s3 + $0x1f0] sm:$0xff]  ;;  %v2598_v15 = vld [vmem:[%s3397_s3 + $0x1a8] sm:$0xff]  ;;  %v2580_v17 = vld [vmem:[%s3397_s3 + $0x118] sm:$0xff] }
  0x26   :  { %v2606_v16 = vld [vmem:[%s3397_s3 + $0x1e8] sm:$0xff]  ;;  %v2588_v18 = vld [vmem:[%s3397_s3 + $0x158] sm:$0xff]  ;;  %v2597_v19 = vld [vmem:[%s3397_s3 + $0x1a0] sm:$0xff] }
  0x27   :  { %v2605_v20 = vld [vmem:[%s3397_s3 + $0x1e0] sm:$0xff]  ;;  %v2579_v21 = vld [vmem:[%s3397_s3 + $0x110] sm:$0xff]  ;;  %v2596_v23 = vld [vmem:[%s3397_s3 + $0x198] sm:$0xff] }
  0x28   :  { %v2587_v22 = vld [vmem:[%s3397_s3 + $0x150] sm:$0xff]  ;;  %v2604_v24 = vld [vmem:[%s3397_s3 + $0x1d8] sm:$0xff]  ;;  %v2578_v25 = vld [vmem:[%s3397_s3 + $0x108] sm:$0xff] }
  0x29   :  { %v2586_v27 = vld [vmem:[%s3397_s3 + $0x148] sm:$0xff]  ;;  %v2595_v28 = vld [vmem:[%s3397_s3 + $0x190] sm:$0xff]  ;;  %v2577_v30 = vld [vmem:[%s3397_s3 + $0x100] sm:$0xff] }
  0x2a   :  { %v2603_v29 = vld [vmem:[%s3397_s3 + $0x1d0] sm:$0xff]  ;;  %v2585_v31 = vld [vmem:[%s3397_s3 + $0x140] sm:$0xff]  ;;  %v2594_v32 = vld [vmem:[%s3397_s3 + $0x188] sm:$0xff] }
  0x2b   :  { %v2602_v33 = vld [vmem:[%s3397_s3 + $0x1c8] sm:$0xff]  ;;  %v2593_v34 = vld [vmem:[%s3397_s3 + $0x180] sm:$0xff] }
  0x2c   :  { %1993 = vmatmul.msk.bf16.vlgmr.msra.gmra.mxu0 %vm258_vm0, %v2780_v26  ;;  %1994 = vmatmul.msk.bf16.vlgmr.msra.gmra.mxu1 %vm258_vm0, %v2780_v26  ;;  %v2601_v35 = vld [vmem:[%s3397_s3 + $0x1c0] sm:$0xff] }
  0x2d   :  { %1995 = vmatmul.msk.bf16.vlgmr.msra.gmra.mxu2 %vm258_vm0, %v2780_v26  ;;  %1562 = vmatpush.bf16.msra.mxu0 %v2552_v36  ;;  %v3153_v36 = vld [vmem:[%s3399_s2] sm:$0xff] }
  0x2e   :  { %1996 = vmatmul.msk.bf16.vlgmr.msra.gmra.mxu3 %vm258_vm0, %v2780_v26  ;;  %1576 = vmatpush.bf16.msra.mxu1 %v2560_v37 }
  0x2f   :  { %1590 = vmatpush.bf16.msra.mxu2 %v2568_v38  ;;  %1604 = vmatpush.bf16.msra.mxu3 %v2576_v39  ;;  %v66_v38 = vperm.slane %v3153_v36, 0 }
  0x31   :  { %1563 = vmatpush.bf16.msra.mxu0 %v2551_v40  ;;  %v67_v40 = vperm.slane %v3153_v36, 1 }
  0x32   :  { %1577 = vmatpush.bf16.msra.mxu1 %v2559_v41 }
  0x33   :  { %1591 = vmatpush.bf16.msra.mxu2 %v2567_v42  ;;  %1605 = vmatpush.bf16.msra.mxu3 %v2575_v43 }
  0x35   :  { %1564 = vmatpush.bf16.msra.mxu0 %v2550_v44 }
  0x36   :  { %1578 = vmatpush.bf16.msra.mxu1 %v2558_v45 }
  0x37   :  { %1592 = vmatpush.bf16.msra.mxu2 %v2566_v46  ;;  %1606 = vmatpush.bf16.msra.mxu3 %v2574_v47 }
  0x39   :  { %1565 = vmatpush.bf16.msra.mxu0 %v2549_v48 }
  0x3a   :  { %1579 = vmatpush.bf16.msra.mxu1 %v2557_v49 }
  0x3b   :  { %1593 = vmatpush.bf16.msra.mxu2 %v2565_v50  ;;  %1607 = vmatpush.bf16.msra.mxu3 %v2573_v51  ;;  %v68_v50 = vperm.slane %v3153_v36, 2 }
  0x3c   :  { %1997 = vmatmul.msk.bf16.vlgmr.msrb.gmra.mxu0 %vm258_vm0, %v2780_v26  ;;  %1998 = vmatmul.msk.bf16.vlgmr.msrb.gmra.mxu1 %vm258_vm0, %v2780_v26 }
  0x3d   :  { %1999 = vmatmul.msk.bf16.vlgmr.msrb.gmra.mxu2 %vm258_vm0, %v2780_v26  ;;  %1566 = vmatpush.bf16.msra.mxu0 %v2548_v52  ;;  %v69_v52 = vperm.slane %v3153_v36, 3 }
  0x3e   :  { %2000 = vmatmul.msk.bf16.vlgmr.msrb.gmra.mxu3 %vm258_vm0, %v2780_v26  ;;  %1580 = vmatpush.bf16.msra.mxu1 %v2556_v53  ;;  %v2571_v26 = vld [vmem:[%s3397_s3 + $0xd0] sm:$0xff] }
  0x3f   :  { %1594 = vmatpush.bf16.msra.mxu2 %v2564_v54  ;;  %1608 = vmatpush.bf16.msra.mxu3 %v2572_v55  ;;  %v2616_v55 = vld [vmem:[%s3397_s3 + $0x238] sm:$0xff] }
  0x41   :  { %1567 = vmatpush.bf16.msra.mxu0 %v2547_v56 }
  0x42   :  { %1581 = vmatpush.bf16.msra.mxu1 %v2555_v57  ;;  %v2624_v57 = vld [vmem:[%s3397_s3 + $0x278] sm:$0xff] }
  0x43   :  { %1595 = vmatpush.bf16.msra.mxu2 %v2563_v58  ;;  %1609 = vmatpush.bf16.msra.mxu3 %v2571_v26 }
  0x45   :  { %1568 = vmatpush.bf16.msra.mxu0 %v2546_v59 }
  0x46   :  { %1582 = vmatpush.bf16.msra.mxu1 %v2554_v60 }
  0x47   :  { %1596 = vmatpush.bf16.msra.mxu2 %v2562_v61  ;;  %1610 = vmatpush.bf16.msra.mxu3 %v2570_v62 }
  0x49   :  { %1569 = vmatpush.bf16.msra.mxu0 %v2545_v63 }
  0x4a   :  { %1583 = vmatpush.bf16.msra.mxu1 %v2553_v0  ;;  %v2615_v0 = vld [vmem:[%s3397_s3 + $0x230] sm:$0xff] }
  0x4b   :  { %1597 = vmatpush.bf16.msra.mxu2 %v2561_v3  ;;  %1611 = vmatpush.bf16.msra.mxu3 %v2569_v4  ;;  %v2623_v4 = vld [vmem:[%s3397_s3 + $0x270] sm:$0xff] }
  0x4d   :  { %1618 = vmatpush.bf16.msrb.mxu0 %v2584_v1 }
  0x4e   :  { %1632 = vmatpush.bf16.msrb.mxu1 %v2592_v2  ;;  %v70_v2 = vperm.slane %v3153_v36, 4 }
  0x4f   :  { %1646 = vmatpush.bf16.msrb.mxu2 %v2600_v5  ;;  %1660 = vmatpush.bf16.msrb.mxu3 %v2608_v6 }
  0x51   :  { %1619 = vmatpush.bf16.msrb.mxu0 %v2583_v7  ;;  %v71_v7 = vperm.slane %v3153_v36, 5 }
  0x52   :  { %1633 = vmatpush.bf16.msrb.mxu1 %v2591_v8 }
  0x53   :  { %1647 = vmatpush.bf16.msrb.mxu2 %v2599_v9  ;;  %1661 = vmatpush.bf16.msrb.mxu3 %v2607_v10  ;;  %v2632_v10 = vld [vmem:[%s3397_s3 + $0x2b8] sm:$0xff] }
  0x55   :  { %1620 = vmatpush.bf16.msrb.mxu0 %v2582_v11 }
  0x56   :  { %1634 = vmatpush.bf16.msrb.mxu1 %v2590_v12  ;;  %v2640_v12 = vld [vmem:[%s3397_s3 + $0x2f8] sm:$0xff] }
  0x57   :  { %1648 = vmatpush.bf16.msrb.mxu2 %v2598_v15  ;;  %1662 = vmatpush.bf16.msrb.mxu3 %v2606_v16  ;;  %v2622_v16 = vld [vmem:[%s3397_s3 + $0x268] sm:$0xff] }
  0x59   :  { %1621 = vmatpush.bf16.msrb.mxu0 %v2581_v13  ;;  %v2614_v13 = vld [vmem:[%s3397_s3 + $0x228] sm:$0xff] }
  0x5a   :  { %1635 = vmatpush.bf16.msrb.mxu1 %v2589_v14 }
  0x5b   :  { %1649 = vmatpush.bf16.msrb.mxu2 %v2597_v19  ;;  %1663 = vmatpush.bf16.msrb.mxu3 %v2605_v20  ;;  %v2631_v19 = vld [vmem:[%s3397_s3 + $0x2b0] sm:$0xff]  ;;  %v72_v20 = vperm.slane %v3153_v36, 6 }
  0x5d   :  { %1622 = vmatpush.bf16.msrb.mxu0 %v2580_v17 }
  0x5e   :  { %1636 = vmatpush.bf16.msrb.mxu1 %v2588_v18 }
  0x5f   :  { %1650 = vmatpush.bf16.msrb.mxu2 %v2596_v23  ;;  %1664 = vmatpush.bf16.msrb.mxu3 %v2604_v24  ;;  %v2639_v23 = vld [vmem:[%s3397_s3 + $0x2f0] sm:$0xff]  ;;  %v2613_v24 = vld [vmem:[%s3397_s3 + $0x220] sm:$0xff] }
  0x61   :  { %1623 = vmatpush.bf16.msrb.mxu0 %v2579_v21 }
  0x62   :  { %1637 = vmatpush.bf16.msrb.mxu1 %v2587_v22 }
  0x63   :  { %1651 = vmatpush.bf16.msrb.mxu2 %v2595_v28  ;;  %1665 = vmatpush.bf16.msrb.mxu3 %v2603_v29 }
  0x65   :  { %1624 = vmatpush.bf16.msrb.mxu0 %v2578_v25 }
  0x66   :  { %1638 = vmatpush.bf16.msrb.mxu1 %v2586_v27  ;;  %v73_v27 = vperm.slane %v3153_v36, 7  ;;  %v2638_v36 = vld [vmem:[%s3397_s3 + $0x2e8] sm:$0xff] }
  0x67   :  { %1652 = vmatpush.bf16.msrb.mxu2 %v2594_v32  ;;  %1666 = vmatpush.bf16.msrb.mxu3 %v2602_v33 }
  0x69   :  { %1625 = vmatpush.bf16.msrb.mxu0 %v2577_v30  ;;  %v2621_v30 = vld [vmem:[%s3397_s3 + $0x260] sm:$0xff] }
  0x6a   :  { %1639 = vmatpush.bf16.msrb.mxu1 %v2585_v31 }
  0x6b   :  { %1653 = vmatpush.bf16.msrb.mxu2 %v2593_v34  ;;  %1667 = vmatpush.bf16.msrb.mxu3 %v2601_v35  ;;  %v2630_v34 = vld [vmem:[%s3397_s3 + $0x2a8] sm:$0xff] }
  0x89   :  { %v271_v37 = vpop.f32.mrf.mxu0  ;;  %v285_v39 = vpop.f32.mrf.mxu1 }
  0x8a   :  { %v272_v41 = vadd.f32 %v271_v37, %v66_v38  ;;  %v286_v42 = vadd.f32 %v285_v39, %v67_v40 }
  0x8c   :  { %v486_v46 = vmax.f32 %v272_v41, 0.0  ;;  %v487_v49 = vmax.f32 %v286_v42, 0.0  ;;  %v2620_v41 = vld [vmem:[%s3397_s3 + $0x258] sm:$0xff] }
  0x90   :  { %v299_v43 = vpop.f32.mrf.mxu2 }
  0x91   :  { %v313_v44 = vpop.f32.mrf.mxu3  ;;  %v273_v45 = vpop.f32.mrf.mxu0  ;;  %v300_v58 = vadd.f32 %v299_v43, %v68_v50  ;;  %v3214_v43 = vld [vmem:[%s3399_s2 + $0x8] sm:$0xff] }
  0x92   :  { %v274_v47 = vadd.f32 %v273_v45, %v66_v38  ;;  %v287_v48 = vpop.f32.mrf.mxu1  ;;  %v314_v59 = vadd.f32 %v313_v44, %v69_v52  ;;  %v2612_v38 = vld [vmem:[%s3397_s3 + $0x218] sm:$0xff]  ;;  %v2629_v45 = vld [vmem:[%s3397_s3 + $0x2a0] sm:$0xff] }
  0x93   :  { %v288_v51 = vadd.f32 %v287_v48, %v67_v40  ;;  %v488_v5 = vmax.f32 %v300_v58, 0.0 }
  0x94   :  { %v502_v53 = vmax.f32 %v274_v47, 0.0  ;;  %v489_v8 = vmax.f32 %v314_v59, 0.0  ;;  %v2628_v59 = vld [vmem:[%s3397_s3 + $0x298] sm:$0xff] }
  0x95   :  { %v503_v54 = vmax.f32 %v288_v51, 0.0  ;;  %v2611_v51 = vld [vmem:[%s3397_s3 + $0x210] sm:$0xff] }
  0x96   :  { %v518_v56 = vpack.c.bf16 %v502_v53, %v486_v46 }
  0x97   :  { %v519_v26 = vpack.c.bf16 %v503_v54, %v487_v49  ;;  %v74_v54 = vperm.slane %v3214_v43, 0 }
  0x98   :  { %v301_v60 = vpop.f32.mrf.mxu2  ;;  %1570 = vmatmul.bf16.vlgmr.msra.gmra.mxu0 %v518_v56  ;;  %v2619_v56 = vld [vmem:[%s3397_s3 + $0x250] sm:$0xff] }
  0x99   :  { %v302_v61 = vadd.f32 %v301_v60, %v68_v50  ;;  %v315_v62 = vpop.f32.mrf.mxu3  ;;  %1584 = vmatmul.bf16.vlgmr.msra.gmra.mxu1 %v519_v26  ;;  %1674 = vmatpush.bf16.msra.mxu0 %v2616_v55  ;;  %v327_v63 = vpop.f32.mrf.mxu0  ;;  %v2637_v50 = vld [vmem:[%s3397_s3 + $0x2e0] sm:$0xff]  ;;  %v75_v26 = vperm.slane %v3214_v43, 1 }
  0x9a   :  { %v316_v1 = vadd.f32 %v315_v62, %v69_v52  ;;  %1688 = vmatpush.bf16.msra.mxu1 %v2624_v57  ;;  %v341_v3 = vpop.f32.mrf.mxu1  ;;  %v328_v15 = vadd.f32 %v327_v63, %v70_v2  ;;  %v2610_v62 = vld [vmem:[%s3397_s3 + $0x208] sm:$0xff] }
  0x9b   :  { %v504_v6 = vmax.f32 %v302_v61, 0.0  ;;  %v342_v17 = vadd.f32 %v341_v3, %v71_v7  ;;  %v2636_v61 = vld [vmem:[%s3397_s3 + $0x2d8] sm:$0xff] }
  0x9c   :  { %v505_v9 = vmax.f32 %v316_v1, 0.0  ;;  %v490_v25 = vmax.f32 %v328_v15, 0.0  ;;  %v2618_v1 = vld [vmem:[%s3397_s3 + $0x248] sm:$0xff]  ;;  %v2648_v15 = vld [vmem:[%s3397_s3 + $0x338] sm:$0xff] }
  0x9d   :  { %v520_v11 = vpack.c.bf16 %v504_v6, %v488_v5  ;;  %1675 = vmatpush.bf16.msra.mxu0 %v2615_v0  ;;  %v491_v31 = vmax.f32 %v342_v17, 0.0  ;;  %v76_v5 = vperm.slane %v3214_v43, 2  ;;  %v2656_v17 = vld [vmem:[%s3397_s3 + $0x378] sm:$0xff] }
  0x9e   :  { %v521_v14 = vpack.c.bf16 %v505_v9, %v489_v8  ;;  %1689 = vmatpush.bf16.msra.mxu1 %v2623_v4  ;;  %v2627_v4 = vld [vmem:[%s3397_s3 + $0x290] sm:$0xff]  ;;  %v2609_v9 = vld [vmem:[%s3397_s3 + $0x200] sm:$0xff] }
  0x9f   :  { %1598 = vmatmul.bf16.vlgmr.msra.gmra.mxu2 %v520_v11  ;;  %v2635_v8 = vld [vmem:[%s3397_s3 + $0x2d0] sm:$0xff]  ;;  %v77_v11 = vperm.slane %v3214_v43, 3 }
  0xa0   :  { %1612 = vmatmul.bf16.vlgmr.msra.gmra.mxu3 %v521_v14  ;;  %1702 = vmatpush.bf16.msra.mxu2 %v2632_v10  ;;  %v355_v18 = vpop.f32.mrf.mxu2  ;;  %v2617_v14 = vld [vmem:[%s3397_s3 + $0x240] sm:$0xff] }
  0xa1   :  { %1716 = vmatpush.bf16.msra.mxu3 %v2640_v12  ;;  %v369_v21 = vpop.f32.mrf.mxu3  ;;  %1676 = vmatpush.bf16.msra.mxu0 %v2614_v13  ;;  %v329_v22 = vpop.f32.mrf.mxu0  ;;  %v356_v35 = vadd.f32 %v355_v18, %v72_v20 }
  0xa2   :  { %1690 = vmatpush.bf16.msra.mxu1 %v2622_v16  ;;  %v330_v28 = vadd.f32 %v329_v22, %v70_v2  ;;  %v343_v29 = vpop.f32.mrf.mxu1  ;;  %v370_v39 = vadd.f32 %v369_v21, %v73_v27 }
  0xa3   :  { %v344_v32 = vadd.f32 %v343_v29, %v71_v7  ;;  %v492_v46 = vmax.f32 %v356_v35, 0.0  ;;  %v2633_v35 = vld [vmem:[%s3397_s3 + $0x2c0] sm:$0xff] }
  0xa4   :  { %v506_v33 = vmax.f32 %v330_v28, 0.0  ;;  %1703 = vmatpush.bf16.msra.mxu2 %v2631_v19  ;;  %v493_v52 = vmax.f32 %v370_v39, 0.0  ;;  %v2655_v28 = vld [vmem:[%s3397_s3 + $0x370] sm:$0xff]  ;;  %v2672_v39 = vld [vmem:[%s3397_s3 + $0x3f8] sm:$0xff] }
  0xa5   :  { %1717 = vmatpush.bf16.msra.mxu3 %v2639_v23  ;;  %v507_v37 = vmax.f32 %v344_v32, 0.0  ;;  %1677 = vmatpush.bf16.msra.mxu0 %v2613_v24  ;;  %v2634_v23 = vld [vmem:[%s3397_s3 + $0x2c8] sm:$0xff] }
  0xa6   :  { %v522_v40 = vpack.c.bf16 %v506_v33, %v490_v25  ;;  %1691 = vmatpush.bf16.msra.mxu1 %v2621_v30 }
  0xa7   :  { %v523_v42 = vpack.c.bf16 %v507_v37, %v491_v31  ;;  %v2625_v31 = vld [vmem:[%s3397_s3 + $0x280] sm:$0xff]  ;;  %v2664_v37 = vld [vmem:[%s3397_s3 + $0x3b8] sm:$0xff] }
  0xa8   :  { %1704 = vmatpush.bf16.msra.mxu2 %v2630_v34  ;;  %v357_v44 = vpop.f32.mrf.mxu2  ;;  %1626 = vmatmul.bf16.vlgmr.msrb.gmra.mxu0 %v522_v40  ;;  %v2646_v40 = vld [vmem:[%s3397_s3 + $0x328] sm:$0xff] }
  0xa9   :  { %1718 = vmatpush.bf16.msra.mxu3 %v2638_v36  ;;  %v358_v47 = vadd.f32 %v357_v44, %v72_v20  ;;  %v371_v48 = vpop.f32.mrf.mxu3  ;;  %1678 = vmatpush.bf16.msra.mxu0 %v2612_v38  ;;  %v383_v49 = vpop.f32.mrf.mxu0  ;;  %v2626_v20 = vld [vmem:[%s3397_s3 + $0x288] sm:$0xff] }
  0xaa   :  { %v372_v53 = vadd.f32 %v371_v48, %v73_v27  ;;  %1692 = vmatpush.bf16.msra.mxu1 %v2620_v41  ;;  %v397_v55 = vpop.f32.mrf.mxu1  ;;  %v384_v0 = vadd.f32 %v383_v49, %v74_v54  ;;  %v2647_v27 = vld [vmem:[%s3397_s3 + $0x330] sm:$0xff] }
  0xab   :  { %v508_v57 = vmax.f32 %v358_v47, 0.0  ;;  %1640 = vmatmul.bf16.vlgmr.msrb.gmra.mxu1 %v523_v42  ;;  %v398_v2 = vadd.f32 %v397_v55, %v75_v26  ;;  %v2654_v42 = vld [vmem:[%s3397_s3 + $0x368] sm:$0xff]  ;;  %v2663_v47 = vld [vmem:[%s3397_s3 + $0x3b0] sm:$0xff]  ;;  %v2644_v55 = vld [vmem:[%s3397_s3 + $0x318] sm:$0xff] }
  0xac   :  { %v509_v58 = vmax.f32 %v372_v53, 0.0  ;;  %1705 = vmatpush.bf16.msra.mxu2 %v2629_v45  ;;  %v494_v10 = vmax.f32 %v384_v0, 0.0  ;;  %v2662_v53 = vld [vmem:[%s3397_s3 + $0x3a8] sm:$0xff]  ;;  %v2651_v0 = vld [vmem:[%s3397_s3 + $0x350] sm:$0xff] }
  0xad   :  { %v524_v60 = vpack.c.bf16 %v508_v57, %v492_v46  ;;  %1719 = vmatpush.bf16.msra.mxu3 %v2637_v50  ;;  %1679 = vmatpush.bf16.msra.mxu0 %v2611_v51  ;;  %v495_v18 = vmax.f32 %v398_v2, 0.0  ;;  %v2671_v50 = vld [vmem:[%s3397_s3 + $0x3f0] sm:$0xff]  ;;  %v2645_v51 = vld [vmem:[%s3397_s3 + $0x320] sm:$0xff] }
  0xae   :  { %v525_v63 = vpack.c.bf16 %v509_v58, %v493_v52  ;;  %1693 = vmatpush.bf16.msra.mxu1 %v2619_v56  ;;  %v2653_v52 = vld [vmem:[%s3397_s3 + $0x360] sm:$0xff]  ;;  %v2652_v56 = vld [vmem:[%s3397_s3 + $0x358] sm:$0xff]  ;;  %v78_v58 = vperm.slane %v3214_v43, 4 }
  0xaf   :  { %1654 = vmatmul.bf16.vlgmr.msrb.gmra.mxu2 %v524_v60 }
  0xb0   :  { %1668 = vmatmul.bf16.vlgmr.msrb.gmra.mxu3 %v525_v63  ;;  %1706 = vmatpush.bf16.msra.mxu2 %v2628_v59  ;;  %v411_v3 = vpop.f32.mrf.mxu2  ;;  %v79_v59 = vperm.slane %v3214_v43, 5 }
  0xb1   :  { %1720 = vmatpush.bf16.msra.mxu3 %v2636_v61  ;;  %v425_v6 = vpop.f32.mrf.mxu3  ;;  %1680 = vmatpush.bf16.msra.mxu0 %v2610_v62  ;;  %v385_v7 = vpop.f32.mrf.mxu0  ;;  %v412_v21 = vadd.f32 %v411_v3, %v76_v5  ;;  %v2669_v61 = vld [vmem:[%s3397_s3 + $0x3e0] sm:$0xff]  ;;  %v2643_v62 = vld [vmem:[%s3397_s3 + $0x310] sm:$0xff]  ;;  %v2660_v3 = vld [vmem:[%s3397_s3 + $0x398] sm:$0xff] }
  0xb2   :  { %1694 = vmatpush.bf16.msra.mxu1 %v2618_v1  ;;  %v386_v12 = vadd.f32 %v385_v7, %v74_v54  ;;  %v399_v13 = vpop.f32.mrf.mxu1  ;;  %v426_v24 = vadd.f32 %v425_v6, %v77_v11  ;;  %v2670_v54 = vld [vmem:[%s3397_s3 + $0x3e8] sm:$0xff]  ;;  %v2668_v6 = vld [vmem:[%s3397_s3 + $0x3d8] sm:$0xff] }
  0xb3   :  { %v400_v16 = vadd.f32 %v399_v13, %v75_v26  ;;  %v496_v32 = vmax.f32 %v412_v21, 0.0  ;;  %v2661_v26 = vld [vmem:[%s3397_s3 + $0x3a0] sm:$0xff]  ;;  %v80_v13 = vperm.slane %v3214_v43, 6 }
  0xb4   :  { %v510_v19 = vmax.f32 %v386_v12, 0.0  ;;  %1707 = vmatpush.bf16.msra.mxu2 %v2627_v4  ;;  %v497_v36 = vmax.f32 %v426_v24, 0.0  ;;  %v2659_v12 = vld [vmem:[%s3397_s3 + $0x390] sm:$0xff] }
  0xb5   :  { %1721 = vmatpush.bf16.msra.mxu3 %v2635_v8  ;;  %v511_v22 = vmax.f32 %v400_v16, 0.0  ;;  %1681 = vmatpush.bf16.msra.mxu0 %v2609_v9  ;;  %v2642_v8 = vld [vmem:[%s3397_s3 + $0x308] sm:$0xff]  ;;  %v2667_v16 = vld [vmem:[%s3397_s3 + $0x3d0] sm:$0xff] }
  0xb6   :  { %v526_v25 = vpack.c.bf16 %v510_v19, %v494_v10  ;;  %1695 = vmatpush.bf16.msra.mxu1 %v2617_v14  ;;  %v2650_v9 = vld [vmem:[%s3397_s3 + $0x348] sm:$0xff] }
  0xb7   :  { %v527_v29 = vpack.c.bf16 %v511_v22, %v495_v18  ;;  %v81_v18 = vperm.slane %v3214_v43, 7  ;;  %v2666_v43 = vld [vmem:[%s3397_s3 + $0x3c8] sm:$0xff] }
  0xb8   :  { %1708 = vmatpush.bf16.msra.mxu2 %v2626_v20  ;;  %v413_v30 = vpop.f32.mrf.mxu2  ;;  %1682 = vmatmul.bf16.vlgmr.msra.gmra.mxu0 %v526_v25  ;;  %v2649_v20 = vld [vmem:[%s3397_s3 + $0x340] sm:$0xff] }
  0xb9   :  { %1730 = vmatpush.bf16.msrb.mxu0 %v2648_v15  ;;  %1722 = vmatpush.bf16.msra.mxu3 %v2634_v23  ;;  %v414_v33 = vadd.f32 %v413_v30, %v76_v5  ;;  %v427_v34 = vpop.f32.mrf.mxu3  ;;  %v439_v45 = vpop.f32.mrf.mxu0  ;;  %v2658_v23 = vld [vmem:[%s3397_s3 + $0x388] sm:$0xff]  ;;  %v2657_v30 = vld [vmem:[%s3397_s3 + $0x380] sm:$0xff] }
  0xba   :  { %1744 = vmatpush.bf16.msrb.mxu1 %v2656_v17  ;;  %v428_v38 = vadd.f32 %v427_v34, %v77_v11  ;;  %v453_v48 = vpop.f32.mrf.mxu1  ;;  %v440_v2 = vadd.f32 %v439_v45, %v78_v58  ;;  %v2641_v17 = vld [vmem:[%s3397_s3 + $0x300] sm:$0xff] }
  0xbb   :  { %v512_v41 = vmax.f32 %v414_v33, 0.0  ;;  %1696 = vmatmul.bf16.vlgmr.msra.gmra.mxu1 %v527_v29  ;;  %v454_v5 = vadd.f32 %v453_v48, %v79_v59  ;;  %v2665_v33 = vld [vmem:[%s3397_s3 + $0x3c0] sm:$0xff] }
  0xbc   :  { %v513_v44 = vmax.f32 %v428_v38, 0.0  ;;  %1709 = vmatpush.bf16.msra.mxu2 %v2625_v31  ;;  %v498_v10 = vmax.f32 %v440_v2, 0.0  ;;  %v2674_v45 = vld [vmem:[%s3398_s4] ss:$0 sm:$0xff] }
  0xbd   :  { %1731 = vmatpush.bf16.msrb.mxu0 %v2647_v27  ;;  %v528_v46 = vpack.c.bf16 %v512_v41, %v496_v32  ;;  %1723 = vmatpush.bf16.msra.mxu3 %v2633_v35  ;;  %v499_v14 = vmax.f32 %v454_v5, 0.0 }
  0xbe   :  { %1745 = vmatpush.bf16.msrb.mxu1 %v2655_v28  ;;  %v529_v49 = vpack.c.bf16 %v513_v44, %v497_v36 }
  0xbf   :  { %1710 = vmatmul.bf16.vlgmr.msra.gmra.mxu2 %v528_v46 }
  0xc0   :  { %1758 = vmatpush.bf16.msrb.mxu2 %v2664_v37  ;;  %1724 = vmatmul.bf16.vlgmr.msra.gmra.mxu3 %v529_v49  ;;  %v467_v57 = vpop.f32.mrf.mxu2 }
  0xc1   :  { %1772 = vmatpush.bf16.msrb.mxu3 %v2672_v39  ;;  %1732 = vmatpush.bf16.msrb.mxu0 %v2646_v40  ;;  %v481_v60 = vpop.f32.mrf.mxu3  ;;  %v441_v63 = vpop.f32.mrf.mxu0  ;;  %v468_v24 = vadd.f32 %v467_v57, %v80_v13 }
  0xc2   :  { %1746 = vmatpush.bf16.msrb.mxu1 %v2654_v42  ;;  %v455_v1 = vpop.f32.mrf.mxu1  ;;  %v442_v4 = vadd.f32 %v441_v63, %v78_v58  ;;  %v482_v28 = vadd.f32 %v481_v60, %v81_v18 }
  0xc3   :  { %v456_v7 = vadd.f32 %v455_v1, %v79_v59  ;;  %v500_v31 = vmax.f32 %v468_v24, 0.0 }
  0xc4   :  { %1759 = vmatpush.bf16.msrb.mxu2 %v2663_v47  ;;  %v514_v11 = vmax.f32 %v442_v4, 0.0  ;;  %v501_v34 = vmax.f32 %v482_v28, 0.0 }
  0xc5   :  { %1773 = vmatpush.bf16.msrb.mxu3 %v2671_v50  ;;  %1733 = vmatpush.bf16.msrb.mxu0 %v2645_v51  ;;  %v515_v15 = vmax.f32 %v456_v7, 0.0 }
  0xc6   :  { %1747 = vmatpush.bf16.msrb.mxu1 %v2653_v52  ;;  %v530_v22 = vpack.c.bf16 %v514_v11, %v498_v10 }
  0xc7   :  { %v531_v27 = vpack.c.bf16 %v515_v15, %v499_v14 }
  0xc8   :  { %1760 = vmatpush.bf16.msrb.mxu2 %v2662_v53  ;;  %v469_v19 = vpop.f32.mrf.mxu2 }
  0xc9   :  { %1774 = vmatpush.bf16.msrb.mxu3 %v2670_v54  ;;  %1734 = vmatpush.bf16.msrb.mxu0 %v2644_v55  ;;  %v483_v21 = vpop.f32.mrf.mxu3  ;;  %v470_v25 = vadd.f32 %v469_v19, %v80_v13 }
  0xca   :  { %1748 = vmatpush.bf16.msrb.mxu1 %v2652_v56  ;;  %v484_v29 = vadd.f32 %v483_v21, %v81_v18 }
  0xcb   :  { %v516_v32 = vmax.f32 %v470_v25, 0.0 }
  0xcc   :  { %1761 = vmatpush.bf16.msrb.mxu2 %v2661_v26  ;;  %v517_v35 = vmax.f32 %v484_v29, 0.0 }
  0xcd   :  { %1775 = vmatpush.bf16.msrb.mxu3 %v2669_v61  ;;  %1735 = vmatpush.bf16.msrb.mxu0 %v2643_v62  ;;  %v532_v37 = vpack.c.bf16 %v516_v32, %v500_v31 }
  0xce   :  { %1749 = vmatpush.bf16.msrb.mxu1 %v2651_v0  ;;  %v533_v36 = vpack.c.bf16 %v517_v35, %v501_v34 }
  0xd0   :  { %1762 = vmatpush.bf16.msrb.mxu2 %v2660_v3 }
  0xd1   :  { %1776 = vmatpush.bf16.msrb.mxu3 %v2668_v6  ;;  %1736 = vmatpush.bf16.msrb.mxu0 %v2642_v8 }
  0xd2   :  { %1750 = vmatpush.bf16.msrb.mxu1 %v2650_v9 }
  0xd4   :  { %1763 = vmatpush.bf16.msrb.mxu2 %v2659_v12 }
  0xd5   :  { %1777 = vmatpush.bf16.msrb.mxu3 %v2667_v16  ;;  %1737 = vmatpush.bf16.msrb.mxu0 %v2641_v17 }
  0xd6   :  { %1751 = vmatpush.bf16.msrb.mxu1 %v2649_v20 }
  0xd8   :  { %1764 = vmatpush.bf16.msrb.mxu2 %v2658_v23  ;;  %1738 = vmatmul.bf16.vlgmr.msrb.gmra.mxu0 %v530_v22 }
  0xd9   :  { %1778 = vmatpush.bf16.msrb.mxu3 %v2666_v43  ;;  %1752 = vmatmul.bf16.vlgmr.msrb.gmra.mxu1 %v531_v27 }
  0xdc   :  { %1765 = vmatpush.bf16.msrb.mxu2 %v2657_v30 }
  0xdd   :  { %1779 = vmatpush.bf16.msrb.mxu3 %v2665_v33  ;;  %v2683_v33 = vld [vmem:[%s3396_s0] sm:$0xff] }
  0xdf   :  { %1766 = vmatmul.bf16.vlgmr.msrb.gmra.mxu2 %v532_v37 }
  0xe0   :  { %1780 = vmatmul.bf16.vlgmr.msrb.gmra.mxu3 %v533_v36 }
 0x115   :  { %v1571_v38 = vpop.f32.mrf.mxu0 }
 0x116   :  { %v1585_v39 = vpop.f32.mrf.mxu1  ;;  %v1572_v49 = vadd.f32 %v2674_v45, %v1571_v38 }
 0x118   :  { %v1586_v51 = vadd.f32 %v1585_v39, %v1572_v49 }
 0x11d   :  { %v1573_v40 = vpop.f32.mrf.mxu0 }
 0x11e   :  { %v1587_v44 = vpop.f32.mrf.mxu1  ;;  %v1574_v55 = vadd.f32 %v2674_v45, %v1573_v40 }
 0x120   :  { %v1588_v58 = vadd.f32 %v1587_v44, %v1574_v55 }
 0x122   :  { %v1599_v41 = vpop.f32.mrf.mxu2 }
 0x123   :  { %v1613_v42 = vpop.f32.mrf.mxu3  ;;  %v1600_v52 = vadd.f32 %v1599_v41, %v1586_v51 }
 0x125   :  { %v1627_v46 = vpop.f32.mrf.mxu0  ;;  %v1614_v57 = vadd.f32 %v1613_v42, %v1600_v52  ;;  %v2684_v42 = vld [vmem:[%s3396_s0 + $0x8] sm:$0xff] }
 0x127   :  { %v1628_v59 = vadd.f32 %v1627_v46, %v1614_v57  ;;  %v2685_v46 = vmov 32.0  }
 0x128   :  { %v1641_v50 = vpop.f32.mrf.mxu1  ;;  %2677 = vrcp.f32 %v2685_v46 }
 0x129   :  { %v1642_v63 = vadd.f32 %v1641_v50, %v1628_v59 }
 0x12a   :  { %v1601_v47 = vpop.f32.mrf.mxu2 }
 0x12b   :  { %v1615_v48 = vpop.f32.mrf.mxu3  ;;  %v1602_v60 = vadd.f32 %v1601_v47, %v1588_v58 }
 0x12d   :  { %v1629_v53 = vpop.f32.mrf.mxu0  ;;  %v1616_v0 = vadd.f32 %v1615_v48, %v1602_v60 }
 0x12e   :  { %v2678_v47 = vpop.eup %2677 }
 0x12f   :  { %v1630_v3 = vadd.f32 %v1629_v53, %v1616_v0  ;;  %v1795_v48 = vmul.f32 32.0, %v2678_v47  ;;  %vm1799_vm1 = vweird.f32 %v2678_v47 }
 0x130   :  { %v1643_v26 = vpop.f32.mrf.mxu1 }
 0x131   :  { %v1644_v6 = vadd.f32 %v1643_v26, %v1630_v3  ;;  %v1796_v49 = vsub.f32 1.0, %v1795_v48 }
 0x132   :  { %v1655_v54 = vpop.f32.mrf.mxu2 }
 0x133   :  { %v1669_v56 = vpop.f32.mrf.mxu3  ;;  %v1656_v2 = vadd.f32 %v1655_v54, %v1642_v63  ;;  %v1797_v50 = vmul.f32 %v2678_v47, %v1796_v49 }
 0x135   :  { %v1683_v61 = vpop.f32.mrf.mxu0  ;;  %v1670_v5 = vadd.f32 %v1669_v56, %v1656_v2  ;;  %v1798_v51 = vadd.f32 %v2678_v47, %v1797_v50 }
 0x137   :  { %v1684_v9 = vadd.f32 %v1683_v61, %v1670_v5  ;;  %v1800_v52 = vsel %vm1799_vm1, %v2678_v47, %v1798_v51 }
 0x138   :  { %v1697_v4 = vpop.f32.mrf.mxu1 }
 0x139   :  { %v1698_v12 = vadd.f32 %v1697_v4, %v1684_v9 }
 0x13a   :  { %v1657_v62 = vpop.f32.mrf.mxu2 }
 0x13b   :  { %v1671_v1 = vpop.f32.mrf.mxu3  ;;  %v1658_v10 = vadd.f32 %v1657_v62, %v1644_v6 }
 0x13d   :  { %v1685_v7 = vpop.f32.mrf.mxu0  ;;  %v1672_v13 = vadd.f32 %v1671_v1, %v1658_v10 }
 0x13f   :  { %v1686_v17 = vadd.f32 %v1685_v7, %v1672_v13 }
 0x140   :  { %v1699_v14 = vpop.f32.mrf.mxu1 }
 0x141   :  { %v1700_v21 = vadd.f32 %v1699_v14, %v1686_v17 }
 0x142   :  { %v1711_v8 = vpop.f32.mrf.mxu2 }
 0x143   :  { %v1725_v11 = vpop.f32.mrf.mxu3  ;;  %v1712_v15 = vadd.f32 %v1711_v8, %v1698_v12  ;;  %v2675_v12 = vld [vmem:[%s3400_s5] ss:$0 sm:$0xff] }
 0x145   :  { %v1726_v19 = vadd.f32 %v1725_v11, %v1712_v15  ;;  %v2676_v15 = vld [vmem:[%s3401_s6] ss:$0 sm:$0xff] }
 0x14a   :  { %v1713_v18 = vpop.f32.mrf.mxu2 }
 0x14b   :  { %v1727_v20 = vpop.f32.mrf.mxu3  ;;  %v1714_v24 = vadd.f32 %v1713_v18, %v1700_v21 }
 0x14d   :  { %v1728_v28 = vadd.f32 %v1727_v20, %v1714_v24 }
 0x155   :  { %v1739_v16 = vpop.f32.mrf.mxu0 }
 0x156   :  { %v1740_v22 = vadd.f32 %v1739_v16, %v1726_v19  ;;  %v1753_v23 = vpop.f32.mrf.mxu1 }
 0x158   :  { %v1754_v25 = vadd.f32 %v1753_v23, %v1740_v22 }
 0x15d   :  { %v1741_v27 = vpop.f32.mrf.mxu0 }
 0x15e   :  { %v1742_v31 = vadd.f32 %v1741_v27, %v1728_v28  ;;  %v1755_v35 = vpop.f32.mrf.mxu1 }
 0x160   :  { %v1756_v37 = vadd.f32 %v1755_v35, %v1742_v31 }
 0x162   :  { %v1767_v43 = vpop.f32.mrf.mxu2 }
 0x163   :  { %v1768_v29 = vadd.f32 %v1767_v43, %v1754_v25  ;;  %v1781_v30 = vpop.f32.mrf.mxu3 }
 0x165   :  { %v1782_v32 = vadd.f32 %v1781_v30, %v1768_v29 }
 0x167   :  { %v1786_v34 = vadd.f32 %v2683_v33, %v1782_v32 }
 0x169   :  { %v1788_v36 = vsel %vm258_vm0, %v1786_v34, 0.0 }
 0x16a   :  { %v1769_v38 = vpop.f32.mrf.mxu2  ;;  %1789 = vadd.xlane.f32.xlu0 %v1788_v36 }
 0x16b   :  { %v1770_v39 = vadd.f32 %v1769_v38, %v1756_v37  ;;  %v1783_v40 = vpop.f32.mrf.mxu3 }
 0x16d   :  { %v1784_v41 = vadd.f32 %v1783_v40, %v1770_v39 }
 0x16f   :  { %v1787_v44 = vadd.f32 %v2684_v42, %v1784_v41 }
 0x171   :  { %v1791_v45 = vsel %vm258_vm0, %v1787_v44, 0.0 }
 0x172   :  { %1792 = vadd.xlane.f32.xlu0 %v1791_v45 }
 0x1dd   :  { %v1790_v53 = vpop.xlane.xlu0 %1789 }
 0x1de   :  { %v1801_v54 = vmul.f32 %v1800_v52, %v1790_v53 }
 0x1e0   :  { %v1803_v55 = vsub.f32 %v1786_v34, %v1801_v54 }
 0x1e2   :  { %v1805_v56 = vmul.f32 %v1803_v55, %v1803_v55 }
 0x1e4   :  { %v1807_v57 = vsel %vm258_vm0, %v1805_v56, 0.0 }
 0x1e5   :  { %1808 = vadd.xlane.f32.xlu1 %v1807_v57  ;;  %v1793_v58 = vpop.xlane.xlu0 %1792 }
 0x1e6   :  { %v1802_v26 = vmul.f32 %v1800_v52, %v1793_v58 }
 0x1e8   :  { %v1804_v59 = vsub.f32 %v1787_v44, %v1802_v26 }
 0x1ea   :  { %v1806_v60 = vmul.f32 %v1804_v59, %v1804_v59 }
 0x1ec   :  { %v1810_v61 = vsel %vm258_vm0, %v1806_v60, 0.0 }
 0x1ed   :  { %1811 = vadd.xlane.f32.xlu1 %v1810_v61 }
 0x258   :  { %v1809_v62 = vpop.xlane.xlu1 %1808 }
 0x259   :  { %v1813_v63 = vmul.f32 %v1809_v62, %v1800_v52 }
 0x25b   :  { %v1815_v0 = vadd.f32 1e-05, %v1813_v63 }
 0x25d   :  { %2679 = vrsqrt.f32 %v1815_v0  ;;  %vm1823_vm3 = vweird.f32 %v1815_v0 }
 0x260   :  { %v1812_v1 = vpop.xlane.xlu1 %1811 }
 0x261   :  { %v1814_v2 = vmul.f32 %v1812_v1, %v1800_v52 }
 0x263   :  { %v2680_v3 = vpop.eup %2679  ;;  %v1816_v4 = vadd.f32 1e-05, %v1814_v2 }
 0x264   :  { %v1818_v5 = vmul.f32 %v2680_v3, %v1815_v0  ;;  %vm1824_vm2 = vweird.f32 %v2680_v3 }
 0x265   :  { %2681 = vrsqrt.f32 %v1816_v4  ;;  %vm1825_vm4 = vmor %vm1823_vm3, %vm1824_vm2  ;;  %vm1833_vm6 = vweird.f32 %v1816_v4 }
 0x266   :  { %v1819_v6 = vmul.f32 %v2680_v3, %v1818_v5 }
 0x268   :  { %v1820_v7 = vmul.f32 0.5, %v1819_v6 }
 0x26a   :  { %v1821_v8 = vsub.f32 1.5, %v1820_v7 }
 0x26b   :  { %v2682_v9 = vpop.eup %2681 }
 0x26c   :  { %v1822_v10 = vmul.f32 %v2680_v3, %v1821_v8  ;;  %v1828_v11 = vmul.f32 %v2682_v9, %v1816_v4  ;;  %vm1834_vm5 = vweird.f32 %v2682_v9 }
 0x26d   :  { %vm1835_vm7 = vmor %vm1833_vm6, %vm1834_vm5 }
 0x26e   :  { %v1826_v13 = vsel %vm1825_vm4, %v2680_v3, %v1822_v10  ;;  %v1829_v14 = vmul.f32 %v2682_v9, %v1828_v11 }
 0x26f   :  { %v1837_v16 = vmul.f32 %v1826_v13, %v1803_v55 }
 0x270   :  { %v1830_v17 = vmul.f32 0.5, %v1829_v14 }
 0x271   :  { %v1843_v18 = vmul.f32 %v2675_v12, %v1837_v16 }
 0x272   :  { %v1831_v19 = vsub.f32 1.5, %v1830_v17 }
 0x273   :  { %v1849_v20 = vadd.f32 %v2676_v15, %v1843_v18 }
 0x274   :  { %v1832_v21 = vmul.f32 %v2682_v9, %v1831_v19 }
 0x275   :  { %1851 = vst.msk [vmem:[%s3402_s7] sm:$0xff] %vm258_vm0, %v1849_v20 }
 0x276   :  { %v1836_v22 = vsel %vm1835_vm7, %v2682_v9, %v1832_v21 }
 0x277   :  { %v1838_v23 = vmul.f32 %v1836_v22, %v1804_v59 }
 0x279   :  { %v1844_v24 = vmul.f32 %v2675_v12, %v1838_v23 }
 0x27b   :  { %v1850_v25 = vadd.f32 %v2676_v15, %v1844_v24 }
 0x27d   :  { %1852 = vst.msk [vmem:[%s3402_s7 + $0x8] sm:$0xff] %vm258_vm0, %v1850_v25 }

// kernel: encoder_decoder_transformer.22
= control target key start
LH: loop header
LB: loop body
LE: loop exit
PB: predicated region body
PF: predicated region fallthrough
CT: control target
= control target key end

     0   :  { %vm259_vm0 = vcmask 261120   ;;  %s3439_s0 = inlined_call_operand.vmem [shape: f32[16,32], index: 0, kind: input, shape index: {}]   ;;  %s3440_s1 = inlined_call_operand.vmem [shape: bf16[32,2048], index: 1, kind: input, shape index: {}]   ;;  %s3441_s2 = inlined_call_operand.vmem [shape: f32[1,2048], index: 2, kind: input, shape index: {}]   ;;  %s3442_s3 = inlined_call_operand.vmem [shape: bf16[2048,32], index: 3, kind: input, shape index: {}]   ;;  %s3443_s4 = inlined_call_operand.vmem [shape: f32[1,32], index: 4, kind: input, shape index: {}]   ;;  %s3444_s5 = inlined_call_operand.vmem [shape: f32[1,32], index: 5, kind: input, shape index: {}]   ;;  %s3445_s6 = inlined_call_operand.vmem [shape: f32[1,32], index: 6, kind: input, shape index: {}]   ;;  %s3446_s7 = inlined_call_operand.hbm [shape: f32[16,32], index: 7, kind: output, shape index: {}]  }
   0x1   :  { %v1938_v0 = vld [vmem:[%s3440_s1 + $0x80] sm:$0xf]  ;;  %v2544_v2 = vld [vmem:[%s3440_s1 + $0x84] sm:$0xf]  ;;  %v1946_v5 = vld [vmem:[%s3440_s1 + $0x88] sm:$0xf] }
   0x2   :  { %v2552_v1 = vld [vmem:[%s3440_s1 + $0xbc] sm:$0xf0]  ;;  %v1940_v4 = vld [vmem:[%s3440_s1 + $0xc0] sm:$0xf0]  ;;  %v2553_v6 = vld [vmem:[%s3440_s1 + $0xc4] sm:$0xf0] }
   0x3   :  { %v1939_v3 = vor.u32 %v2552_v1, %v1938_v0  ;;  %v1943_v7 = vor.u32 %v2544_v2, %v1940_v4  ;;  %v1947_v8 = vor.u32 %v2553_v6, %v1946_v5  ;;  %v2545_v9 = vld [vmem:[%s3440_s1 + $0x8c] sm:$0xf]  ;;  %v1874_v11 = vld [vmem:[%s3440_s1] sm:$0xf]  ;;  %v2528_v14 = vld [vmem:[%s3440_s1 + $0x4] sm:$0xf] }
   0x4   :  { %v1948_v10 = vld [vmem:[%s3440_s1 + $0xc8] sm:$0xf0]  ;;  %v2536_v13 = vld [vmem:[%s3440_s1 + $0x3c] sm:$0xf0]  ;;  %v1876_v15 = vld [vmem:[%s3440_s1 + $0x40] sm:$0xf0] }
   0x5   :  { %269 = vmatpush.bf16.msra.mxu0 %v1939_v3  ;;  %v1951_v12 = vor.u32 %v2545_v9, %v1948_v10  ;;  %283 = vmatpush.bf16.msra.mxu1 %v1943_v7  ;;  %v1875_v16 = vor.u32 %v2536_v13, %v1874_v11  ;;  %v1879_v17 = vor.u32 %v2528_v14, %v1876_v15  ;;  %v1882_v18 = vld [vmem:[%s3440_s1 + $0x8] sm:$0xf]  ;;  %v2529_v20 = vld [vmem:[%s3440_s1 + $0xc] sm:$0xf]  ;;  %v28_v23 = vld [vmem:[%s3439_s0] sm:$0xff] }
   0x6   :  { %297 = vmatpush.bf16.msra.mxu2 %v1947_v8  ;;  %v2537_v19 = vld [vmem:[%s3440_s1 + $0x44] sm:$0xf0]  ;;  %v1884_v22 = vld [vmem:[%s3440_s1 + $0x48] sm:$0xf0]  ;;  %v1954_v27 = vld [vmem:[%s3440_s1 + $0x90] sm:$0xf] }
   0x7   :  { %311 = vmatpush.bf16.msra.mxu3 %v1951_v12  ;;  %v1883_v21 = vor.u32 %v2537_v19, %v1882_v18  ;;  %v29_v24 = vld [vmem:[%s3439_s0 + $0x8] sm:$0xff]  ;;  %v1887_v25 = vor.u32 %v2529_v20, %v1884_v22  ;;  %v2554_v28 = vld [vmem:[%s3440_s1 + $0xcc] sm:$0xf0]  ;;  %v1962_v29 = vld [vmem:[%s3440_s1 + $0x98] sm:$0xf] }
   0x8   :  { %v2827_v26 = vpack.c.bf16 %v29_v24, %v28_v23  ;;  %v1955_v30 = vor.u32 %v2554_v28, %v1954_v27  ;;  %v2555_v31 = vld [vmem:[%s3440_s1 + $0xd4] sm:$0xf0]  ;;  %v2547_v32 = vld [vmem:[%s3440_s1 + $0x9c] sm:$0xf]  ;;  %v2546_v35 = vld [vmem:[%s3440_s1 + $0x94] sm:$0xf] }
   0x9   :  { %270 = vmatpush.bf16.msra.mxu0 %v1875_v16  ;;  %v1964_v33 = vld [vmem:[%s3440_s1 + $0xd8] sm:$0xf0]  ;;  %284 = vmatpush.bf16.msra.mxu1 %v1879_v17  ;;  %v1963_v34 = vor.u32 %v2555_v31, %v1962_v29  ;;  %v1956_v36 = vld [vmem:[%s3440_s1 + $0xd0] sm:$0xf0]  ;;  %v1890_v37 = vld [vmem:[%s3440_s1 + $0x10] sm:$0xf] }
   0xa   :  { %298 = vmatpush.bf16.msra.mxu2 %v1883_v21  ;;  %v1967_v38 = vor.u32 %v2547_v32, %v1964_v33  ;;  %v1959_v39 = vor.u32 %v2546_v35, %v1956_v36  ;;  %v2538_v40 = vld [vmem:[%s3440_s1 + $0x4c] sm:$0xf0]  ;;  %v1898_v41 = vld [vmem:[%s3440_s1 + $0x18] sm:$0xf]  ;;  %v2531_v45 = vld [vmem:[%s3440_s1 + $0x1c] sm:$0xf] }
   0xb   :  { %312 = vmatpush.bf16.msra.mxu3 %v1887_v25  ;;  %v2539_v42 = vld [vmem:[%s3440_s1 + $0x54] sm:$0xf0]  ;;  %v1891_v43 = vor.u32 %v2538_v40, %v1890_v37  ;;  %v1900_v46 = vld [vmem:[%s3440_s1 + $0x58] sm:$0xf0]  ;;  %v2530_v47 = vld [vmem:[%s3440_s1 + $0x14] sm:$0xf] }
   0xc   :  { %2000 = vmatmul.msk.bf16.vlgmr.msra.gmra.mxu0 %vm259_vm0, %v2827_v26  ;;  %v1899_v44 = vor.u32 %v2539_v42, %v1898_v41  ;;  %2001 = vmatmul.msk.bf16.vlgmr.msra.gmra.mxu1 %vm259_vm0, %v2827_v26  ;;  %v1892_v48 = vld [vmem:[%s3440_s1 + $0x50] sm:$0xf0]  ;;  %v1970_v49 = vld [vmem:[%s3440_s1 + $0xa0] sm:$0xf]  ;;  %v1978_v53 = vld [vmem:[%s3440_s1 + $0xa8] sm:$0xf]  ;;  %v1903_v56 = vor.u32 %v2531_v45, %v1900_v46 }
   0xd   :  { %325 = vmatpush.bf16.msrb.mxu0 %v1955_v30  ;;  %2002 = vmatmul.msk.bf16.vlgmr.msra.gmra.mxu2 %vm259_vm0, %v2827_v26  ;;  %v2556_v50 = vld [vmem:[%s3440_s1 + $0xdc] sm:$0xf0]  ;;  %v1895_v51 = vor.u32 %v2530_v47, %v1892_v48  ;;  %v2557_v54 = vld [vmem:[%s3440_s1 + $0xe4] sm:$0xf0]  ;;  %v2549_v55 = vld [vmem:[%s3440_s1 + $0xac] sm:$0xf] }
   0xe   :  { %353 = vmatpush.bf16.msrb.mxu2 %v1963_v34  ;;  %2003 = vmatmul.msk.bf16.vlgmr.msra.gmra.mxu3 %vm259_vm0, %v2827_v26  ;;  %v1971_v52 = vor.u32 %v2556_v50, %v1970_v49  ;;  %v1979_v57 = vor.u32 %v2557_v54, %v1978_v53  ;;  %v1980_v58 = vld [vmem:[%s3440_s1 + $0xe8] sm:$0xf0]  ;;  %v2548_v59 = vld [vmem:[%s3440_s1 + $0xa4] sm:$0xf]  ;;  %v1906_v63 = vld [vmem:[%s3440_s1 + $0x20] sm:$0xf] }
   0xf   :  { %339 = vmatpush.bf16.msrb.mxu1 %v1959_v39  ;;  %367 = vmatpush.bf16.msrb.mxu3 %v1967_v38  ;;  %v1972_v60 = vld [vmem:[%s3440_s1 + $0xe0] sm:$0xf0]  ;;  %v1983_v61 = vor.u32 %v2549_v55, %v1980_v58  ;;  %v2540_v0 = vld [vmem:[%s3440_s1 + $0x5c] sm:$0xf0]  ;;  %v1914_v1 = vld [vmem:[%s3440_s1 + $0x28] sm:$0xf] }
  0x10   :  { %v1975_v62 = vor.u32 %v2548_v59, %v1972_v60  ;;  %v1907_v2 = vor.u32 %v2540_v0, %v1906_v63  ;;  %v2541_v3 = vld [vmem:[%s3440_s1 + $0x64] sm:$0xf0]  ;;  %v2533_v4 = vld [vmem:[%s3440_s1 + $0x2c] sm:$0xf]  ;;  %v2532_v7 = vld [vmem:[%s3440_s1 + $0x24] sm:$0xf] }
  0x11   :  { %326 = vmatpush.bf16.msrb.mxu0 %v1891_v43  ;;  %v1916_v5 = vld [vmem:[%s3440_s1 + $0x68] sm:$0xf0]  ;;  %v1915_v6 = vor.u32 %v2541_v3, %v1914_v1  ;;  %v1908_v8 = vld [vmem:[%s3440_s1 + $0x60] sm:$0xf0]  ;;  %v1994_v11 = vld [vmem:[%s3440_s1 + $0xb8] sm:$0xf] }
  0x12   :  { %354 = vmatpush.bf16.msrb.mxu2 %v1899_v44  ;;  %v1911_v9 = vor.u32 %v2532_v7, %v1908_v8  ;;  %v1919_v10 = vor.u32 %v2533_v4, %v1916_v5 }
  0x13   :  { %340 = vmatpush.bf16.msrb.mxu1 %v1895_v51  ;;  %368 = vmatpush.bf16.msrb.mxu3 %v1903_v56 }
  0x15   :  { %381 = vmatpush.bf16.msra.mxu0 %v1971_v52 }
  0x16   :  { %409 = vmatpush.bf16.msra.mxu2 %v1979_v57 }
  0x17   :  { %395 = vmatpush.bf16.msra.mxu1 %v1975_v62  ;;  %423 = vmatpush.bf16.msra.mxu3 %v1983_v61 }
  0x19   :  { %382 = vmatpush.bf16.msra.mxu0 %v1907_v2 }
  0x1a   :  { %410 = vmatpush.bf16.msra.mxu2 %v1915_v6 }
  0x1b   :  { %12 = vsyncpa [#allocation3], 0  ;;  %396 = vmatpush.bf16.msra.mxu1 %v1911_v9  ;;  %v2559_v12 = vld [vmem:[%s3440_s1 + $0xf4] sm:$0xf0]  ;;  %v2551_v13 = vld [vmem:[%s3440_s1 + $0xbc] sm:$0xf]  ;;  %424 = vmatpush.bf16.msra.mxu3 %v1919_v10 }
  0x1c   :  { %v1996_v14 = vld [vmem:[%s3440_s1 + $0xf8] sm:$0xf0]  ;;  %v1986_v15 = vld [vmem:[%s3440_s1 + $0xb0] sm:$0xf]  ;;  %v1995_v17 = vor.u32 %v2559_v12, %v1994_v11  ;;  %v1930_v19 = vld [vmem:[%s3440_s1 + $0x38] sm:$0xf]  ;;  %2004 = vmatmul.msk.bf16.vlgmr.msrb.gmra.mxu0 %vm259_vm0, %v2827_v26  ;;  %2005 = vmatmul.msk.bf16.vlgmr.msrb.gmra.mxu1 %vm259_vm0, %v2827_v26 }
  0x1d   :  { %v2558_v16 = vld [vmem:[%s3440_s1 + $0xec] sm:$0xf0]  ;;  %v1999_v18 = vor.u32 %v2551_v13, %v1996_v14  ;;  %v2543_v20 = vld [vmem:[%s3440_s1 + $0x74] sm:$0xf0]  ;;  %v2535_v22 = vld [vmem:[%s3440_s1 + $0x3c] sm:$0xf]  ;;  %2006 = vmatmul.msk.bf16.vlgmr.msrb.gmra.mxu2 %vm259_vm0, %v2827_v26 }
  0x1e   :  { %v1987_v21 = vor.u32 %v2558_v16, %v1986_v15  ;;  %v1932_v23 = vld [vmem:[%s3440_s1 + $0x78] sm:$0xf0]  ;;  %v2550_v24 = vld [vmem:[%s3440_s1 + $0xb4] sm:$0xf]  ;;  %2007 = vmatmul.msk.bf16.vlgmr.msrb.gmra.mxu3 %vm259_vm0, %v2827_v26  ;;  %465 = vmatpush.bf16.msrb.mxu2 %v1995_v17  ;;  %v1931_v27 = vor.u32 %v2543_v20, %v1930_v19  ;;  %v1922_v29 = vld [vmem:[%s3440_s1 + $0x30] sm:$0xf] }
  0x1f   :  { %v1988_v25 = vld [vmem:[%s3440_s1 + $0xf0] sm:$0xf0]  ;;  %v2542_v30 = vld [vmem:[%s3440_s1 + $0x6c] sm:$0xf0]  ;;  %479 = vmatpush.bf16.msrb.mxu3 %v1999_v18  ;;  %v1935_v32 = vor.u32 %v2535_v22, %v1932_v23  ;;  %v2567_v36 = vld [vmem:[%s3442_s3 + $0x38] sm:$0xff]  ;;  %s1860_s19 = sshll.u32 %s3446_s7, 4  ;;  %s1861_s19 = int_to_ptr.hbm [resolvable:$true] %s1860_s19 }
  0x20   :  { %v1991_v28 = vor.u32 %v2550_v24, %v1988_v25  ;;  %v2534_v31 = vld [vmem:[%s3440_s1 + $0x34] sm:$0xf]  ;;  %437 = vmatpush.bf16.msrb.mxu0 %v1987_v21  ;;  %v1923_v33 = vor.u32 %v2542_v30, %v1922_v29  ;;  %v2575_v37 = vld [vmem:[%s3442_s3 + $0x78] sm:$0xff]  ;;  %v2565_v44 = vld [vmem:[%s3442_s3 + $0x28] sm:$0xff]  ;;  %s2732_s20 = smov 8  }
  0x21   :  { %v1924_v34 = vld [vmem:[%s3440_s1 + $0x70] sm:$0xf0]  ;;  %v2583_v38 = vld [vmem:[%s3442_s3 + $0xb8] sm:$0xff]  ;;  %v2573_v45 = vld [vmem:[%s3442_s3 + $0x68] sm:$0xff] }
  0x22   :  { %451 = vmatpush.bf16.msrb.mxu1 %v1991_v28  ;;  %v1927_v35 = vor.u32 %v2534_v31, %v1924_v34  ;;  %466 = vmatpush.bf16.msrb.mxu2 %v1931_v27  ;;  %v2591_v39 = vld [vmem:[%s3442_s3 + $0xf8] sm:$0xff]  ;;  %v2566_v40 = vld [vmem:[%s3442_s3 + $0x30] sm:$0xff]  ;;  %v2581_v46 = vld [vmem:[%s3442_s3 + $0xa8] sm:$0xff] }
  0x23   :  { %480 = vmatpush.bf16.msrb.mxu3 %v1935_v32  ;;  %v2574_v41 = vld [vmem:[%s3442_s3 + $0x70] sm:$0xff]  ;;  %v2589_v47 = vld [vmem:[%s3442_s3 + $0xe8] sm:$0xff]  ;;  %v2564_v48 = vld [vmem:[%s3442_s3 + $0x20] sm:$0xff] }
  0x24   :  { %438 = vmatpush.bf16.msrb.mxu0 %v1923_v33  ;;  %v2582_v42 = vld [vmem:[%s3442_s3 + $0xb0] sm:$0xff]  ;;  %v2572_v49 = vld [vmem:[%s3442_s3 + $0x60] sm:$0xff]  ;;  %v2563_v52 = vld [vmem:[%s3442_s3 + $0x18] sm:$0xff] }
  0x25   :  { %v2590_v43 = vld [vmem:[%s3442_s3 + $0xf0] sm:$0xff]  ;;  %v2580_v50 = vld [vmem:[%s3442_s3 + $0xa0] sm:$0xff]  ;;  %v2571_v53 = vld [vmem:[%s3442_s3 + $0x58] sm:$0xff] }
  0x26   :  { %452 = vmatpush.bf16.msrb.mxu1 %v1927_v35  ;;  %v2588_v51 = vld [vmem:[%s3442_s3 + $0xe0] sm:$0xff]  ;;  %v2579_v54 = vld [vmem:[%s3442_s3 + $0x98] sm:$0xff]  ;;  %v2562_v56 = vld [vmem:[%s3442_s3 + $0x10] sm:$0xff] }
  0x27   :  { %v2587_v55 = vld [vmem:[%s3442_s3 + $0xd8] sm:$0xff]  ;;  %v2570_v57 = vld [vmem:[%s3442_s3 + $0x50] sm:$0xff]  ;;  %v2561_v59 = vld [vmem:[%s3442_s3 + $0x8] sm:$0xff] }
  0x28   :  { %v2578_v58 = vld [vmem:[%s3442_s3 + $0x90] sm:$0xff]  ;;  %v2569_v60 = vld [vmem:[%s3442_s3 + $0x48] sm:$0xff]  ;;  %v2560_v63 = vld [vmem:[%s3442_s3] sm:$0xff] }
  0x29   :  { %v2577_v61 = vld [vmem:[%s3442_s3 + $0x88] sm:$0xff]  ;;  %v2568_v0 = vld [vmem:[%s3442_s3 + $0x40] sm:$0xff]  ;;  %v2599_v1 = vld [vmem:[%s3442_s3 + $0x138] sm:$0xff] }
  0x2a   :  { %v2585_v62 = vld [vmem:[%s3442_s3 + $0xc8] sm:$0xff]  ;;  %v2607_v2 = vld [vmem:[%s3442_s3 + $0x178] sm:$0xff]  ;;  %v2576_v3 = vld [vmem:[%s3442_s3 + $0x80] sm:$0xff] }
  0x2b   :  { %v2584_v4 = vld [vmem:[%s3442_s3 + $0xc0] sm:$0xff]  ;;  %v2615_v5 = vld [vmem:[%s3442_s3 + $0x1b8] sm:$0xff]  ;;  %v2598_v7 = vld [vmem:[%s3442_s3 + $0x130] sm:$0xff] }
  0x2c   :  { %2008 = vmatmul.msk.bf16.vlgmr.msra.gmra.mxu0 %vm259_vm0, %v2827_v26  ;;  %2009 = vmatmul.msk.bf16.vlgmr.msra.gmra.mxu1 %vm259_vm0, %v2827_v26  ;;  %v2623_v6 = vld [vmem:[%s3442_s3 + $0x1f8] sm:$0xff]  ;;  %v2606_v8 = vld [vmem:[%s3442_s3 + $0x170] sm:$0xff]  ;;  %v2597_v11 = vld [vmem:[%s3442_s3 + $0x128] sm:$0xff] }
  0x2d   :  { %2010 = vmatmul.msk.bf16.vlgmr.msra.gmra.mxu2 %vm259_vm0, %v2827_v26  ;;  %1563 = vmatpush.bf16.msra.mxu0 %v2567_v36  ;;  %v2614_v9 = vld [vmem:[%s3442_s3 + $0x1b0] sm:$0xff]  ;;  %v2605_v12 = vld [vmem:[%s3442_s3 + $0x168] sm:$0xff]  ;;  %v2596_v13 = vld [vmem:[%s3442_s3 + $0x120] sm:$0xff] }
  0x2e   :  { %2011 = vmatmul.msk.bf16.vlgmr.msra.gmra.mxu3 %vm259_vm0, %v2827_v26  ;;  %1577 = vmatpush.bf16.msra.mxu1 %v2575_v37  ;;  %v2622_v10 = vld [vmem:[%s3442_s3 + $0x1f0] sm:$0xff]  ;;  %v2604_v14 = vld [vmem:[%s3442_s3 + $0x160] sm:$0xff]  ;;  %v2613_v15 = vld [vmem:[%s3442_s3 + $0x1a8] sm:$0xff] }
  0x2f   :  { %1591 = vmatpush.bf16.msra.mxu2 %v2583_v38  ;;  %1605 = vmatpush.bf16.msra.mxu3 %v2591_v39  ;;  %v2621_v16 = vld [vmem:[%s3442_s3 + $0x1e8] sm:$0xff]  ;;  %v2595_v17 = vld [vmem:[%s3442_s3 + $0x118] sm:$0xff]  ;;  %v2612_v19 = vld [vmem:[%s3442_s3 + $0x1a0] sm:$0xff] }
  0x30   :  { %v2603_v18 = vld [vmem:[%s3442_s3 + $0x158] sm:$0xff]  ;;  %v2620_v20 = vld [vmem:[%s3442_s3 + $0x1e0] sm:$0xff]  ;;  %v2594_v21 = vld [vmem:[%s3442_s3 + $0x110] sm:$0xff] }
  0x31   :  { %1564 = vmatpush.bf16.msra.mxu0 %v2566_v40  ;;  %v2602_v22 = vld [vmem:[%s3442_s3 + $0x150] sm:$0xff]  ;;  %v2611_v23 = vld [vmem:[%s3442_s3 + $0x198] sm:$0xff]  ;;  %v2593_v25 = vld [vmem:[%s3442_s3 + $0x108] sm:$0xff] }
  0x32   :  { %1578 = vmatpush.bf16.msra.mxu1 %v2574_v41  ;;  %v2619_v24 = vld [vmem:[%s3442_s3 + $0x1d8] sm:$0xff]  ;;  %v2601_v27 = vld [vmem:[%s3442_s3 + $0x148] sm:$0xff]  ;;  %v2610_v28 = vld [vmem:[%s3442_s3 + $0x190] sm:$0xff] }
  0x33   :  { %1592 = vmatpush.bf16.msra.mxu2 %v2582_v42  ;;  %1606 = vmatpush.bf16.msra.mxu3 %v2590_v43  ;;  %v2618_v29 = vld [vmem:[%s3442_s3 + $0x1d0] sm:$0xff]  ;;  %v2592_v30 = vld [vmem:[%s3442_s3 + $0x100] sm:$0xff]  ;;  %v2609_v32 = vld [vmem:[%s3442_s3 + $0x188] sm:$0xff] }
  0x34   :  { %v2600_v31 = vld [vmem:[%s3442_s3 + $0x140] sm:$0xff]  ;;  %v2617_v33 = vld [vmem:[%s3442_s3 + $0x1c8] sm:$0xff] }
  0x35   :  { %1565 = vmatpush.bf16.msra.mxu0 %v2565_v44  ;;  %v2608_v34 = vld [vmem:[%s3442_s3 + $0x180] sm:$0xff] }
  0x36   :  { %1579 = vmatpush.bf16.msra.mxu1 %v2573_v45  ;;  %v2616_v35 = vld [vmem:[%s3442_s3 + $0x1c0] sm:$0xff] }
  0x37   :  { %1593 = vmatpush.bf16.msra.mxu2 %v2581_v46  ;;  %1607 = vmatpush.bf16.msra.mxu3 %v2589_v47  ;;  %v3200_v36 = vld [vmem:[%s3441_s2] sm:$0xff] }
  0x38   :  { %v67_v38 = vperm.slane %v3200_v36, 0  ;;  %v68_v40 = vperm.slane %v3200_v36, 1 }
  0x39   :  { %1566 = vmatpush.bf16.msra.mxu0 %v2564_v48 }
  0x3a   :  { %1580 = vmatpush.bf16.msra.mxu1 %v2572_v49 }
  0x3b   :  { %1594 = vmatpush.bf16.msra.mxu2 %v2580_v50  ;;  %1608 = vmatpush.bf16.msra.mxu3 %v2588_v51  ;;  %v69_v50 = vperm.slane %v3200_v36, 2 }
  0x3c   :  { %2012 = vmatmul.msk.bf16.vlgmr.msrb.gmra.mxu0 %vm259_vm0, %v2827_v26  ;;  %2013 = vmatmul.msk.bf16.vlgmr.msrb.gmra.mxu1 %vm259_vm0, %v2827_v26 }
  0x3d   :  { %2014 = vmatmul.msk.bf16.vlgmr.msrb.gmra.mxu2 %vm259_vm0, %v2827_v26  ;;  %1567 = vmatpush.bf16.msra.mxu0 %v2563_v52  ;;  %v70_v52 = vperm.slane %v3200_v36, 3 }
  0x3e   :  { %2015 = vmatmul.msk.bf16.vlgmr.msrb.gmra.mxu3 %vm259_vm0, %v2827_v26  ;;  %1581 = vmatpush.bf16.msra.mxu1 %v2571_v53  ;;  %v2586_v26 = vld [vmem:[%s3442_s3 + $0xd0] sm:$0xff] }
  0x3f   :  { %1595 = vmatpush.bf16.msra.mxu2 %v2579_v54  ;;  %1609 = vmatpush.bf16.msra.mxu3 %v2587_v55  ;;  %v2631_v55 = vld [vmem:[%s3442_s3 + $0x238] sm:$0xff] }
  0x41   :  { %1568 = vmatpush.bf16.msra.mxu0 %v2562_v56 }
  0x42   :  { %1582 = vmatpush.bf16.msra.mxu1 %v2570_v57  ;;  %v2639_v57 = vld [vmem:[%s3442_s3 + $0x278] sm:$0xff] }
  0x43   :  { %1596 = vmatpush.bf16.msra.mxu2 %v2578_v58  ;;  %1610 = vmatpush.bf16.msra.mxu3 %v2586_v26 }
  0x45   :  { %1569 = vmatpush.bf16.msra.mxu0 %v2561_v59 }
  0x46   :  { %1583 = vmatpush.bf16.msra.mxu1 %v2569_v60 }
  0x47   :  { %1597 = vmatpush.bf16.msra.mxu2 %v2577_v61  ;;  %1611 = vmatpush.bf16.msra.mxu3 %v2585_v62 }
  0x49   :  { %1570 = vmatpush.bf16.msra.mxu0 %v2560_v63 }
  0x4a   :  { %1584 = vmatpush.bf16.msra.mxu1 %v2568_v0  ;;  %v2630_v0 = vld [vmem:[%s3442_s3 + $0x230] sm:$0xff] }
  0x4b   :  { %1598 = vmatpush.bf16.msra.mxu2 %v2576_v3  ;;  %1612 = vmatpush.bf16.msra.mxu3 %v2584_v4  ;;  %v2638_v4 = vld [vmem:[%s3442_s3 + $0x270] sm:$0xff] }
  0x4d   :  { %1619 = vmatpush.bf16.msrb.mxu0 %v2599_v1 }
  0x4e   :  { %1633 = vmatpush.bf16.msrb.mxu1 %v2607_v2  ;;  %v71_v2 = vperm.slane %v3200_v36, 4 }
  0x4f   :  { %1647 = vmatpush.bf16.msrb.mxu2 %v2615_v5  ;;  %1661 = vmatpush.bf16.msrb.mxu3 %v2623_v6 }
  0x51   :  { %1620 = vmatpush.bf16.msrb.mxu0 %v2598_v7  ;;  %v72_v7 = vperm.slane %v3200_v36, 5 }
  0x52   :  { %1634 = vmatpush.bf16.msrb.mxu1 %v2606_v8 }
  0x53   :  { %1648 = vmatpush.bf16.msrb.mxu2 %v2614_v9  ;;  %1662 = vmatpush.bf16.msrb.mxu3 %v2622_v10  ;;  %v2647_v10 = vld [vmem:[%s3442_s3 + $0x2b8] sm:$0xff] }
  0x55   :  { %1621 = vmatpush.bf16.msrb.mxu0 %v2597_v11 }
  0x56   :  { %1635 = vmatpush.bf16.msrb.mxu1 %v2605_v12  ;;  %v2655_v12 = vld [vmem:[%s3442_s3 + $0x2f8] sm:$0xff] }
  0x57   :  { %1649 = vmatpush.bf16.msrb.mxu2 %v2613_v15  ;;  %1663 = vmatpush.bf16.msrb.mxu3 %v2621_v16  ;;  %v2637_v16 = vld [vmem:[%s3442_s3 + $0x268] sm:$0xff] }
  0x59   :  { %1622 = vmatpush.bf16.msrb.mxu0 %v2596_v13  ;;  %v2629_v13 = vld [vmem:[%s3442_s3 + $0x228] sm:$0xff] }
  0x5a   :  { %1636 = vmatpush.bf16.msrb.mxu1 %v2604_v14 }
  0x5b   :  { %1650 = vmatpush.bf16.msrb.mxu2 %v2612_v19  ;;  %1664 = vmatpush.bf16.msrb.mxu3 %v2620_v20  ;;  %v2646_v19 = vld [vmem:[%s3442_s3 + $0x2b0] sm:$0xff]  ;;  %v73_v20 = vperm.slane %v3200_v36, 6 }
  0x5d   :  { %1623 = vmatpush.bf16.msrb.mxu0 %v2595_v17 }
  0x5e   :  { %1637 = vmatpush.bf16.msrb.mxu1 %v2603_v18 }
  0x5f   :  { %1651 = vmatpush.bf16.msrb.mxu2 %v2611_v23  ;;  %1665 = vmatpush.bf16.msrb.mxu3 %v2619_v24  ;;  %v2654_v23 = vld [vmem:[%s3442_s3 + $0x2f0] sm:$0xff]  ;;  %v2628_v24 = vld [vmem:[%s3442_s3 + $0x220] sm:$0xff] }
  0x61   :  { %1624 = vmatpush.bf16.msrb.mxu0 %v2594_v21 }
  0x62   :  { %1638 = vmatpush.bf16.msrb.mxu1 %v2602_v22 }
  0x63   :  { %1652 = vmatpush.bf16.msrb.mxu2 %v2610_v28  ;;  %1666 = vmatpush.bf16.msrb.mxu3 %v2618_v29 }
  0x65   :  { %1625 = vmatpush.bf16.msrb.mxu0 %v2593_v25 }
  0x66   :  { %1639 = vmatpush.bf16.msrb.mxu1 %v2601_v27  ;;  %v74_v27 = vperm.slane %v3200_v36, 7  ;;  %v2653_v36 = vld [vmem:[%s3442_s3 + $0x2e8] sm:$0xff] }
  0x67   :  { %1653 = vmatpush.bf16.msrb.mxu2 %v2609_v32  ;;  %1667 = vmatpush.bf16.msrb.mxu3 %v2617_v33 }
  0x69   :  { %1626 = vmatpush.bf16.msrb.mxu0 %v2592_v30  ;;  %v2636_v30 = vld [vmem:[%s3442_s3 + $0x260] sm:$0xff] }
  0x6a   :  { %1640 = vmatpush.bf16.msrb.mxu1 %v2600_v31 }
  0x6b   :  { %1654 = vmatpush.bf16.msrb.mxu2 %v2608_v34  ;;  %1668 = vmatpush.bf16.msrb.mxu3 %v2616_v35  ;;  %v2645_v34 = vld [vmem:[%s3442_s3 + $0x2a8] sm:$0xff] }
  0x89   :  { %v272_v37 = vpop.f32.mrf.mxu0  ;;  %v286_v39 = vpop.f32.mrf.mxu1 }
  0x8a   :  { %v273_v41 = vadd.f32 %v272_v37, %v67_v38  ;;  %v287_v42 = vadd.f32 %v286_v39, %v68_v40 }
  0x8c   :  { %v487_v46 = vmax.f32 %v273_v41, 0.0  ;;  %v488_v49 = vmax.f32 %v287_v42, 0.0  ;;  %v2635_v41 = vld [vmem:[%s3442_s3 + $0x258] sm:$0xff] }
  0x90   :  { %v300_v43 = vpop.f32.mrf.mxu2 }
  0x91   :  { %v314_v44 = vpop.f32.mrf.mxu3  ;;  %v274_v45 = vpop.f32.mrf.mxu0  ;;  %v301_v58 = vadd.f32 %v300_v43, %v69_v50  ;;  %v3261_v43 = vld [vmem:[%s3441_s2 + $0x8] sm:$0xff] }
  0x92   :  { %v275_v47 = vadd.f32 %v274_v45, %v67_v38  ;;  %v288_v48 = vpop.f32.mrf.mxu1  ;;  %v315_v59 = vadd.f32 %v314_v44, %v70_v52  ;;  %v2627_v38 = vld [vmem:[%s3442_s3 + $0x218] sm:$0xff]  ;;  %v2644_v45 = vld [vmem:[%s3442_s3 + $0x2a0] sm:$0xff] }
  0x93   :  { %v289_v51 = vadd.f32 %v288_v48, %v68_v40  ;;  %v489_v5 = vmax.f32 %v301_v58, 0.0 }
  0x94   :  { %v503_v53 = vmax.f32 %v275_v47, 0.0  ;;  %v490_v8 = vmax.f32 %v315_v59, 0.0  ;;  %v2643_v59 = vld [vmem:[%s3442_s3 + $0x298] sm:$0xff] }
  0x95   :  { %v504_v54 = vmax.f32 %v289_v51, 0.0  ;;  %v2626_v51 = vld [vmem:[%s3442_s3 + $0x210] sm:$0xff] }
  0x96   :  { %v519_v56 = vpack.c.bf16 %v503_v53, %v487_v46 }
  0x97   :  { %v520_v26 = vpack.c.bf16 %v504_v54, %v488_v49  ;;  %v75_v54 = vperm.slane %v3261_v43, 0 }
  0x98   :  { %v302_v60 = vpop.f32.mrf.mxu2  ;;  %1571 = vmatmul.bf16.vlgmr.msra.gmra.mxu0 %v519_v56  ;;  %v2634_v56 = vld [vmem:[%s3442_s3 + $0x250] sm:$0xff] }
  0x99   :  { %v303_v61 = vadd.f32 %v302_v60, %v69_v50  ;;  %v316_v62 = vpop.f32.mrf.mxu3  ;;  %1585 = vmatmul.bf16.vlgmr.msra.gmra.mxu1 %v520_v26  ;;  %1675 = vmatpush.bf16.msra.mxu0 %v2631_v55  ;;  %v328_v63 = vpop.f32.mrf.mxu0  ;;  %v2652_v50 = vld [vmem:[%s3442_s3 + $0x2e0] sm:$0xff]  ;;  %v76_v26 = vperm.slane %v3261_v43, 1 }
  0x9a   :  { %v317_v1 = vadd.f32 %v316_v62, %v70_v52  ;;  %1689 = vmatpush.bf16.msra.mxu1 %v2639_v57  ;;  %v342_v3 = vpop.f32.mrf.mxu1  ;;  %v329_v15 = vadd.f32 %v328_v63, %v71_v2  ;;  %v2625_v62 = vld [vmem:[%s3442_s3 + $0x208] sm:$0xff] }
  0x9b   :  { %v505_v6 = vmax.f32 %v303_v61, 0.0  ;;  %v343_v17 = vadd.f32 %v342_v3, %v72_v7  ;;  %v2651_v61 = vld [vmem:[%s3442_s3 + $0x2d8] sm:$0xff] }
  0x9c   :  { %v506_v9 = vmax.f32 %v317_v1, 0.0  ;;  %v491_v25 = vmax.f32 %v329_v15, 0.0  ;;  %v2633_v1 = vld [vmem:[%s3442_s3 + $0x248] sm:$0xff]  ;;  %v2663_v15 = vld [vmem:[%s3442_s3 + $0x338] sm:$0xff] }
  0x9d   :  { %v521_v11 = vpack.c.bf16 %v505_v6, %v489_v5  ;;  %1676 = vmatpush.bf16.msra.mxu0 %v2630_v0  ;;  %v492_v31 = vmax.f32 %v343_v17, 0.0  ;;  %v77_v5 = vperm.slane %v3261_v43, 2  ;;  %v2671_v17 = vld [vmem:[%s3442_s3 + $0x378] sm:$0xff] }
  0x9e   :  { %v522_v14 = vpack.c.bf16 %v506_v9, %v490_v8  ;;  %1690 = vmatpush.bf16.msra.mxu1 %v2638_v4  ;;  %v2642_v4 = vld [vmem:[%s3442_s3 + $0x290] sm:$0xff]  ;;  %v2624_v9 = vld [vmem:[%s3442_s3 + $0x200] sm:$0xff] }
  0x9f   :  { %1599 = vmatmul.bf16.vlgmr.msra.gmra.mxu2 %v521_v11  ;;  %v2650_v8 = vld [vmem:[%s3442_s3 + $0x2d0] sm:$0xff]  ;;  %v78_v11 = vperm.slane %v3261_v43, 3 }
  0xa0   :  { %1613 = vmatmul.bf16.vlgmr.msra.gmra.mxu3 %v522_v14  ;;  %1703 = vmatpush.bf16.msra.mxu2 %v2647_v10  ;;  %v356_v18 = vpop.f32.mrf.mxu2  ;;  %v2632_v14 = vld [vmem:[%s3442_s3 + $0x240] sm:$0xff] }
  0xa1   :  { %1717 = vmatpush.bf16.msra.mxu3 %v2655_v12  ;;  %v370_v21 = vpop.f32.mrf.mxu3  ;;  %1677 = vmatpush.bf16.msra.mxu0 %v2629_v13  ;;  %v330_v22 = vpop.f32.mrf.mxu0  ;;  %v357_v35 = vadd.f32 %v356_v18, %v73_v20 }
  0xa2   :  { %1691 = vmatpush.bf16.msra.mxu1 %v2637_v16  ;;  %v331_v28 = vadd.f32 %v330_v22, %v71_v2  ;;  %v344_v29 = vpop.f32.mrf.mxu1  ;;  %v371_v39 = vadd.f32 %v370_v21, %v74_v27 }
  0xa3   :  { %v345_v32 = vadd.f32 %v344_v29, %v72_v7  ;;  %v493_v46 = vmax.f32 %v357_v35, 0.0  ;;  %v2648_v35 = vld [vmem:[%s3442_s3 + $0x2c0] sm:$0xff] }
  0xa4   :  { %v507_v33 = vmax.f32 %v331_v28, 0.0  ;;  %1704 = vmatpush.bf16.msra.mxu2 %v2646_v19  ;;  %v494_v52 = vmax.f32 %v371_v39, 0.0  ;;  %v2670_v28 = vld [vmem:[%s3442_s3 + $0x370] sm:$0xff]  ;;  %v2687_v39 = vld [vmem:[%s3442_s3 + $0x3f8] sm:$0xff] }
  0xa5   :  { %1718 = vmatpush.bf16.msra.mxu3 %v2654_v23  ;;  %v508_v37 = vmax.f32 %v345_v32, 0.0  ;;  %1678 = vmatpush.bf16.msra.mxu0 %v2628_v24  ;;  %v2649_v23 = vld [vmem:[%s3442_s3 + $0x2c8] sm:$0xff] }
  0xa6   :  { %v523_v40 = vpack.c.bf16 %v507_v33, %v491_v25  ;;  %1692 = vmatpush.bf16.msra.mxu1 %v2636_v30 }
  0xa7   :  { %v524_v42 = vpack.c.bf16 %v508_v37, %v492_v31  ;;  %v2640_v31 = vld [vmem:[%s3442_s3 + $0x280] sm:$0xff]  ;;  %v2679_v37 = vld [vmem:[%s3442_s3 + $0x3b8] sm:$0xff] }
  0xa8   :  { %1705 = vmatpush.bf16.msra.mxu2 %v2645_v34  ;;  %v358_v44 = vpop.f32.mrf.mxu2  ;;  %1627 = vmatmul.bf16.vlgmr.msrb.gmra.mxu0 %v523_v40  ;;  %v2661_v40 = vld [vmem:[%s3442_s3 + $0x328] sm:$0xff] }
  0xa9   :  { %1719 = vmatpush.bf16.msra.mxu3 %v2653_v36  ;;  %v359_v47 = vadd.f32 %v358_v44, %v73_v20  ;;  %v372_v48 = vpop.f32.mrf.mxu3  ;;  %1679 = vmatpush.bf16.msra.mxu0 %v2627_v38  ;;  %v384_v49 = vpop.f32.mrf.mxu0  ;;  %v2641_v20 = vld [vmem:[%s3442_s3 + $0x288] sm:$0xff] }
  0xaa   :  { %v373_v53 = vadd.f32 %v372_v48, %v74_v27  ;;  %1693 = vmatpush.bf16.msra.mxu1 %v2635_v41  ;;  %v398_v55 = vpop.f32.mrf.mxu1  ;;  %v385_v0 = vadd.f32 %v384_v49, %v75_v54  ;;  %v2662_v27 = vld [vmem:[%s3442_s3 + $0x330] sm:$0xff] }
  0xab   :  { %v509_v57 = vmax.f32 %v359_v47, 0.0  ;;  %1641 = vmatmul.bf16.vlgmr.msrb.gmra.mxu1 %v524_v42  ;;  %v399_v2 = vadd.f32 %v398_v55, %v76_v26  ;;  %v2669_v42 = vld [vmem:[%s3442_s3 + $0x368] sm:$0xff]  ;;  %v2678_v47 = vld [vmem:[%s3442_s3 + $0x3b0] sm:$0xff]  ;;  %v2659_v55 = vld [vmem:[%s3442_s3 + $0x318] sm:$0xff] }
  0xac   :  { %v510_v58 = vmax.f32 %v373_v53, 0.0  ;;  %1706 = vmatpush.bf16.msra.mxu2 %v2644_v45  ;;  %v495_v10 = vmax.f32 %v385_v0, 0.0  ;;  %v2677_v53 = vld [vmem:[%s3442_s3 + $0x3a8] sm:$0xff]  ;;  %v2666_v0 = vld [vmem:[%s3442_s3 + $0x350] sm:$0xff] }
  0xad   :  { %v525_v60 = vpack.c.bf16 %v509_v57, %v493_v46  ;;  %1720 = vmatpush.bf16.msra.mxu3 %v2652_v50  ;;  %1680 = vmatpush.bf16.msra.mxu0 %v2626_v51  ;;  %v496_v18 = vmax.f32 %v399_v2, 0.0  ;;  %v2686_v50 = vld [vmem:[%s3442_s3 + $0x3f0] sm:$0xff]  ;;  %v2660_v51 = vld [vmem:[%s3442_s3 + $0x320] sm:$0xff] }
  0xae   :  { %v526_v63 = vpack.c.bf16 %v510_v58, %v494_v52  ;;  %1694 = vmatpush.bf16.msra.mxu1 %v2634_v56  ;;  %v2668_v52 = vld [vmem:[%s3442_s3 + $0x360] sm:$0xff]  ;;  %v2667_v56 = vld [vmem:[%s3442_s3 + $0x358] sm:$0xff]  ;;  %v79_v58 = vperm.slane %v3261_v43, 4 }
  0xaf   :  { %1655 = vmatmul.bf16.vlgmr.msrb.gmra.mxu2 %v525_v60 }
  0xb0   :  { %1669 = vmatmul.bf16.vlgmr.msrb.gmra.mxu3 %v526_v63  ;;  %1707 = vmatpush.bf16.msra.mxu2 %v2643_v59  ;;  %v412_v3 = vpop.f32.mrf.mxu2  ;;  %v80_v59 = vperm.slane %v3261_v43, 5 }
  0xb1   :  { %1721 = vmatpush.bf16.msra.mxu3 %v2651_v61  ;;  %v426_v6 = vpop.f32.mrf.mxu3  ;;  %1681 = vmatpush.bf16.msra.mxu0 %v2625_v62  ;;  %v386_v7 = vpop.f32.mrf.mxu0  ;;  %v413_v21 = vadd.f32 %v412_v3, %v77_v5  ;;  %v2684_v61 = vld [vmem:[%s3442_s3 + $0x3e0] sm:$0xff]  ;;  %v2658_v62 = vld [vmem:[%s3442_s3 + $0x310] sm:$0xff]  ;;  %v2675_v3 = vld [vmem:[%s3442_s3 + $0x398] sm:$0xff] }
  0xb2   :  { %1695 = vmatpush.bf16.msra.mxu1 %v2633_v1  ;;  %v387_v12 = vadd.f32 %v386_v7, %v75_v54  ;;  %v400_v13 = vpop.f32.mrf.mxu1  ;;  %v427_v24 = vadd.f32 %v426_v6, %v78_v11  ;;  %v2685_v54 = vld [vmem:[%s3442_s3 + $0x3e8] sm:$0xff]  ;;  %v2683_v6 = vld [vmem:[%s3442_s3 + $0x3d8] sm:$0xff] }
  0xb3   :  { %v401_v16 = vadd.f32 %v400_v13, %v76_v26  ;;  %v497_v32 = vmax.f32 %v413_v21, 0.0  ;;  %v2676_v26 = vld [vmem:[%s3442_s3 + $0x3a0] sm:$0xff]  ;;  %v81_v13 = vperm.slane %v3261_v43, 6 }
  0xb4   :  { %v511_v19 = vmax.f32 %v387_v12, 0.0  ;;  %1708 = vmatpush.bf16.msra.mxu2 %v2642_v4  ;;  %v498_v36 = vmax.f32 %v427_v24, 0.0  ;;  %v2674_v12 = vld [vmem:[%s3442_s3 + $0x390] sm:$0xff] }
  0xb5   :  { %1722 = vmatpush.bf16.msra.mxu3 %v2650_v8  ;;  %v512_v22 = vmax.f32 %v401_v16, 0.0  ;;  %1682 = vmatpush.bf16.msra.mxu0 %v2624_v9  ;;  %v2657_v8 = vld [vmem:[%s3442_s3 + $0x308] sm:$0xff]  ;;  %v2682_v16 = vld [vmem:[%s3442_s3 + $0x3d0] sm:$0xff] }
  0xb6   :  { %v527_v25 = vpack.c.bf16 %v511_v19, %v495_v10  ;;  %1696 = vmatpush.bf16.msra.mxu1 %v2632_v14  ;;  %v2665_v9 = vld [vmem:[%s3442_s3 + $0x348] sm:$0xff] }
  0xb7   :  { %v528_v29 = vpack.c.bf16 %v512_v22, %v496_v18  ;;  %v82_v18 = vperm.slane %v3261_v43, 7  ;;  %v2681_v43 = vld [vmem:[%s3442_s3 + $0x3c8] sm:$0xff] }
  0xb8   :  { %1709 = vmatpush.bf16.msra.mxu2 %v2641_v20  ;;  %v414_v30 = vpop.f32.mrf.mxu2  ;;  %1683 = vmatmul.bf16.vlgmr.msra.gmra.mxu0 %v527_v25  ;;  %v2664_v20 = vld [vmem:[%s3442_s3 + $0x340] sm:$0xff] }
  0xb9   :  { %1731 = vmatpush.bf16.msrb.mxu0 %v2663_v15  ;;  %1723 = vmatpush.bf16.msra.mxu3 %v2649_v23  ;;  %v415_v33 = vadd.f32 %v414_v30, %v77_v5  ;;  %v428_v34 = vpop.f32.mrf.mxu3  ;;  %v440_v45 = vpop.f32.mrf.mxu0  ;;  %v2673_v23 = vld [vmem:[%s3442_s3 + $0x388] sm:$0xff]  ;;  %v2672_v30 = vld [vmem:[%s3442_s3 + $0x380] sm:$0xff] }
  0xba   :  { %1745 = vmatpush.bf16.msrb.mxu1 %v2671_v17  ;;  %v429_v38 = vadd.f32 %v428_v34, %v78_v11  ;;  %v454_v48 = vpop.f32.mrf.mxu1  ;;  %v441_v2 = vadd.f32 %v440_v45, %v79_v58  ;;  %v2656_v17 = vld [vmem:[%s3442_s3 + $0x300] sm:$0xff] }
  0xbb   :  { %v513_v41 = vmax.f32 %v415_v33, 0.0  ;;  %1697 = vmatmul.bf16.vlgmr.msra.gmra.mxu1 %v528_v29  ;;  %v455_v5 = vadd.f32 %v454_v48, %v80_v59  ;;  %v2680_v33 = vld [vmem:[%s3442_s3 + $0x3c0] sm:$0xff] }
  0xbc   :  { %v514_v44 = vmax.f32 %v429_v38, 0.0  ;;  %1710 = vmatpush.bf16.msra.mxu2 %v2640_v31  ;;  %v499_v10 = vmax.f32 %v441_v2, 0.0  ;;  %v2692_v45 = vld [vmem:[%s3443_s4] ss:$0 sm:$0xff] }
  0xbd   :  { %1732 = vmatpush.bf16.msrb.mxu0 %v2662_v27  ;;  %v529_v46 = vpack.c.bf16 %v513_v41, %v497_v32  ;;  %1724 = vmatpush.bf16.msra.mxu3 %v2648_v35  ;;  %v500_v14 = vmax.f32 %v455_v5, 0.0 }
  0xbe   :  { %1746 = vmatpush.bf16.msrb.mxu1 %v2670_v28  ;;  %v530_v49 = vpack.c.bf16 %v514_v44, %v498_v36 }
  0xbf   :  { %1711 = vmatmul.bf16.vlgmr.msra.gmra.mxu2 %v529_v46 }
  0xc0   :  { %1759 = vmatpush.bf16.msrb.mxu2 %v2679_v37  ;;  %1725 = vmatmul.bf16.vlgmr.msra.gmra.mxu3 %v530_v49  ;;  %v468_v57 = vpop.f32.mrf.mxu2 }
  0xc1   :  { %1773 = vmatpush.bf16.msrb.mxu3 %v2687_v39  ;;  %1733 = vmatpush.bf16.msrb.mxu0 %v2661_v40  ;;  %v482_v60 = vpop.f32.mrf.mxu3  ;;  %v442_v63 = vpop.f32.mrf.mxu0  ;;  %v469_v24 = vadd.f32 %v468_v57, %v81_v13 }
  0xc2   :  { %1747 = vmatpush.bf16.msrb.mxu1 %v2669_v42  ;;  %v456_v1 = vpop.f32.mrf.mxu1  ;;  %v443_v4 = vadd.f32 %v442_v63, %v79_v58  ;;  %v483_v28 = vadd.f32 %v482_v60, %v82_v18 }
  0xc3   :  { %v457_v7 = vadd.f32 %v456_v1, %v80_v59  ;;  %v501_v31 = vmax.f32 %v469_v24, 0.0 }
  0xc4   :  { %1760 = vmatpush.bf16.msrb.mxu2 %v2678_v47  ;;  %v515_v11 = vmax.f32 %v443_v4, 0.0  ;;  %v502_v34 = vmax.f32 %v483_v28, 0.0 }
  0xc5   :  { %1774 = vmatpush.bf16.msrb.mxu3 %v2686_v50  ;;  %1734 = vmatpush.bf16.msrb.mxu0 %v2660_v51  ;;  %v516_v15 = vmax.f32 %v457_v7, 0.0 }
  0xc6   :  { %1748 = vmatpush.bf16.msrb.mxu1 %v2668_v52  ;;  %v531_v22 = vpack.c.bf16 %v515_v11, %v499_v10 }
  0xc7   :  { %v532_v27 = vpack.c.bf16 %v516_v15, %v500_v14 }
  0xc8   :  { %1761 = vmatpush.bf16.msrb.mxu2 %v2677_v53  ;;  %v470_v19 = vpop.f32.mrf.mxu2 }
  0xc9   :  { %1775 = vmatpush.bf16.msrb.mxu3 %v2685_v54  ;;  %1735 = vmatpush.bf16.msrb.mxu0 %v2659_v55  ;;  %v484_v21 = vpop.f32.mrf.mxu3  ;;  %v471_v25 = vadd.f32 %v470_v19, %v81_v13 }
  0xca   :  { %1749 = vmatpush.bf16.msrb.mxu1 %v2667_v56  ;;  %v485_v29 = vadd.f32 %v484_v21, %v82_v18 }
  0xcb   :  { %v517_v32 = vmax.f32 %v471_v25, 0.0 }
  0xcc   :  { %1762 = vmatpush.bf16.msrb.mxu2 %v2676_v26  ;;  %v518_v35 = vmax.f32 %v485_v29, 0.0 }
  0xcd   :  { %1776 = vmatpush.bf16.msrb.mxu3 %v2684_v61  ;;  %1736 = vmatpush.bf16.msrb.mxu0 %v2658_v62  ;;  %v533_v37 = vpack.c.bf16 %v517_v32, %v501_v31 }
  0xce   :  { %1750 = vmatpush.bf16.msrb.mxu1 %v2666_v0  ;;  %v534_v36 = vpack.c.bf16 %v518_v35, %v502_v34 }
  0xd0   :  { %1763 = vmatpush.bf16.msrb.mxu2 %v2675_v3 }
  0xd1   :  { %1777 = vmatpush.bf16.msrb.mxu3 %v2683_v6  ;;  %1737 = vmatpush.bf16.msrb.mxu0 %v2657_v8 }
  0xd2   :  { %1751 = vmatpush.bf16.msrb.mxu1 %v2665_v9 }
  0xd4   :  { %1764 = vmatpush.bf16.msrb.mxu2 %v2674_v12 }
  0xd5   :  { %1778 = vmatpush.bf16.msrb.mxu3 %v2682_v16  ;;  %1738 = vmatpush.bf16.msrb.mxu0 %v2656_v17 }
  0xd6   :  { %1752 = vmatpush.bf16.msrb.mxu1 %v2664_v20 }
  0xd8   :  { %1765 = vmatpush.bf16.msrb.mxu2 %v2673_v23  ;;  %1739 = vmatmul.bf16.vlgmr.msrb.gmra.mxu0 %v531_v22 }
  0xd9   :  { %1779 = vmatpush.bf16.msrb.mxu3 %v2681_v43  ;;  %1753 = vmatmul.bf16.vlgmr.msrb.gmra.mxu1 %v532_v27 }
  0xdc   :  { %1766 = vmatpush.bf16.msrb.mxu2 %v2672_v30 }
  0xdd   :  { %1780 = vmatpush.bf16.msrb.mxu3 %v2680_v33  ;;  %v2701_v33 = vld [vmem:[%s3439_s0] sm:$0xff] }
  0xdf   :  { %1767 = vmatmul.bf16.vlgmr.msrb.gmra.mxu2 %v533_v37 }
  0xe0   :  { %1781 = vmatmul.bf16.vlgmr.msrb.gmra.mxu3 %v534_v36 }
 0x115   :  { %v1572_v38 = vpop.f32.mrf.mxu0 }
 0x116   :  { %v1586_v39 = vpop.f32.mrf.mxu1  ;;  %v1573_v49 = vadd.f32 %v2692_v45, %v1572_v38 }
 0x118   :  { %v1587_v51 = vadd.f32 %v1586_v39, %v1573_v49 }
 0x11d   :  { %v1574_v40 = vpop.f32.mrf.mxu0 }
 0x11e   :  { %v1588_v44 = vpop.f32.mrf.mxu1  ;;  %v1575_v55 = vadd.f32 %v2692_v45, %v1574_v40 }
 0x120   :  { %v1589_v58 = vadd.f32 %v1588_v44, %v1575_v55 }
 0x122   :  { %v1600_v41 = vpop.f32.mrf.mxu2 }
 0x123   :  { %v1614_v42 = vpop.f32.mrf.mxu3  ;;  %v1601_v52 = vadd.f32 %v1600_v41, %v1587_v51 }
 0x125   :  { %v1628_v46 = vpop.f32.mrf.mxu0  ;;  %v1615_v57 = vadd.f32 %v1614_v42, %v1601_v52  ;;  %v2702_v42 = vld [vmem:[%s3439_s0 + $0x8] sm:$0xff] }
 0x127   :  { %v1629_v59 = vadd.f32 %v1628_v46, %v1615_v57  ;;  %v2729_v46 = vmov 32.0  }
 0x128   :  { %v1642_v50 = vpop.f32.mrf.mxu1  ;;  %2695 = vrcp.f32 %v2729_v46 }
 0x129   :  { %v1643_v63 = vadd.f32 %v1642_v50, %v1629_v59 }
 0x12a   :  { %v1602_v47 = vpop.f32.mrf.mxu2 }
 0x12b   :  { %v1616_v48 = vpop.f32.mrf.mxu3  ;;  %v1603_v60 = vadd.f32 %v1602_v47, %v1589_v58 }
 0x12d   :  { %v1630_v53 = vpop.f32.mrf.mxu0  ;;  %v1617_v0 = vadd.f32 %v1616_v48, %v1603_v60 }
 0x12e   :  { %v2696_v47 = vpop.eup %2695 }
 0x12f   :  { %v1631_v3 = vadd.f32 %v1630_v53, %v1617_v0  ;;  %v1796_v48 = vmul.f32 32.0, %v2696_v47  ;;  %vm1800_vm1 = vweird.f32 %v2696_v47 }
 0x130   :  { %v1644_v26 = vpop.f32.mrf.mxu1 }
 0x131   :  { %v1645_v6 = vadd.f32 %v1644_v26, %v1631_v3  ;;  %v1797_v49 = vsub.f32 1.0, %v1796_v48 }
 0x132   :  { %v1656_v54 = vpop.f32.mrf.mxu2 }
 0x133   :  { %v1670_v56 = vpop.f32.mrf.mxu3  ;;  %v1657_v2 = vadd.f32 %v1656_v54, %v1643_v63  ;;  %v1798_v50 = vmul.f32 %v2696_v47, %v1797_v49 }
 0x135   :  { %v1684_v61 = vpop.f32.mrf.mxu0  ;;  %v1671_v5 = vadd.f32 %v1670_v56, %v1657_v2  ;;  %v1799_v51 = vadd.f32 %v2696_v47, %v1798_v50 }
 0x137   :  { %v1685_v9 = vadd.f32 %v1684_v61, %v1671_v5  ;;  %v1801_v52 = vsel %vm1800_vm1, %v2696_v47, %v1799_v51 }
 0x138   :  { %v1698_v4 = vpop.f32.mrf.mxu1 }
 0x139   :  { %v1699_v12 = vadd.f32 %v1698_v4, %v1685_v9 }
 0x13a   :  { %v1658_v62 = vpop.f32.mrf.mxu2 }
 0x13b   :  { %v1672_v1 = vpop.f32.mrf.mxu3  ;;  %v1659_v10 = vadd.f32 %v1658_v62, %v1645_v6 }
 0x13d   :  { %v1686_v7 = vpop.f32.mrf.mxu0  ;;  %v1673_v13 = vadd.f32 %v1672_v1, %v1659_v10 }
 0x13f   :  { %v1687_v17 = vadd.f32 %v1686_v7, %v1673_v13 }
 0x140   :  { %v1700_v14 = vpop.f32.mrf.mxu1 }
 0x141   :  { %v1701_v21 = vadd.f32 %v1700_v14, %v1687_v17 }
 0x142   :  { %v1712_v8 = vpop.f32.mrf.mxu2 }
 0x143   :  { %v1726_v11 = vpop.f32.mrf.mxu3  ;;  %v1713_v15 = vadd.f32 %v1712_v8, %v1699_v12  ;;  %v2693_v12 = vld [vmem:[%s3444_s5] ss:$0 sm:$0xff]  ;;  %s2730_s5 = smov [#allocation2]  }
 0x144   :  { %s1858_s17 = sshll.u32 %s2730_s5, 4  ;;  %s1859_s17 = int_to_ptr.vmem [resolvable:$true] %s1858_s17 }
 0x145   :  { %v1727_v19 = vadd.f32 %v1726_v11, %v1713_v15 }
 0x14a   :  { %v1714_v18 = vpop.f32.mrf.mxu2 }
 0x14b   :  { %v1728_v20 = vpop.f32.mrf.mxu3  ;;  %v1715_v24 = vadd.f32 %v1714_v18, %v1701_v21 }
 0x14d   :  { %v1729_v28 = vadd.f32 %v1728_v20, %v1715_v24 }
 0x155   :  { %v1740_v16 = vpop.f32.mrf.mxu0 }
 0x156   :  { %v1741_v22 = vadd.f32 %v1740_v16, %v1727_v19  ;;  %v1754_v23 = vpop.f32.mrf.mxu1  ;;  %v2694_v16 = vld [vmem:[%s3445_s6] ss:$0 sm:$0xff]  ;;  %s2731_s6 = smov 128  }
 0x158   :  { %v1755_v25 = vadd.f32 %v1754_v23, %v1741_v22 }
 0x15d   :  { %v1742_v27 = vpop.f32.mrf.mxu0 }
 0x15e   :  { %v1743_v31 = vadd.f32 %v1742_v27, %v1729_v28  ;;  %v1756_v35 = vpop.f32.mrf.mxu1 }
 0x160   :  { %v1757_v37 = vadd.f32 %v1756_v35, %v1743_v31 }
 0x162   :  { %v1768_v43 = vpop.f32.mrf.mxu2 }
 0x163   :  { %v1769_v29 = vadd.f32 %v1768_v43, %v1755_v25  ;;  %v1782_v30 = vpop.f32.mrf.mxu3 }
 0x165   :  { %v1783_v32 = vadd.f32 %v1782_v30, %v1769_v29 }
 0x167   :  { %v1787_v34 = vadd.f32 %v2701_v33, %v1783_v32 }
 0x169   :  { %v1789_v36 = vsel %vm259_vm0, %v1787_v34, 0.0 }
 0x16a   :  { %v1770_v38 = vpop.f32.mrf.mxu2  ;;  %1790 = vadd.xlane.f32.xlu0 %v1789_v36 }
 0x16b   :  { %v1771_v39 = vadd.f32 %v1770_v38, %v1757_v37  ;;  %v1784_v40 = vpop.f32.mrf.mxu3 }
 0x16d   :  { %v1785_v41 = vadd.f32 %v1784_v40, %v1771_v39 }
 0x16f   :  { %v1788_v44 = vadd.f32 %v2702_v42, %v1785_v41 }
 0x171   :  { %v1792_v45 = vsel %vm259_vm0, %v1788_v44, 0.0 }
 0x172   :  { %1793 = vadd.xlane.f32.xlu0 %v1792_v45 }
 0x1dd   :  { %v1791_v53 = vpop.xlane.xlu0 %1790 }
 0x1de   :  { %v1802_v54 = vmul.f32 %v1801_v52, %v1791_v53 }
 0x1e0   :  { %v1804_v55 = vsub.f32 %v1787_v34, %v1802_v54 }
 0x1e2   :  { %v1806_v56 = vmul.f32 %v1804_v55, %v1804_v55 }
 0x1e4   :  { %v1808_v57 = vsel %vm259_vm0, %v1806_v56, 0.0 }
 0x1e5   :  { %1809 = vadd.xlane.f32.xlu1 %v1808_v57  ;;  %v1794_v58 = vpop.xlane.xlu0 %1793 }
 0x1e6   :  { %v1803_v26 = vmul.f32 %v1801_v52, %v1794_v58 }
 0x1e8   :  { %v1805_v59 = vsub.f32 %v1788_v44, %v1803_v26 }
 0x1ea   :  { %v1807_v60 = vmul.f32 %v1805_v59, %v1805_v59 }
 0x1ec   :  { %v1811_v61 = vsel %vm259_vm0, %v1807_v60, 0.0 }
 0x1ed   :  { %1812 = vadd.xlane.f32.xlu1 %v1811_v61 }
 0x258   :  { %v1810_v62 = vpop.xlane.xlu1 %1809 }
 0x259   :  { %v1814_v63 = vmul.f32 %v1810_v62, %v1801_v52 }
 0x25b   :  { %v1816_v0 = vadd.f32 1e-05, %v1814_v63 }
 0x25d   :  { %2697 = vrsqrt.f32 %v1816_v0  ;;  %vm1824_vm3 = vweird.f32 %v1816_v0 }
 0x260   :  { %v1813_v1 = vpop.xlane.xlu1 %1812 }
 0x261   :  { %v1815_v2 = vmul.f32 %v1813_v1, %v1801_v52 }
 0x263   :  { %v2698_v3 = vpop.eup %2697  ;;  %v1817_v4 = vadd.f32 1e-05, %v1815_v2 }
 0x264   :  { %v1819_v5 = vmul.f32 %v2698_v3, %v1816_v0  ;;  %vm1825_vm2 = vweird.f32 %v2698_v3 }
 0x265   :  { %2699 = vrsqrt.f32 %v1817_v4  ;;  %vm1826_vm4 = vmor %vm1824_vm3, %vm1825_vm2  ;;  %vm1834_vm6 = vweird.f32 %v1817_v4 }
 0x266   :  { %v1820_v6 = vmul.f32 %v2698_v3, %v1819_v5 }
 0x268   :  { %v1821_v7 = vmul.f32 0.5, %v1820_v6 }
 0x26a   :  { %v1822_v8 = vsub.f32 1.5, %v1821_v7 }
 0x26b   :  { %v2700_v9 = vpop.eup %2699 }
 0x26c   :  { %v1823_v10 = vmul.f32 %v2698_v3, %v1822_v8  ;;  %v1829_v11 = vmul.f32 %v2700_v9, %v1817_v4  ;;  %vm1835_vm5 = vweird.f32 %v2700_v9 }
 0x26d   :  { %vm1836_vm7 = vmor %vm1834_vm6, %vm1835_vm5 }
 0x26e   :  { %v1827_v13 = vsel %vm1826_vm4, %v2698_v3, %v1823_v10  ;;  %v1830_v14 = vmul.f32 %v2700_v9, %v1829_v11 }
 0x26f   :  { %v1838_v15 = vmul.f32 %v1827_v13, %v1804_v55 }
 0x270   :  { %v1831_v17 = vmul.f32 0.5, %v1830_v14 }
 0x271   :  { %v1844_v18 = vmul.f32 %v2693_v12, %v1838_v15 }
 0x272   :  { %v1832_v19 = vsub.f32 1.5, %v1831_v17 }
 0x273   :  { %v1850_v20 = vadd.f32 %v2694_v16, %v1844_v18 }
 0x274   :  { %v1833_v21 = vmul.f32 %v2700_v9, %v1832_v19 }
 0x275   :  { %1852 = vst.msk [vmem:[#allocation2] sm:$0xff] %vm259_vm0, %v1850_v20 }
 0x276   :  { %v1837_v22 = vsel %vm1836_vm7, %v2700_v9, %v1833_v21 }
 0x277   :  { %v1839_v23 = vmul.f32 %v1837_v22, %v1805_v59 }
 0x279   :  { %v1845_v24 = vmul.f32 %v2693_v12, %v1839_v23 }
 0x27b   :  { %v1851_v25 = vadd.f32 %v2694_v16, %v1845_v24 }
 0x27d   :  { %1853 = vst.msk [vmem:[#allocation2 + $0x8] sm:$0xff] %vm259_vm0, %v1851_v25 }
 0x27e   :  { %1866 = dma.vmem_to_hbm [thread:$0]  %s1859_s17, 256, %s1861_s19, [#allocation3], %s2731_s6, %s2731_s6, %s2732_s20  }
 0x27f   :  { %2727 = dma.done.wait [#allocation3], 256  }
 0x280   :  { %2728 = vsyncadd [#allocation3], 4294967040 }
 0x281   :  { %1871 = vsyncpa [#allocation3], 1 }

</bundles_post_ra>
